<compile_context>
chip_gen: v7x
topology: tpu7x:2x2x1
jax: 0.10.0
libtpu: 0.0.40
codegen_flags: <defaults>
</compile_context>

<pallas_src>
import functools

import jax
import jax.numpy as jnp
from jax.experimental import pallas as pl
from jax.experimental.pallas import tpu as pltpu

INPUT_DIM = 784          # hard-coded in the PyTorch module
OUT_DIM = 784
K_PAD = 896              # 784 padded to a multiple of 128
ZP = 128                 # z_dim padded to one full lane register
_VMEM_LIMIT = 32 * 1024 * 1024


def _round_up(n, m):
    return ((n + m - 1) // m) * m


# ----------------------------------------------------------------------------
# Fused kernel: encoder -> reparam -> decoder -> per-tile ELBO partial sum
# ----------------------------------------------------------------------------
def vae_fused_kernel(x_ref, eps_ref, w1_ref, b1_ref, wh_ref, bh_ref,
                     wd1_ref, bd1_ref, wd2_ref, bd2_ref,
                     mean_ref, std_ref, recon_ref, loss_ref,
                     *, z_dim, out_dim, batch):
    tb = x_ref.shape[0]
    tile = pl.program_id(0)

    # ------------------------------ encoder ------------------------------
    xb = x_ref[...]                                            # bf16 [tb, K_PAD]
    h = jnp.dot(xb, w1_ref[...], preferred_element_type=jnp.float32) + b1_ref[...]
    h = jnp.maximum(h, 0.0)                                    # ReLU
    head = jnp.dot(h.astype(jnp.bfloat16), wh_ref[...],
                   preferred_element_type=jnp.float32) + bh_ref[...]
    mean = head[:, :ZP]                                        # no ReLU
    std = jnp.maximum(head[:, ZP:], 0.0)                       # ReLU
    mean_ref[...] = mean
    std_ref[...] = std

    # ----------------------- reparameterize + decoder --------------------
    z = eps_ref[...] * std + mean                              # [tb, ZP] f32
    h2 = jnp.dot(z.astype(jnp.bfloat16), wd1_ref[...],
                 preferred_element_type=jnp.float32) + bd1_ref[...]
    h2 = jnp.maximum(h2, 0.0)                                  # ReLU
    logits = jnp.dot(h2.astype(jnp.bfloat16), wd2_ref[...],
                     preferred_element_type=jnp.float32) + bd2_ref[...]
    recon_ref[...] = jax.nn.sigmoid(logits).astype(recon_ref.dtype)

    # ------------------- negative ELBO (per-tile partial) ----------------
    x32 = xb.astype(jnp.float32)
    row_ok = (jax.lax.broadcasted_iota(jnp.int32, (tb, 1), 0) + tile * tb) < batch
    col_x = jax.lax.broadcasted_iota(jnp.int32, logits.shape, 1) < out_dim
    # x*log(sigmoid(l)) + (1-x)*log(1-sigmoid(l)) == x*l - softplus(l)
    softplus = jnp.maximum(logits, 0.0) + jnp.log(1.0 + jnp.exp(-jnp.abs(logits)))
    bern = x32 * logits - softplus
    rec_part = -jnp.sum(jnp.where(row_ok & col_x, bern, 0.0))

    col_z = jax.lax.broadcasted_iota(jnp.int32, mean.shape, 1) < z_dim
    reg_pix = -jnp.log(std + 1e-8) + (std * std + mean * mean) * 0.5 - 0.5
    reg_part = jnp.sum(jnp.where(row_ok & col_z, reg_pix, 0.0))

    loss_ref[...] = jnp.full(loss_ref.shape, (rec_part + reg_part) / batch,
                             dtype=jnp.float32)


# ----------------------------------------------------------------------------
# Wrapper
# ----------------------------------------------------------------------------
def _pick_tile(b, cap):
    """Minimize padding waste; keep >=2 tiles (for v7x's 2 TCs) when b > 16."""
    if b <= 16:
        return _round_up(b, 8)
    n_tiles = max(2, (b + cap - 1) // cap)
    return _round_up((b + n_tiles - 1) // n_tiles, 8)


def vae_forward(x, params, eps, block_b=None, tile_cap=256):
    """x: [B, 784] f32 in [0,1]; eps: [B, z_dim] f32.  Returns
    (negative_average_elbo, (mean, std, reconstruction))."""
    assert x.shape[1] == INPUT_DIM
    b = x.shape[0]
    z_dim = params["z_dim"]
    h_pad = params["w1"].shape[1]

    if block_b is not None:
        tb = _round_up(max(block_b, 1), 8)
    else:
        tb = _pick_tile(b, tile_cap)
    b_pad = _round_up(b, tb)
    n_tiles = b_pad // tb

    xp = jnp.pad(x, ((0, b_pad - b), (0, K_PAD - INPUT_DIM))).astype(jnp.bfloat16)
    eps_p = jnp.pad(eps, ((0, b_pad - b), (0, ZP - z_dim))).astype(jnp.float32)

    kernel = functools.partial(vae_fused_kernel, z_dim=z_dim, out_dim=OUT_DIM,
                               batch=b)
    const = lambda i: (0, 0)

    mean_p, std_p, recon_p, loss_p = pl.pallas_call(
        kernel,
        out_shape=(jax.ShapeDtypeStruct((b_pad, ZP), jnp.float32),
                   jax.ShapeDtypeStruct((b_pad, ZP), jnp.float32),
                   jax.ShapeDtypeStruct((b_pad, K_PAD), jnp.bfloat16),
                   jax.ShapeDtypeStruct((n_tiles, 8, 128), jnp.float32)),
        grid=(n_tiles,),
        in_specs=[
            pl.BlockSpec((tb, K_PAD), lambda i: (i, 0)),       # x (bf16)
            pl.BlockSpec((tb, ZP), lambda i: (i, 0)),          # eps (f32)
            pl.BlockSpec((K_PAD, h_pad), const),               # w1
            pl.BlockSpec((1, h_pad), const),                   # b1
            pl.BlockSpec((h_pad, 2 * ZP), const),              # fused mean/std head
            pl.BlockSpec((1, 2 * ZP), const),
            pl.BlockSpec((ZP, h_pad), const),                  # wd1
            pl.BlockSpec((1, h_pad), const),                   # bd1
            pl.BlockSpec((h_pad, K_PAD), const),               # wd2
            pl.BlockSpec((1, K_PAD), const),                   # bd2
        ],
        out_specs=(pl.BlockSpec((tb, ZP), lambda i: (i, 0)),
                   pl.BlockSpec((tb, ZP), lambda i: (i, 0)),
                   pl.BlockSpec((tb, K_PAD), lambda i: (i, 0)),
                   pl.BlockSpec((1, 8, 128), lambda i: (i, 0, 0))),
        compiler_params=pltpu.CompilerParams(
            dimension_semantics=("parallel",),
            vmem_limit_bytes=_VMEM_LIMIT),
    )(xp, eps_p, params["w1"], params["b1"], params["whead"], params["bhead"],
      params["wd1"], params["bd1"], params["wd2"], params["bd2"])

    elbo = jnp.sum(loss_p[:, 0, 0])
    mean = mean_p[:b, :z_dim]
    std = std_p[:b, :z_dim]
    recon = recon_p[:b, :OUT_DIM].astype(jnp.float32)
    return elbo, (mean, std, recon)


# ----------------------------------------------------------------------------
# Parameter init (PyTorch nn.Linear default init), padded + bf16 weights
# ----------------------------------------------------------------------------
def init_params(key, hidden_dim=500, z_dim=20):
    assert z_dim <= ZP
    h_pad = _round_up(hidden_dim, 128)
    ks = jax.random.split(key, 5)

    def linear(k, fan_in, fan_out):
        kw, kb = jax.random.split(k)
        bound = 1.0 / (fan_in ** 0.5)
        w = jax.random.uniform(kw, (fan_in, fan_out), jnp.float32, -bound, bound)
        b = jax.random.uniform(kb, (fan_out,), jnp.float32, -bound, bound)
        return w, b

    w1, b1 = linear(ks[0], INPUT_DIM, hidden_dim)     # encoder feature_learning
    wm, bm = linear(ks[1], hidden_dim, z_dim)         # linear_mean
    ws, bs = linear(ks[2], hidden_dim, z_dim)         # linear_std
    wd1, bd1 = linear(ks[3], z_dim, hidden_dim)       # decoder layer 1
    wd2, bd2 = linear(ks[4], hidden_dim, OUT_DIM)     # decoder layer 2

    def pad_w(w, rows, cols):
        return jnp.pad(w, ((0, rows - w.shape[0]),
                           (0, cols - w.shape[1]))).astype(jnp.bfloat16)

    def pad_b(v, cols):
        return jnp.pad(v, (0, cols - v.shape[0])).reshape(1, cols).astype(jnp.float32)

    # fused mean/std head: lanes [0:z) = mean, lanes [ZP:ZP+z) = std
    whead = jnp.zeros((hidden_dim, 2 * ZP), jnp.float32)
    whead = whead.at[:, :z_dim].set(wm).at[:, ZP:ZP + z_dim].set(ws)
    bhead = jnp.zeros((2 * ZP,), jnp.float32)
    bhead = bhead.at[:z_dim].set(bm).at[ZP:ZP + z_dim].set(bs)

    return {
        "w1": pad_w(w1, K_PAD, h_pad), "b1": pad_b(b1, h_pad),
        "whead": pad_w(whead, h_pad, 2 * ZP), "bhead": bhead.reshape(1, 2 * ZP),
        "wd1": pad_w(wd1, ZP, h_pad), "bd1": pad_b(bd1, h_pad),
        "wd2": pad_w(wd2, h_pad, K_PAD), "bd2": pad_b(bd2, K_PAD),
        "z_dim": z_dim, "hidden_dim": hidden_dim,
    }


# ----------------------------------------------------------------------------
# Pure-JAX reference (same bf16 weights / bf16 x / f32 accumulation)
# ----------------------------------------------------------------------------
def reference_vae(x, params, eps):
    z_dim = params["z_dim"]
    xb = x.astype(jnp.bfloat16).astype(jnp.float32)   # kernel streams x as bf16

    def bdot(a, w):
        return jnp.dot(a.astype(jnp.bfloat16), w,
                       preferred_element_type=jnp.float32)

    xp = jnp.pad(xb, ((0, 0), (0, K_PAD - INPUT_DIM)))
    h = jnp.maximum(bdot(xp, params["w1"]) + params["b1"], 0.0)
    head = bdot(h, params["whead"]) + params["bhead"]
    mean = head[:, :z_dim]
    std = jnp.maximum(head[:, ZP:ZP + z_dim], 0.0)

    z = eps * std + mean
    zp = jnp.pad(z, ((0, 0), (0, ZP - z_dim)))
    h2 = jnp.maximum(bdot(zp, params["wd1"]) + params["bd1"], 0.0)
    recon = jax.nn.sigmoid(bdot(h2, params["wd2"]) + params["bd2"])[:, :OUT_DIM]

    rec_loss = -jnp.sum(jnp.mean(xb * jnp.log(recon)
                                 + (1.0 - xb) * jnp.log(1.0 - recon), axis=0))
    reg_loss = jnp.sum(jnp.mean(jnp.log(1.0 / (std + 1e-8))
                                + (std ** 2 + mean ** 2) / 2.0 - 0.5, axis=0))
    return rec_loss + reg_loss, (mean, std, recon)


# TODO(synk): VAE.sample / sample_manifold (torch.bernoulli, erfinv grids) are
# not part of forward() and are not implemented here.

if __name__ == "__main__":
    key = jax.random.PRNGKey(0)
    k_x, k_p, k_e, k_x2, k_e2 = jax.random.split(key, 5)

    batch, hidden_dim, z_dim = 8, 500, 20
    x = jax.random.uniform(k_x, (batch, INPUT_DIM), jnp.float32)   # pixels in [0,1]
    eps = jax.random.normal(k_e, (batch, z_dim), jnp.float32)
    params = init_params(k_p, hidden_dim=hidden_dim, z_dim=z_dim)

    elbo, (mean, std, recon) = vae_forward(x, params, eps)
    jax.block_until_ready((elbo, mean, std, recon))

    elbo_r, (mean_r, std_r, recon_r) = reference_vae(x, params, eps)

    assert mean.shape == (batch, z_dim) and std.shape == (batch, z_dim)
    assert recon.shape == (batch, OUT_DIM)
    assert bool(jnp.all(std >= 0.0))
    assert bool(jnp.all((recon >= 0.0) & (recon <= 1.0)))
    assert bool(jnp.isfinite(elbo))
    assert jnp.allclose(mean, mean_r, atol=1e-2, rtol=1e-2)
    assert jnp.allclose(std, std_r, atol=1e-2, rtol=1e-2)
    assert jnp.allclose(recon, recon_r, atol=1.5e-2, rtol=1e-2)
    assert jnp.allclose(elbo, elbo_r, rtol=2e-2, atol=0.5)

    # Multi-tile grid + padded-row masking coverage:
    # 21 rows with an 8-row batch tile -> grid=(3,), 3 padded rows in last tile.
    x2 = jax.random.uniform(k_x2, (21, INPUT_DIM), jnp.float32)
    eps2 = jax.random.normal(k_e2, (21, z_dim), jnp.float32)
    elbo2, (mean2, std2, recon2) = vae_forward(x2, params, eps2, block_b=8)
    jax.block_until_ready((elbo2, mean2, std2, recon2))
    elbo2_r, (mean2_r, _, _) = reference_vae(x2, params, eps2)
    assert mean2.shape == (21, z_dim) and recon2.shape == (21, OUT_DIM)
    assert jnp.allclose(mean2, mean2_r, atol=1e-2, rtol=1e-2)
    assert jnp.allclose(elbo2, elbo2_r, rtol=2e-2, atol=0.5)

    print("KERNEL_OK")
</pallas_src>

<mosaic_0001>
module attributes {stable_mosaic.version = 11 : i64} {
  func.func @vae_fused_kernel(%arg0: i32, %arg1: memref<8x896xbf16, #tpu.memory_space<vmem>>, %arg2: memref<8x128xf32, #tpu.memory_space<vmem>>, %arg3: memref<896x512xbf16, #tpu.memory_space<vmem>>, %arg4: memref<1x512xf32, #tpu.memory_space<vmem>>, %arg5: memref<512x256xbf16, #tpu.memory_space<vmem>>, %arg6: memref<1x256xf32, #tpu.memory_space<vmem>>, %arg7: memref<128x512xbf16, #tpu.memory_space<vmem>>, %arg8: memref<1x512xf32, #tpu.memory_space<vmem>>, %arg9: memref<512x896xbf16, #tpu.memory_space<vmem>>, %arg10: memref<1x896xf32, #tpu.memory_space<vmem>>, %arg11: memref<8x128xf32, #tpu.memory_space<vmem>>, %arg12: memref<8x128xf32, #tpu.memory_space<vmem>>, %arg13: memref<8x896xbf16, #tpu.memory_space<vmem>>, %arg14: memref<1x8x128xf32, #tpu.memory_space<vmem>>) attributes {dimension_semantics = [#tpu.dimension_semantics<parallel>], iteration_bounds = array<i64: 1>, scalar_prefetch = 0 : i64, scratch_operands = 0 : i64, tpu.core_type = #tpu.core_type<tc>, window_params = [{transform_indices = @transform_0, window_bounds = array<i64: 8, 896>}, {transform_indices = @transform_1, window_bounds = array<i64: 8, 128>}, {pipeline_mode = #tpu.pipeline_mode<synchronous>, transform_indices = @transform_2, window_bounds = array<i64: 896, 512>}, {pipeline_mode = #tpu.pipeline_mode<synchronous>, transform_indices = @transform_3, window_bounds = array<i64: 1, 512>}, {pipeline_mode = #tpu.pipeline_mode<synchronous>, transform_indices = @transform_4, window_bounds = array<i64: 512, 256>}, {pipeline_mode = #tpu.pipeline_mode<synchronous>, transform_indices = @transform_5, window_bounds = array<i64: 1, 256>}, {pipeline_mode = #tpu.pipeline_mode<synchronous>, transform_indices = @transform_6, window_bounds = array<i64: 128, 512>}, {pipeline_mode = #tpu.pipeline_mode<synchronous>, transform_indices = @transform_7, window_bounds = array<i64: 1, 512>}, {pipeline_mode = #tpu.pipeline_mode<synchronous>, transform_indices = @transform_8, window_bounds = array<i64: 512, 896>}, {pipeline_mode = #tpu.pipeline_mode<synchronous>, transform_indices = @transform_9, window_bounds = array<i64: 1, 896>}, {transform_indices = @transform_10, window_bounds = array<i64: 8, 128>}, {transform_indices = @transform_11, window_bounds = array<i64: 8, 128>}, {transform_indices = @transform_12, window_bounds = array<i64: 8, 896>}, {transform_indices = @transform_13, window_bounds = array<i64: 1, 8, 128>}]} {
    %c0 = arith.constant 0 : index
    %c0_0 = arith.constant 0 : index
    %0 = vector.load %arg1[%c0, %c0_0] : memref<8x896xbf16, #tpu.memory_space<vmem>>, vector<8x896xbf16>
    %c0_1 = arith.constant 0 : index
    %c0_2 = arith.constant 0 : index
    %1 = vector.load %arg3[%c0_1, %c0_2] : memref<896x512xbf16, #tpu.memory_space<vmem>>, vector<896x512xbf16>
    %cst = arith.constant dense<0.000000e+00> : vector<8x512xf32>
    %2 = tpu.matmul %0, %1, %cst {dimension_numbers = #tpu.dot_dimension_numbers<[1], [0], [0], [1], [0, 0, 1, 1], [], []>} : vector<8x896xbf16>, vector<896x512xbf16>, vector<8x512xf32> -> vector<8x512xf32>
    %c0_3 = arith.constant 0 : index
    %c0_4 = arith.constant 0 : index
    %3 = vector.load %arg4[%c0_3, %c0_4] : memref<1x512xf32, #tpu.memory_space<vmem>>, vector<1x512xf32>
    %4 = vector.broadcast %3 : vector<1x512xf32> to vector<8x512xf32>
    %5 = arith.addf %2, %4 : vector<8x512xf32>
    %cst_5 = arith.constant 0.000000e+00 : f32
    %6 = vector.broadcast %cst_5 : f32 to vector<8x512xf32>
    %7 = arith.maximumf %5, %6 : vector<8x512xf32>
    %8 = arith.truncf %7 : vector<8x512xf32> to vector<8x512xbf16>
    %c0_6 = arith.constant 0 : index
    %c0_7 = arith.constant 0 : index
    %9 = vector.load %arg5[%c0_6, %c0_7] : memref<512x256xbf16, #tpu.memory_space<vmem>>, vector<512x256xbf16>
    %cst_8 = arith.constant dense<0.000000e+00> : vector<8x256xf32>
    %10 = tpu.matmul %8, %9, %cst_8 {dimension_numbers = #tpu.dot_dimension_numbers<[1], [0], [0], [1], [0, 0, 1, 1], [], []>} : vector<8x512xbf16>, vector<512x256xbf16>, vector<8x256xf32> -> vector<8x256xf32>
    %c0_9 = arith.constant 0 : index
    %c0_10 = arith.constant 0 : index
    %11 = vector.load %arg6[%c0_9, %c0_10] : memref<1x256xf32, #tpu.memory_space<vmem>>, vector<1x256xf32>
    %12 = vector.broadcast %11 : vector<1x256xf32> to vector<8x256xf32>
    %13 = arith.addf %10, %12 : vector<8x256xf32>
    %14 = vector.extract_strided_slice %13 {offsets = [0, 0], sizes = [8, 128], strides = [1, 1]} : vector<8x256xf32> to vector<8x128xf32>
    %15 = vector.extract_strided_slice %13 {offsets = [0, 128], sizes = [8, 128], strides = [1, 1]} : vector<8x256xf32> to vector<8x128xf32>
    %cst_11 = arith.constant 0.000000e+00 : f32
    %16 = vector.broadcast %cst_11 : f32 to vector<8x128xf32>
    %17 = arith.maximumf %15, %16 : vector<8x128xf32>
    %c0_12 = arith.constant 0 : index
    %c0_13 = arith.constant 0 : index
    %18 = vector.load %arg11[%c0_12, %c0_13] : memref<8x128xf32, #tpu.memory_space<vmem>>, vector<8x128xf32>
    tpu.vector_store %arg11[%c0_12, %c0_13], %14 {strides = array<i32>} : memref<8x128xf32, #tpu.memory_space<vmem>>, vector<8x128xf32>,
    %c0_14 = arith.constant 0 : index
    %c0_15 = arith.constant 0 : index
    %19 = vector.load %arg12[%c0_14, %c0_15] : memref<8x128xf32, #tpu.memory_space<vmem>>, vector<8x128xf32>
    tpu.vector_store %arg12[%c0_14, %c0_15], %17 {strides = array<i32>} : memref<8x128xf32, #tpu.memory_space<vmem>>, vector<8x128xf32>,
    %c0_16 = arith.constant 0 : index
    %c0_17 = arith.constant 0 : index
    %20 = vector.load %arg2[%c0_16, %c0_17] : memref<8x128xf32, #tpu.memory_space<vmem>>, vector<8x128xf32>
    %21 = arith.mulf %20, %17 : vector<8x128xf32>
    %22 = arith.addf %21, %14 : vector<8x128xf32>
    %23 = arith.truncf %22 : vector<8x128xf32> to vector<8x128xbf16>
    %c0_18 = arith.constant 0 : index
    %c0_19 = arith.constant 0 : index
    %24 = vector.load %arg7[%c0_18, %c0_19] : memref<128x512xbf16, #tpu.memory_space<vmem>>, vector<128x512xbf16>
    %cst_20 = arith.constant dense<0.000000e+00> : vector<8x512xf32>
    %25 = tpu.matmul %23, %24, %cst_20 {dimension_numbers = #tpu.dot_dimension_numbers<[1], [0], [0], [1], [0, 0, 1, 1], [], []>} : vector<8x128xbf16>, vector<128x512xbf16>, vector<8x512xf32> -> vector<8x512xf32>
    %c0_21 = arith.constant 0 : index
    %c0_22 = arith.constant 0 : index
    %26 = vector.load %arg8[%c0_21, %c0_22] : memref<1x512xf32, #tpu.memory_space<vmem>>, vector<1x512xf32>
    %27 = vector.broadcast %26 : vector<1x512xf32> to vector<8x512xf32>
    %28 = arith.addf %25, %27 : vector<8x512xf32>
    %cst_23 = arith.constant 0.000000e+00 : f32
    %29 = vector.broadcast %cst_23 : f32 to vector<8x512xf32>
    %30 = arith.maximumf %28, %29 : vector<8x512xf32>
    %31 = arith.truncf %30 : vector<8x512xf32> to vector<8x512xbf16>
    %c0_24 = arith.constant 0 : index
    %c0_25 = arith.constant 0 : index
    %32 = vector.load %arg9[%c0_24, %c0_25] : memref<512x896xbf16, #tpu.memory_space<vmem>>, vector<512x896xbf16>
    %cst_26 = arith.constant dense<0.000000e+00> : vector<8x896xf32>
    %33 = tpu.matmul %31, %32, %cst_26 {dimension_numbers = #tpu.dot_dimension_numbers<[1], [0], [0], [1], [0, 0, 1, 1], [], []>} : vector<8x512xbf16>, vector<512x896xbf16>, vector<8x896xf32> -> vector<8x896xf32>
    %c0_27 = arith.constant 0 : index
    %c0_28 = arith.constant 0 : index
    %34 = vector.load %arg10[%c0_27, %c0_28] : memref<1x896xf32, #tpu.memory_space<vmem>>, vector<1x896xf32>
    %35 = vector.broadcast %34 : vector<1x896xf32> to vector<8x896xf32>
    %36 = arith.addf %33, %35 : vector<8x896xf32>
    %37 = arith.negf %36 : vector<8x896xf32>
    %38 = math.exp %37 : vector<8x896xf32>
    %cst_29 = arith.constant 1.000000e+00 : f32
    %39 = vector.broadcast %cst_29 : f32 to vector<8x896xf32>
    %40 = arith.addf %39, %38 : vector<8x896xf32>
    %41 = arith.divf %39, %40 : vector<8x896xf32>
    %42 = arith.truncf %41 : vector<8x896xf32> to vector<8x896xbf16>
    %c0_30 = arith.constant 0 : index
    %c0_31 = arith.constant 0 : index
    %43 = vector.load %arg13[%c0_30, %c0_31] : memref<8x896xbf16, #tpu.memory_space<vmem>>, vector<8x896xbf16>
    tpu.vector_store %arg13[%c0_30, %c0_31], %42 {strides = array<i32>} : memref<8x896xbf16, #tpu.memory_space<vmem>>, vector<8x896xbf16>,
    %44 = arith.extf %0 : vector<8x896xbf16> to vector<8x896xf32>
    %45 = tpu.iota {dimensions = array<i32: 0>} : vector<8x1xi32>
    %c8_i32 = arith.constant 8 : i32
    %46 = arith.muli %arg0, %c8_i32 : i32
    %47 = vector.broadcast %46 : i32 to vector<8x1xi32>
    %48 = arith.addi %45, %47 : vector<8x1xi32>
    %c8_i32_32 = arith.constant 8 : i32
    %49 = vector.broadcast %c8_i32_32 : i32 to vector<8x1xi32>
    %50 = arith.cmpi slt, %48, %49 : vector<8x1xi32>
    %51 = tpu.iota {dimensions = array<i32: 1>} : vector<8x896xi32>
    %c784_i32 = arith.constant 784 : i32
    %52 = vector.broadcast %c784_i32 : i32 to vector<8x896xi32>
    %53 = arith.cmpi slt, %51, %52 : vector<8x896xi32>
    %cst_33 = arith.constant 0.000000e+00 : f32
    %54 = vector.broadcast %cst_33 : f32 to vector<8x896xf32>
    %55 = arith.maximumf %36, %54 : vector<8x896xf32>
    %56 = math.absf %36 : vector<8x896xf32>
    %cst_34 = arith.constant 0.000000e+00 : f32
    %57 = vector.broadcast %cst_34 : f32 to vector<8x896xf32>
    %58 = arith.subf %57, %56 : vector<8x896xf32>
    %59 = math.exp %58 : vector<8x896xf32>
    %cst_35 = arith.constant 1.000000e+00 : f32
    %60 = vector.broadcast %cst_35 : f32 to vector<8x896xf32>
    %61 = arith.addf %60, %59 : vector<8x896xf32>
    %62 = math.log %61 : vector<8x896xf32>
    %63 = arith.addf %55, %62 : vector<8x896xf32>
    %64 = arith.mulf %44, %36 : vector<8x896xf32>
    %65 = arith.subf %64, %63 : vector<8x896xf32>
    %66 = vector.broadcast %50 : vector<8x1xi1> to vector<8x896xi1>
    %67 = arith.andi %66, %53 : vector<8x896xi1>
    %cst_36 = arith.constant 0.000000e+00 : f32
    %68 = vector.broadcast %cst_36 : f32 to vector<8x896xf32>
    %69 = arith.select %67, %65, %68 : vector<8x896xi1>, vector<8x896xf32>
    %70 = vector.shape_cast %69 : vector<8x896xf32> to vector<1x8x896xf32>
    %cst_37 = arith.constant dense<0.000000e+00> : vector<1xf32>
    %71 = vector.multi_reduction <add>, %70, %cst_37 [1, 2] : vector<1x8x896xf32> to vector<1xf32>
    %72 = vector.shape_cast %71 : vector<1xf32> to vector<1x1x1xf32>
    %73 = vector.extract %72[0, 0, 0] : f32 from vector<1x1x1xf32>
    %cst_38 = arith.constant 0.000000e+00 : f32
    %74 = arith.subf %cst_38, %73 : f32
    %75 = tpu.iota {dimensions = array<i32: 1>} : vector<8x128xi32>
    %c20_i32 = arith.constant 20 : i32
    %76 = vector.broadcast %c20_i32 : i32 to vector<8x128xi32>
    %77 = arith.cmpi slt, %75, %76 : vector<8x128xi32>
    %cst_39 = arith.constant 9.99999993E-9 : f32
    %78 = vector.broadcast %cst_39 : f32 to vector<8x128xf32>
    %79 = arith.addf %17, %78 : vector<8x128xf32>
    %80 = math.log %79 : vector<8x128xf32>
    %cst_40 = arith.constant 0.000000e+00 : f32
    %81 = vector.broadcast %cst_40 : f32 to vector<8x128xf32>
    %82 = arith.subf %81, %80 : vector<8x128xf32>
    %83 = arith.mulf %17, %17 : vector<8x128xf32>
    %84 = arith.mulf %14, %14 : vector<8x128xf32>
    %85 = arith.addf %83, %84 : vector<8x128xf32>
    %cst_41 = arith.constant 5.000000e-01 : f32
    %86 = vector.broadcast %cst_41 : f32 to vector<8x128xf32>
    %87 = arith.mulf %85, %86 : vector<8x128xf32>
    %88 = arith.addf %82, %87 : vector<8x128xf32>
    %cst_42 = arith.constant 5.000000e-01 : f32
    %89 = vector.broadcast %cst_42 : f32 to vector<8x128xf32>
    %90 = arith.subf %88, %89 : vector<8x128xf32>
    %91 = vector.broadcast %50 : vector<8x1xi1> to vector<8x128xi1>
    %92 = arith.andi %91, %77 : vector<8x128xi1>
    %cst_43 = arith.constant 0.000000e+00 : f32
    %93 = vector.broadcast %cst_43 : f32 to vector<8x128xf32>
    %94 = arith.select %92, %90, %93 : vector<8x128xi1>, vector<8x128xf32>
    %95 = vector.shape_cast %94 : vector<8x128xf32> to vector<1x8x128xf32>
    %cst_44 = arith.constant dense<0.000000e+00> : vector<1xf32>
    %96 = vector.multi_reduction <add>, %95, %cst_44 [1, 2] : vector<1x8x128xf32> to vector<1xf32>
    %97 = vector.shape_cast %96 : vector<1xf32> to vector<1x1x1xf32>
    %98 = vector.extract %97[0, 0, 0] : f32 from vector<1x1x1xf32>
    %99 = arith.addf %74, %98 : f32
    %cst_45 = arith.constant 8.000000e+00 : f32
    %100 = arith.divf %99, %cst_45 : f32
    %101 = vector.broadcast %100 : f32 to vector<1x8x128xf32>
    %c0_46 = arith.constant 0 : index
    %c0_47 = arith.constant 0 : index
    %c0_48 = arith.constant 0 : index
    %102 = vector.load %arg14[%c0_46, %c0_47, %c0_48] : memref<1x8x128xf32, #tpu.memory_space<vmem>>, vector<1x8x128xf32>
    tpu.vector_store %arg14[%c0_46, %c0_47, %c0_48], %101 {strides = array<i32>} : memref<1x8x128xf32, #tpu.memory_space<vmem>>, vector<1x8x128xf32>,
    return
  }
  func.func @transform_0(%arg0: i32) -> (i32, i32) {
    %c0_i32 = arith.constant 0 : i32
    %c0_i32_0 = arith.constant 0 : i32
    return %arg0, %c0_i32 : i32, i32
  }
  func.func @transform_1(%arg0: i32) -> (i32, i32) {
    %c0_i32 = arith.constant 0 : i32
    %c0_i32_0 = arith.constant 0 : i32
    return %arg0, %c0_i32 : i32, i32
  }
  func.func @transform_2(%arg0: i32) -> (i32, i32) {
    %c0_i32 = arith.constant 0 : i32
    %c0_i32_0 = arith.constant 0 : i32
    %c0_i32_1 = arith.constant 0 : i32
    return %c0_i32, %c0_i32_0 : i32, i32
  }
  func.func @transform_3(%arg0: i32) -> (i32, i32) {
    %c0_i32 = arith.constant 0 : i32
    %c0_i32_0 = arith.constant 0 : i32
    %c0_i32_1 = arith.constant 0 : i32
    return %c0_i32, %c0_i32_0 : i32, i32
  }
  func.func @transform_4(%arg0: i32) -> (i32, i32) {
    %c0_i32 = arith.constant 0 : i32
    %c0_i32_0 = arith.constant 0 : i32
    %c0_i32_1 = arith.constant 0 : i32
    return %c0_i32, %c0_i32_0 : i32, i32
  }
  func.func @transform_5(%arg0: i32) -> (i32, i32) {
    %c0_i32 = arith.constant 0 : i32
    %c0_i32_0 = arith.constant 0 : i32
    %c0_i32_1 = arith.constant 0 : i32
    return %c0_i32, %c0_i32_0 : i32, i32
  }
  func.func @transform_6(%arg0: i32) -> (i32, i32) {
    %c0_i32 = arith.constant 0 : i32
    %c0_i32_0 = arith.constant 0 : i32
    %c0_i32_1 = arith.constant 0 : i32
    return %c0_i32, %c0_i32_0 : i32, i32
  }
  func.func @transform_7(%arg0: i32) -> (i32, i32) {
    %c0_i32 = arith.constant 0 : i32
    %c0_i32_0 = arith.constant 0 : i32
    %c0_i32_1 = arith.constant 0 : i32
    return %c0_i32, %c0_i32_0 : i32, i32
  }
  func.func @transform_8(%arg0: i32) -> (i32, i32) {
    %c0_i32 = arith.constant 0 : i32
    %c0_i32_0 = arith.constant 0 : i32
    %c0_i32_1 = arith.constant 0 : i32
    return %c0_i32, %c0_i32_0 : i32, i32
  }
  func.func @transform_9(%arg0: i32) -> (i32, i32) {
    %c0_i32 = arith.constant 0 : i32
    %c0_i32_0 = arith.constant 0 : i32
    %c0_i32_1 = arith.constant 0 : i32
    return %c0_i32, %c0_i32_0 : i32, i32
  }
  func.func @transform_10(%arg0: i32) -> (i32, i32) {
    %c0_i32 = arith.constant 0 : i32
    %c0_i32_0 = arith.constant 0 : i32
    return %arg0, %c0_i32 : i32, i32
  }
  func.func @transform_11(%arg0: i32) -> (i32, i32) {
    %c0_i32 = arith.constant 0 : i32
    %c0_i32_0 = arith.constant 0 : i32
    return %arg0, %c0_i32 : i32, i32
  }
  func.func @transform_12(%arg0: i32) -> (i32, i32) {
    %c0_i32 = arith.constant 0 : i32
    %c0_i32_0 = arith.constant 0 : i32
    return %arg0, %c0_i32 : i32, i32
  }
  func.func @transform_13(%arg0: i32) -> (i32, i32, i32) {
    %c0_i32 = arith.constant 0 : i32
    %c0_i32_0 = arith.constant 0 : i32
    %c0_i32_1 = arith.constant 0 : i32
    return %arg0, %c0_i32, %c0_i32_0 : i32, i32, i32
  }
}

</mosaic_0001>

<bundles_post_ra>
// kernel: tpu_custom_call.1
= control target key start
LH: loop header
LB: loop body
LE: loop exit
PB: predicated region body
PF: predicated region fallthrough
CT: control target
= control target key end

     0   :  { %19 = vsyncpa [#allocation3], 0  ;;  %s6880_s0 = inlined_call_operand.hbm [shape: bf16[8,896], index: 0, kind: input, shape index: {}]   ;;  %s6881_s1 = inlined_call_operand.hbm [shape: f32[8,128], index: 1, kind: input, shape index: {}]   ;;  %s6882_s2 = inlined_call_operand.hbm [shape: bf16[896,512], index: 2, kind: input, shape index: {}]   ;;  %s6883_s3 = inlined_call_operand.vmem [shape: f32[1,512], index: 3, kind: input, shape index: {}]   ;;  %s6884_s4 = inlined_call_operand.hbm [shape: bf16[512,256], index: 4, kind: input, shape index: {}]   ;;  %s6885_s5 = inlined_call_operand.vmem [shape: f32[1,256], index: 5, kind: input, shape index: {}]   ;;  %s6886_s6 = inlined_call_operand.hbm [shape: bf16[128,512], index: 6, kind: input, shape index: {}]   ;;  %s6887_s7 = inlined_call_operand.vmem [shape: f32[1,512], index: 7, kind: input, shape index: {}]   ;;  %s6888_s8 = inlined_call_operand.hbm [shape: bf16[512,896], index: 8, kind: input, shape index: {}]   ;;  %s6889_s9 = inlined_call_operand.vmem [shape: f32[1,896], index: 9, kind: input, shape index: {}]   ;;  %s6890_s10 = inlined_call_operand.hbm [shape: f32[8,128], index: 10, kind: output, shape index: {0}]   ;;  %s6891_s11 = inlined_call_operand.hbm [shape: f32[8,128], index: 11, kind: output, shape index: {1}]   ;;  %s6892_s12 = inlined_call_operand.hbm [shape: bf16[8,896], index: 12, kind: output, shape index: {2}]   ;;  %s6893_s13 = inlined_call_operand.hbm [shape: f32[1,8,128], index: 13, kind: output, shape index: {3}]  }
   0x1   :  { %20 = vsyncpa [#allocation6], 0 }
   0x2   :  { %21 = vsyncpa [#allocation9], 0 }
   0x3   :  { %22 = vsyncpa [#allocation12], 0 }
   0x4   :  { %23 = vsyncpa [#allocation4], 0 }
   0x5   :  { %24 = vsyncpa [#allocation15], 0 }
   0x6   :  { %25 = vsyncpa [#allocation18], 0  ;;  %s6498_s25 = smov [#allocation5]   ;;  %s6499_s27 = smov [#allocation8]  }
   0x7   :  { %s42_s26 = sshll.u32 %s6498_s25, 4  ;;  %s65_s28 = sshll.u32 %s6499_s27, 4  ;;  %s43_s26 = int_to_ptr.vmem [resolvable:$true] %s42_s26  ;;  %s6585_s28 = int_to_ptr.vmem [resolvable:$true] %s65_s28 }
   0x8   :  { %s6264_s14 = scalar_lea.hbm %s6881_s1, 128 }
   0x9   :  { %p6265_p0 = scmp.ne.s32.totalorder %s6881_s1, %s6264_s14  ;;  %p6268_p1 = scmp.lt.u32.totalorder %s6264_s14, %s6881_s1 }
   0xb   :  { %p6270_p2 = pnand %p6268_p1, %p6265_p0 }
   0xd   :  { %6273 = shalt.err (!%p6270_p2)
}
   0xe   :  { %s6274_s19 = scalar_lea.vmem %s43_s26, 128  ;;  %p6279_p4 = scmp.lt.s32.totalorder %s43_s26, %s43_s26 }
   0xf   :  { %p6275_p3 = scmp.ne.s32.totalorder %s43_s26, %s6274_s19  ;;  %p6280_p5 = scmp.lt.s32.totalorder %s6274_s19, %s6274_s19 }
  0x11   :  { %p6281_p6 = por %p6280_p5, %p6279_p4 }
  0x13   :  { %p6282_p7 = pnand %p6281_p6, %p6275_p3 }
  0x15   :  { %6285 = shalt.err (!%p6282_p7)
}
  0x16   :  { %45 = dma.hbm_to_vmem [thread:$0]  %s6881_s1, 128, %s43_s26, [#allocation6]  }
  0x17   :  { %s6286_s24 = scalar_lea.hbm %s6884_s4, 8192 }
  0x18   :  { %p6287_p8 = scmp.ne.s32.totalorder %s6884_s4, %s6286_s24  ;;  %p6290_p9 = scmp.lt.u32.totalorder %s6286_s24, %s6884_s4 }
  0x1a   :  { %p6292_p10 = pnand %p6290_p9, %p6287_p8 }
  0x1c   :  { %6295 = shalt.err (!%p6292_p10)
}
  0x1d   :  { %s6296_s14 = scalar_lea.vmem %s6585_s28, 8192  ;;  %p6301_p12 = scmp.lt.s32.totalorder %s6585_s28, %s6585_s28 }
  0x1e   :  { %p6297_p11 = scmp.ne.s32.totalorder %s6585_s28, %s6296_s14  ;;  %p6302_p13 = scmp.lt.s32.totalorder %s6296_s14, %s6296_s14 }
  0x20   :  { %p6303_p0 = por %p6302_p13, %p6301_p12 }
  0x22   :  { %p6304_p1 = pnand %p6303_p0, %p6297_p11 }
  0x24   :  { %6307 = shalt.err (!%p6304_p1)
}
  0x25   :  { %s6500_s1 = smov 128   ;;  %s6501_s26 = smov 8  }
  0x26   :  { %71 = dma.hbm_to_vmem [thread:$0]  %s6884_s4, 8192, %s6585_s28, [#allocation9], %s6500_s1, %s6500_s1, %s6501_s26  }
  0x27   :  { %s6502_s17 = smov [#allocation2]   ;;  %s6503_s19 = smov [#allocation7]  }
  0x28   :  { %s32_s18 = sshll.u32 %s6502_s17, 4  ;;  %s51_s20 = sshll.u32 %s6503_s19, 4  ;;  %s33_s18 = int_to_ptr.vmem [resolvable:$true] %s32_s18  ;;  %s6616_s20 = int_to_ptr.vmem [resolvable:$true] %s51_s20 }
  0x29   :  { %s6308_s23 = scalar_lea.hbm %s6880_s0, 448 }
  0x2a   :  { %p6309_p2 = scmp.ne.s32.totalorder %s6880_s0, %s6308_s23  ;;  %p6312_p3 = scmp.lt.u32.totalorder %s6308_s23, %s6880_s0 }
  0x2c   :  { %p6314_p4 = pnand %p6312_p3, %p6309_p2 }
  0x2e   :  { %6317 = shalt.err (!%p6314_p4)
}
  0x2f   :  { %s6318_s4 = scalar_lea.vmem %s33_s18, 448  ;;  %p6323_p6 = scmp.lt.s32.totalorder %s33_s18, %s33_s18 }
  0x30   :  { %p6319_p5 = scmp.ne.s32.totalorder %s33_s18, %s6318_s4  ;;  %p6324_p7 = scmp.lt.s32.totalorder %s6318_s4, %s6318_s4 }
  0x32   :  { %p6325_p8 = por %p6324_p7, %p6323_p6 }
  0x34   :  { %p6326_p9 = pnand %p6325_p8, %p6319_p5 }
  0x36   :  { %6329 = shalt.err (!%p6326_p9)
}
  0x37   :  { %35 = dma.hbm_to_vmem [thread:$0]  %s6880_s0, 448, %s33_s18, [#allocation3]  }
  0x38   :  { %s6330_s26 = scalar_lea.hbm %s6882_s2, 28672 }
  0x39   :  { %p6331_p10 = scmp.ne.s32.totalorder %s6882_s2, %s6330_s26  ;;  %p6334_p11 = scmp.lt.u32.totalorder %s6330_s26, %s6882_s2 }
  0x3b   :  { %p6336_p12 = pnand %p6334_p11, %p6331_p10 }
  0x3d   :  { %6339 = shalt.err (!%p6336_p12)
}
  0x3e   :  { %s6340_s21 = scalar_lea.vmem %s6616_s20, 28672  ;;  %p6345_p0 = scmp.lt.s32.totalorder %s6616_s20, %s6616_s20 }
  0x3f   :  { %p6341_p13 = scmp.ne.s32.totalorder %s6616_s20, %s6340_s21  ;;  %p6346_p1 = scmp.lt.s32.totalorder %s6340_s21, %s6340_s21 }
  0x41   :  { %p6347_p2 = por %p6346_p1, %p6345_p0 }
  0x43   :  { %p6348_p3 = pnand %p6347_p2, %p6341_p13 }
  0x45   :  { %6351 = shalt.err (!%p6348_p3)
}
  0x46   :  { %s6504_s0 = smov 256   ;;  %s6505_s18 = smov 16  }
  0x47   :  { %57 = dma.hbm_to_vmem [thread:$0]  %s6882_s2, 28672, %s6616_s20, [#allocation6], %s6504_s0, %s6504_s0, %s6505_s18  }
  0x48   :  { %s6506_s24 = smov [#allocation10]   ;;  %s6507_s27 = smov [#allocation11]  }
  0x49   :  { %s79_s25 = sshll.u32 %s6506_s24, 4  ;;  %s93_s29 = sshll.u32 %s6507_s27, 4  ;;  %s80_s25 = int_to_ptr.vmem [resolvable:$true] %s79_s25  ;;  %s6647_s29 = int_to_ptr.vmem [resolvable:$true] %s93_s29 }
  0x4a   :  { %s6352_s30 = scalar_lea.hbm %s6886_s6, 4096 }
  0x4b   :  { %p6353_p4 = scmp.ne.s32.totalorder %s6886_s6, %s6352_s30  ;;  %p6356_p5 = scmp.lt.u32.totalorder %s6352_s30, %s6886_s6 }
  0x4d   :  { %p6358_p6 = pnand %p6356_p5, %p6353_p4 }
  0x4f   :  { %6361 = shalt.err (!%p6358_p6)
}
  0x50   :  { %s6362_s2 = scalar_lea.vmem %s80_s25, 4096  ;;  %p6367_p8 = scmp.lt.s32.totalorder %s80_s25, %s80_s25 }
  0x51   :  { %p6363_p7 = scmp.ne.s32.totalorder %s80_s25, %s6362_s2  ;;  %p6368_p9 = scmp.lt.s32.totalorder %s6362_s2, %s6362_s2 }
  0x53   :  { %p6369_p10 = por %p6368_p9, %p6367_p8 }
  0x55   :  { %p6370_p11 = pnand %p6369_p10, %p6363_p7 }
  0x57   :  { %6373 = shalt.err (!%p6370_p11)
}
  0x58   :  { %85 = dma.hbm_to_vmem [thread:$0]  %s6886_s6, 4096, %s80_s25, [#allocation9], %s6504_s0, %s6504_s0, %s6505_s18  }
  0x59   :  { %s6374_s21 = scalar_lea.hbm %s6888_s8, 28672 }
  0x5a   :  { %p6375_p12 = scmp.ne.s32.totalorder %s6888_s8, %s6374_s21  ;;  %p6378_p13 = scmp.lt.u32.totalorder %s6374_s21, %s6888_s8 }
  0x5c   :  { %p6380_p0 = pnand %p6378_p13, %p6375_p12 }
  0x5e   :  { %6383 = shalt.err (!%p6380_p0)
}
  0x5f   :  { %s6384_s4 = scalar_lea.vmem %s6647_s29, 28672  ;;  %p6389_p2 = scmp.lt.s32.totalorder %s6647_s29, %s6647_s29 }
  0x60   :  { %p6385_p1 = scmp.ne.s32.totalorder %s6647_s29, %s6384_s4  ;;  %p6390_p3 = scmp.lt.s32.totalorder %s6384_s4, %s6384_s4 }
  0x62   :  { %p6391_p4 = por %p6390_p3, %p6389_p2 }
  0x64   :  { %p6392_p5 = pnand %p6391_p4, %p6385_p1 }
  0x66   :  { %6395 = shalt.err (!%p6392_p5)
}
  0x67   :  { %s6508_s6 = smov 448   ;;  %s6509_s0 = smov 28  }
  0x68   :  { %99 = dma.hbm_to_vmem [thread:$0]  %s6888_s8, 28672, %s6647_s29, [#allocation12], %s6508_s6, %s6508_s6, %s6509_s0  }
  0x69   :  { %6484 = dma.done.wait [#allocation3], 448  }
  0x6a   :  { %6485 = vsyncadd [#allocation3], 4294966848 }
  0x6b   :  { %6486 = dma.done.wait [#allocation6], 28800  }
  0x6c   :  { %6487 = vsyncadd [#allocation6], 4294938496 }
  0x6d   :  { %6488 = dma.done.wait [#allocation9], 12288  }
  0x6e   :  { %6489 = vsyncadd [#allocation9], 4294955008 }
  0x6f   :  { %6490 = dma.done.wait [#allocation12], 28672  }
  0x70   :  { %6491 = vsyncadd [#allocation12], 4294938624  ;;  %v5395_v0 = vld [vmem:[#allocation7 + $0x4] ss:$16 sps:$4 sm:$0xff]   ;;  %v5397_v1 = vld [vmem:[#allocation7 + $0xc] ss:$16 sps:$4 sm:$0xff]  }
  0x71   :  { %1516 = vmatprep.subr.bf16.mxu0 %v5395_v0  ;;  %v5399_v2 = vld [vmem:[#allocation7] ss:$16 sps:$4 sm:$0xff]   ;;  %v5400_v3 = vld [vmem:[#allocation7 + $0x8] ss:$16 sps:$4 sm:$0xff]   ;;  %1680 = vmatprep.subr.bf16.mxu1 %v5397_v1  ;;  %v5401_v4 = vld [vmem:[#allocation7 + $0x24] ss:$16 sps:$4 sm:$0xff]  }
  0x72   :  { %1517 = vmatpush1.bf16.msra.mxu0 %v5399_v2  ;;  %1681 = vmatpush1.bf16.msra.mxu1 %v5400_v3  ;;  %v5403_v5 = vld [vmem:[#allocation7 + $0x2c] ss:$16 sps:$4 sm:$0xff]   ;;  %v5405_v6 = vld [vmem:[#allocation7 + $0x20] ss:$16 sps:$4 sm:$0xff]   ;;  %v5406_v7 = vld [vmem:[#allocation7 + $0x28] ss:$16 sps:$4 sm:$0xff]  }
  0x73   :  { %1518 = vmatprep.subr.bf16.mxu0 %v5401_v4  ;;  %1682 = vmatprep.subr.bf16.mxu1 %v5403_v5  ;;  %v5407_v8 = vld [vmem:[#allocation7 + $0x44] ss:$16 sps:$4 sm:$0xff]   ;;  %v5409_v9 = vld [vmem:[#allocation7 + $0x4c] ss:$16 sps:$4 sm:$0xff]   ;;  %v5411_v10 = vld [vmem:[#allocation7 + $0x40] ss:$16 sps:$4 sm:$0xff]  }
  0x74   :  { %v5412_v11 = vld [vmem:[#allocation7 + $0x48] ss:$16 sps:$4 sm:$0xff]   ;;  %v5413_v12 = vld [vmem:[#allocation7 + $0x64] ss:$16 sps:$4 sm:$0xff]   ;;  %v5415_v13 = vld [vmem:[#allocation7 + $0x6c] ss:$16 sps:$4 sm:$0xff]  }
  0x75   :  { %v5417_v14 = vld [vmem:[#allocation7 + $0x60] ss:$16 sps:$4 sm:$0xff]   ;;  %v5418_v15 = vld [vmem:[#allocation7 + $0x68] ss:$16 sps:$4 sm:$0xff]   ;;  %v5419_v16 = vld [vmem:[#allocation7 + $0x84] ss:$16 sps:$4 sm:$0xff]  }
  0x76   :  { %1519 = vmatpush1.bf16.msra.mxu0 %v5405_v6  ;;  %1683 = vmatpush1.bf16.msra.mxu1 %v5406_v7  ;;  %v5421_v17 = vld [vmem:[#allocation7 + $0x8c] ss:$16 sps:$4 sm:$0xff]   ;;  %v5423_v18 = vld [vmem:[#allocation7 + $0x80] ss:$16 sps:$4 sm:$0xff]   ;;  %v5424_v19 = vld [vmem:[#allocation7 + $0x88] ss:$16 sps:$4 sm:$0xff]  }
  0x77   :  { %1520 = vmatprep.subr.bf16.mxu0 %v5407_v8  ;;  %1684 = vmatprep.subr.bf16.mxu1 %v5409_v9  ;;  %v5425_v20 = vld [vmem:[#allocation7 + $0xa4] ss:$16 sps:$4 sm:$0xff]   ;;  %v5427_v21 = vld [vmem:[#allocation7 + $0xac] ss:$16 sps:$4 sm:$0xff]   ;;  %v5429_v22 = vld [vmem:[#allocation7 + $0xa0] ss:$16 sps:$4 sm:$0xff]  }
  0x78   :  { %v5430_v23 = vld [vmem:[#allocation7 + $0xa8] ss:$16 sps:$4 sm:$0xff]   ;;  %v5431_v24 = vld [vmem:[#allocation7 + $0xc4] ss:$16 sps:$4 sm:$0xff]   ;;  %v5433_v25 = vld [vmem:[#allocation7 + $0xcc] ss:$16 sps:$4 sm:$0xff]  }
  0x79   :  { %v5435_v26 = vld [vmem:[#allocation7 + $0xc0] ss:$16 sps:$4 sm:$0xff]   ;;  %v5436_v27 = vld [vmem:[#allocation7 + $0xc8] ss:$16 sps:$4 sm:$0xff]   ;;  %v5437_v28 = vld [vmem:[#allocation7 + $0xe4] ss:$16 sps:$4 sm:$0xff]  }
  0x7a   :  { %1521 = vmatpush1.bf16.msra.mxu0 %v5411_v10  ;;  %1685 = vmatpush1.bf16.msra.mxu1 %v5412_v11  ;;  %v5439_v29 = vld [vmem:[#allocation7 + $0xec] ss:$16 sps:$4 sm:$0xff]   ;;  %v5441_v30 = vld [vmem:[#allocation7 + $0xe0] ss:$16 sps:$4 sm:$0xff]   ;;  %v5442_v31 = vld [vmem:[#allocation7 + $0xe8] ss:$16 sps:$4 sm:$0xff]  }
  0x7b   :  { %1522 = vmatprep.subr.bf16.mxu0 %v5413_v12  ;;  %1686 = vmatprep.subr.bf16.mxu1 %v5415_v13  ;;  %v5443_v32 = vld [vmem:[#allocation7 + $0x104] ss:$16 sps:$4 sm:$0xff]   ;;  %v5445_v33 = vld [vmem:[#allocation7 + $0x10c] ss:$16 sps:$4 sm:$0xff]   ;;  %v5447_v34 = vld [vmem:[#allocation7 + $0x100] ss:$16 sps:$4 sm:$0xff]  }
  0x7c   :  { %v5448_v35 = vld [vmem:[#allocation7 + $0x108] ss:$16 sps:$4 sm:$0xff]   ;;  %v5449_v36 = vld [vmem:[#allocation7 + $0x124] ss:$16 sps:$4 sm:$0xff]   ;;  %v5451_v37 = vld [vmem:[#allocation7 + $0x12c] ss:$16 sps:$4 sm:$0xff]  }
  0x7d   :  { %v5453_v38 = vld [vmem:[#allocation7 + $0x120] ss:$16 sps:$4 sm:$0xff]   ;;  %v5454_v39 = vld [vmem:[#allocation7 + $0x128] ss:$16 sps:$4 sm:$0xff]   ;;  %v5455_v40 = vld [vmem:[#allocation7 + $0x144] ss:$16 sps:$4 sm:$0xff]  }
  0x7e   :  { %1523 = vmatpush1.bf16.msra.mxu0 %v5417_v14  ;;  %1687 = vmatpush1.bf16.msra.mxu1 %v5418_v15  ;;  %v5457_v41 = vld [vmem:[#allocation7 + $0x14c] ss:$16 sps:$4 sm:$0xff]   ;;  %v5459_v42 = vld [vmem:[#allocation7 + $0x140] ss:$16 sps:$4 sm:$0xff]   ;;  %v5460_v43 = vld [vmem:[#allocation7 + $0x148] ss:$16 sps:$4 sm:$0xff]  }
  0x7f   :  { %1524 = vmatprep.subr.bf16.mxu0 %v5419_v16  ;;  %1688 = vmatprep.subr.bf16.mxu1 %v5421_v17  ;;  %v5461_v44 = vld [vmem:[#allocation7 + $0x164] ss:$16 sps:$4 sm:$0xff]   ;;  %v5463_v45 = vld [vmem:[#allocation7 + $0x16c] ss:$16 sps:$4 sm:$0xff]   ;;  %v5465_v47 = vld [vmem:[#allocation7 + $0x160] ss:$16 sps:$4 sm:$0xff]  }
  0x80   :  { %v121_v46 = vld [vmem:[#allocation2] sm:$0xff]  ;;  %v5466_v49 = vld [vmem:[#allocation7 + $0x168] ss:$16 sps:$4 sm:$0xff]   ;;  %v5467_v50 = vld [vmem:[#allocation7 + $0x184] ss:$16 sps:$4 sm:$0xff]   ;;  %s6512_s26 = smov [#allocation13]  }
  0x81   :  { %v4712_v48 = vcombine.high %v121_v46, %v121_v46  ;;  %v5469_v51 = vld [vmem:[#allocation7 + $0x18c] ss:$16 sps:$4 sm:$0xff]   ;;  %v5471_v52 = vld [vmem:[#allocation7 + $0x180] ss:$16 sps:$4 sm:$0xff]   ;;  %v5472_v53 = vld [vmem:[#allocation7 + $0x188] ss:$16 sps:$4 sm:$0xff]   ;;  %v4711_v5 = vcombine.low %v121_v46, %v121_v46 }
  0x82   :  { %1525 = vmatpush1.bf16.msra.mxu0 %v5423_v18  ;;  %1689 = vmatpush1.bf16.msra.mxu1 %v5424_v19  ;;  %v5473_v54 = vld [vmem:[#allocation7 + $0x1a4] ss:$16 sps:$4 sm:$0xff]   ;;  %v5475_v55 = vld [vmem:[#allocation7 + $0x1ac] ss:$16 sps:$4 sm:$0xff]   ;;  %v5477_v56 = vld [vmem:[#allocation7 + $0x1a0] ss:$16 sps:$4 sm:$0xff]  }
  0x83   :  { %1526 = vmatprep.subr.bf16.mxu0 %v5425_v20  ;;  %1690 = vmatprep.subr.bf16.mxu1 %v5427_v21  ;;  %v5478_v57 = vld [vmem:[#allocation7 + $0x1a8] ss:$16 sps:$4 sm:$0xff]   ;;  %v5479_v58 = vld [vmem:[#allocation7 + $0x1c4] ss:$16 sps:$4 sm:$0xff]   ;;  %v5481_v59 = vld [vmem:[#allocation7 + $0x1cc] ss:$16 sps:$4 sm:$0xff]  }
  0x84   :  { %1548 = vmatprep.mubr.bf16.mxu0 %v4712_v48  ;;  %1712 = vmatprep.mubr.bf16.mxu1 %v4712_v48  ;;  %v5483_v60 = vld [vmem:[#allocation7 + $0x1c0] ss:$16 sps:$4 sm:$0xff]   ;;  %v5484_v61 = vld [vmem:[#allocation7 + $0x1c8] ss:$16 sps:$4 sm:$0xff]   ;;  %v5485_v62 = vld [vmem:[#allocation7 + $0x1e4] ss:$16 sps:$4 sm:$0xff]  }
  0x85   :  { %v5487_v63 = vld [vmem:[#allocation7 + $0x1ec] ss:$16 sps:$4 sm:$0xff]   ;;  %v5489_v0 = vld [vmem:[#allocation7 + $0x1e0] ss:$16 sps:$4 sm:$0xff]   ;;  %v5490_v1 = vld [vmem:[#allocation7 + $0x1e8] ss:$16 sps:$4 sm:$0xff]  }
  0x86   :  { %1527 = vmatpush1.bf16.msra.mxu0 %v5429_v22  ;;  %1691 = vmatpush1.bf16.msra.mxu1 %v5430_v23  ;;  %v5494_v2 = vld [vmem:[#allocation7 + $0x204] ss:$16 sps:$4 sm:$0xff]   ;;  %v5497_v3 = vld [vmem:[#allocation7 + $0x20c] ss:$16 sps:$4 sm:$0xff]   ;;  %v5492_v4 = vld [vmem:[#allocation7 + $0x200] ss:$16 sps:$4 sm:$0xff]  }
  0x87   :  { %1528 = vmatprep.subr.bf16.mxu0 %v5431_v24  ;;  %1692 = vmatprep.subr.bf16.mxu1 %v5433_v25  ;;  %v5495_v6 = vld [vmem:[#allocation7 + $0x208] ss:$16 sps:$4 sm:$0xff]   ;;  %v5501_v7 = vld [vmem:[#allocation7 + $0x224] ss:$16 sps:$4 sm:$0xff]   ;;  %v5504_v8 = vld [vmem:[#allocation7 + $0x22c] ss:$16 sps:$4 sm:$0xff]  }
  0x88   :  { %v5499_v9 = vld [vmem:[#allocation7 + $0x220] ss:$16 sps:$4 sm:$0xff]   ;;  %v5502_v10 = vld [vmem:[#allocation7 + $0x228] ss:$16 sps:$4 sm:$0xff]   ;;  %v5507_v11 = vld [vmem:[#allocation7 + $0x244] ss:$16 sps:$4 sm:$0xff]  }
  0x89   :  { %v5510_v12 = vld [vmem:[#allocation7 + $0x24c] ss:$16 sps:$4 sm:$0xff]   ;;  %v5505_v13 = vld [vmem:[#allocation7 + $0x240] ss:$16 sps:$4 sm:$0xff]   ;;  %v5508_v14 = vld [vmem:[#allocation7 + $0x248] ss:$16 sps:$4 sm:$0xff]  }
  0x8a   :  { %1529 = vmatpush1.bf16.msra.mxu0 %v5435_v26  ;;  %1693 = vmatpush1.bf16.msra.mxu1 %v5436_v27  ;;  %v5513_v15 = vld [vmem:[#allocation7 + $0x264] ss:$16 sps:$4 sm:$0xff]   ;;  %v5516_v16 = vld [vmem:[#allocation7 + $0x26c] ss:$16 sps:$4 sm:$0xff]   ;;  %v5511_v17 = vld [vmem:[#allocation7 + $0x260] ss:$16 sps:$4 sm:$0xff]  }
  0x8b   :  { %1530 = vmatprep.subr.bf16.mxu0 %v5437_v28  ;;  %1694 = vmatprep.subr.bf16.mxu1 %v5439_v29  ;;  %v5514_v18 = vld [vmem:[#allocation7 + $0x268] ss:$16 sps:$4 sm:$0xff]   ;;  %v5519_v19 = vld [vmem:[#allocation7 + $0x284] ss:$16 sps:$4 sm:$0xff]   ;;  %v5522_v20 = vld [vmem:[#allocation7 + $0x28c] ss:$16 sps:$4 sm:$0xff]  }
  0x8c   :  { %v5517_v21 = vld [vmem:[#allocation7 + $0x280] ss:$16 sps:$4 sm:$0xff]   ;;  %v5520_v22 = vld [vmem:[#allocation7 + $0x288] ss:$16 sps:$4 sm:$0xff]   ;;  %v5525_v23 = vld [vmem:[#allocation7 + $0x2a4] ss:$16 sps:$4 sm:$0xff]  }
  0x8d   :  { %v5528_v24 = vld [vmem:[#allocation7 + $0x2ac] ss:$16 sps:$4 sm:$0xff]   ;;  %v5523_v25 = vld [vmem:[#allocation7 + $0x2a0] ss:$16 sps:$4 sm:$0xff]   ;;  %v5526_v26 = vld [vmem:[#allocation7 + $0x2a8] ss:$16 sps:$4 sm:$0xff]  }
  0x8e   :  { %1531 = vmatpush1.bf16.msra.mxu0 %v5441_v30  ;;  %1695 = vmatpush1.bf16.msra.mxu1 %v5442_v31  ;;  %v5531_v27 = vld [vmem:[#allocation7 + $0x2c4] ss:$16 sps:$4 sm:$0xff]   ;;  %v5534_v28 = vld [vmem:[#allocation7 + $0x2cc] ss:$16 sps:$4 sm:$0xff]   ;;  %v5529_v31 = vld [vmem:[#allocation7 + $0x2c0] ss:$16 sps:$4 sm:$0xff]  }
  0x8f   :  { %1532 = vmatprep.subr.bf16.mxu0 %v5443_v32  ;;  %1696 = vmatprep.subr.bf16.mxu1 %v5445_v33  ;;  %v6678_v29 = vld [vmem:[#allocation2 + $0x8] sm:$0xff]  ;;  %v5558_v46 = vld [vmem:[#allocation7 + $0x34c] ss:$16 sps:$4 sm:$0xff]   ;;  %s4658_s15 = sshll.u32 %s6512_s26, 4  ;;  %s4659_s15 = int_to_ptr.vmem [resolvable:$true] %s4658_s15 }
  0x90   :  { %v4714_v30 = vcombine.high %v6678_v29, %v6678_v29  ;;  %v5532_v32 = vld [vmem:[#allocation7 + $0x2c8] ss:$16 sps:$4 sm:$0xff]   ;;  %v5537_v33 = vld [vmem:[#allocation7 + $0x2e4] ss:$16 sps:$4 sm:$0xff]  }
  0x91   :  { %v5556_v48 = vld [vmem:[#allocation7 + $0x348] ss:$16 sps:$4 sm:$0xff]  }
  0x92   :  { %1533 = vmatpush1.bf16.msra.mxu0 %v5447_v34  ;;  %1697 = vmatpush1.bf16.msra.mxu1 %v5448_v35  ;;  %v5540_v34 = vld [vmem:[#allocation7 + $0x2ec] ss:$16 sps:$4 sm:$0xff]   ;;  %v5535_v35 = vld [vmem:[#allocation7 + $0x2e0] ss:$16 sps:$4 sm:$0xff]  }
  0x93   :  { %1534 = vmatprep.subr.bf16.mxu0 %v5449_v36  ;;  %1698 = vmatprep.subr.bf16.mxu1 %v5451_v37  ;;  %v5538_v36 = vld [vmem:[#allocation7 + $0x2e8] ss:$16 sps:$4 sm:$0xff]   ;;  %v5543_v37 = vld [vmem:[#allocation7 + $0x304] ss:$16 sps:$4 sm:$0xff]  }
  0x96   :  { %1535 = vmatpush1.bf16.msra.mxu0 %v5453_v38  ;;  %1699 = vmatpush1.bf16.msra.mxu1 %v5454_v39  ;;  %v5546_v38 = vld [vmem:[#allocation7 + $0x30c] ss:$16 sps:$4 sm:$0xff]   ;;  %v5541_v39 = vld [vmem:[#allocation7 + $0x300] ss:$16 sps:$4 sm:$0xff]  }
  0x97   :  { %1536 = vmatprep.subr.bf16.mxu0 %v5455_v40  ;;  %1700 = vmatprep.subr.bf16.mxu1 %v5457_v41  ;;  %v5544_v40 = vld [vmem:[#allocation7 + $0x308] ss:$16 sps:$4 sm:$0xff]   ;;  %v5549_v41 = vld [vmem:[#allocation7 + $0x324] ss:$16 sps:$4 sm:$0xff]  }
  0x9a   :  { %1537 = vmatpush1.bf16.msra.mxu0 %v5459_v42  ;;  %1701 = vmatpush1.bf16.msra.mxu1 %v5460_v43  ;;  %v5552_v42 = vld [vmem:[#allocation7 + $0x32c] ss:$16 sps:$4 sm:$0xff]   ;;  %v5547_v43 = vld [vmem:[#allocation7 + $0x320] ss:$16 sps:$4 sm:$0xff]  }
  0x9b   :  { %1538 = vmatprep.subr.bf16.mxu0 %v5461_v44  ;;  %1702 = vmatprep.subr.bf16.mxu1 %v5463_v45  ;;  %v5550_v44 = vld [vmem:[#allocation7 + $0x328] ss:$16 sps:$4 sm:$0xff]   ;;  %v5555_v45 = vld [vmem:[#allocation7 + $0x344] ss:$16 sps:$4 sm:$0xff]  }
  0x9e   :  { %1539 = vmatpush1.bf16.msra.mxu0 %v5465_v47  ;;  %1703 = vmatpush1.bf16.msra.mxu1 %v5466_v49  ;;  %v5553_v47 = vld [vmem:[#allocation7 + $0x340] ss:$16 sps:$4 sm:$0xff]   ;;  %v5561_v49 = vld [vmem:[#allocation7 + $0x364] ss:$16 sps:$4 sm:$0xff]  }
  0x9f   :  { %1540 = vmatprep.subr.bf16.mxu0 %v5467_v50  ;;  %1704 = vmatprep.subr.bf16.mxu1 %v5469_v51  ;;  %v5564_v50 = vld [vmem:[#allocation7 + $0x36c] ss:$16 sps:$4 sm:$0xff]   ;;  %v5559_v51 = vld [vmem:[#allocation7 + $0x360] ss:$16 sps:$4 sm:$0xff]  }
  0xa2   :  { %1541 = vmatpush1.bf16.msra.mxu0 %v5471_v52  ;;  %1705 = vmatpush1.bf16.msra.mxu1 %v5472_v53  ;;  %v5562_v52 = vld [vmem:[#allocation7 + $0x368] ss:$16 sps:$4 sm:$0xff]   ;;  %v5567_v53 = vld [vmem:[#allocation7 + $0x384] ss:$16 sps:$4 sm:$0xff]  }
  0xa3   :  { %1542 = vmatprep.subr.bf16.mxu0 %v5473_v54  ;;  %1706 = vmatprep.subr.bf16.mxu1 %v5475_v55  ;;  %v5570_v54 = vld [vmem:[#allocation7 + $0x38c] ss:$16 sps:$4 sm:$0xff]   ;;  %v5565_v55 = vld [vmem:[#allocation7 + $0x380] ss:$16 sps:$4 sm:$0xff]  }
  0xa6   :  { %1543 = vmatpush1.bf16.msra.mxu0 %v5477_v56  ;;  %1707 = vmatpush1.bf16.msra.mxu1 %v5478_v57  ;;  %v5568_v56 = vld [vmem:[#allocation7 + $0x388] ss:$16 sps:$4 sm:$0xff]   ;;  %v5573_v57 = vld [vmem:[#allocation7 + $0x3a4] ss:$16 sps:$4 sm:$0xff]  }
  0xa7   :  { %1544 = vmatprep.subr.bf16.mxu0 %v5479_v58  ;;  %1708 = vmatprep.subr.bf16.mxu1 %v5481_v59  ;;  %v5576_v58 = vld [vmem:[#allocation7 + $0x3ac] ss:$16 sps:$4 sm:$0xff]   ;;  %v5571_v59 = vld [vmem:[#allocation7 + $0x3a0] ss:$16 sps:$4 sm:$0xff]  }
  0xaa   :  { %1545 = vmatpush1.bf16.msra.mxu0 %v5483_v60  ;;  %1709 = vmatpush1.bf16.msra.mxu1 %v5484_v61  ;;  %v5574_v60 = vld [vmem:[#allocation7 + $0x3a8] ss:$16 sps:$4 sm:$0xff]   ;;  %v5579_v61 = vld [vmem:[#allocation7 + $0x3c4] ss:$16 sps:$4 sm:$0xff]  }
  0xab   :  { %1546 = vmatprep.subr.bf16.mxu0 %v5485_v62  ;;  %1710 = vmatprep.subr.bf16.mxu1 %v5487_v63  ;;  %v5582_v62 = vld [vmem:[#allocation7 + $0x3cc] ss:$16 sps:$4 sm:$0xff]   ;;  %v5577_v63 = vld [vmem:[#allocation7 + $0x3c0] ss:$16 sps:$4 sm:$0xff]  }
  0xae   :  { %1547 = vmatpush1.bf16.msra.mxu0 %v5489_v0  ;;  %1711 = vmatpush1.bf16.msra.mxu1 %v5490_v1  ;;  %v5580_v0 = vld [vmem:[#allocation7 + $0x3c8] ss:$16 sps:$4 sm:$0xff]   ;;  %v5585_v1 = vld [vmem:[#allocation7 + $0x3e4] ss:$16 sps:$4 sm:$0xff]  }
  0xaf   :  { %1557 = vmatprep.subr.bf16.mxu0 %v5494_v2  ;;  %1721 = vmatprep.subr.bf16.mxu1 %v5497_v3  ;;  %v5588_v2 = vld [vmem:[#allocation7 + $0x3ec] ss:$16 sps:$4 sm:$0xff]   ;;  %v5583_v3 = vld [vmem:[#allocation7 + $0x3e0] ss:$16 sps:$4 sm:$0xff]  }
  0xb1   :  { %1549 = vmatmul.mubr.bf16.vlgmr.msra.gmra.mrb[0].mxu0 %v4711_v5  ;;  %1713 = vmatmul.mubr.bf16.vlgmr.msra.gmra.mrb[0].mxu1 %v4711_v5  ;;  %v5592_v5 = vld [vmem:[#allocation7 + $0x404] ss:$16 sps:$4 sm:$0xff]  }
  0xb2   :  { %1558 = vmatpush1.bf16.msra.mxu0 %v5492_v4  ;;  %1722 = vmatpush1.bf16.msra.mxu1 %v5495_v6  ;;  %v5586_v4 = vld [vmem:[#allocation7 + $0x3e8] ss:$16 sps:$4 sm:$0xff]   ;;  %v5595_v6 = vld [vmem:[#allocation7 + $0x40c] ss:$16 sps:$4 sm:$0xff]  }
  0xb3   :  { %1559 = vmatprep.subr.bf16.mxu0 %v5501_v7  ;;  %1723 = vmatprep.subr.bf16.mxu1 %v5504_v8  ;;  %v5590_v7 = vld [vmem:[#allocation7 + $0x400] ss:$16 sps:$4 sm:$0xff]   ;;  %v4713_v8 = vcombine.low %v6678_v29, %v6678_v29  ;;  %v5626_v29 = vld [vmem:[#allocation7 + $0x4ac] ss:$16 sps:$4 sm:$0xff]  }
  0xb4   :  { %1589 = vmatprep.mubr.bf16.mxu0 %v4714_v30  ;;  %1753 = vmatprep.mubr.bf16.mxu1 %v4714_v30  ;;  %v5621_v30 = vld [vmem:[#allocation7 + $0x4a0] ss:$16 sps:$4 sm:$0xff]  }
  0xb6   :  { %1560 = vmatpush1.bf16.msra.mxu0 %v5499_v9  ;;  %1724 = vmatpush1.bf16.msra.mxu1 %v5502_v10  ;;  %v5593_v9 = vld [vmem:[#allocation7 + $0x408] ss:$16 sps:$4 sm:$0xff]   ;;  %v5599_v10 = vld [vmem:[#allocation7 + $0x424] ss:$16 sps:$4 sm:$0xff]  }
  0xb7   :  { %1561 = vmatprep.subr.bf16.mxu0 %v5507_v11  ;;  %1725 = vmatprep.subr.bf16.mxu1 %v5510_v12  ;;  %v6684_v11 = vld [vmem:[#allocation2 + $0x10] sm:$0xff] }
  0xb8   :  { %v5602_v12 = vld [vmem:[#allocation7 + $0x42c] ss:$16 sps:$4 sm:$0xff]  }
  0xba   :  { %1562 = vmatpush1.bf16.msra.mxu0 %v5505_v13  ;;  %1726 = vmatpush1.bf16.msra.mxu1 %v5508_v14  ;;  %v4716_v13 = vcombine.high %v6684_v11, %v6684_v11  ;;  %v5597_v14 = vld [vmem:[#allocation7 + $0x420] ss:$16 sps:$4 sm:$0xff]  }
  0xbb   :  { %1563 = vmatprep.subr.bf16.mxu0 %v5513_v15  ;;  %1727 = vmatprep.subr.bf16.mxu1 %v5516_v16  ;;  %v5600_v15 = vld [vmem:[#allocation7 + $0x428] ss:$16 sps:$4 sm:$0xff]   ;;  %v5605_v16 = vld [vmem:[#allocation7 + $0x444] ss:$16 sps:$4 sm:$0xff]  }
  0xbe   :  { %1564 = vmatpush1.bf16.msra.mxu0 %v5511_v17  ;;  %1728 = vmatpush1.bf16.msra.mxu1 %v5514_v18  ;;  %v5608_v17 = vld [vmem:[#allocation7 + $0x44c] ss:$16 sps:$4 sm:$0xff]   ;;  %v5603_v18 = vld [vmem:[#allocation7 + $0x440] ss:$16 sps:$4 sm:$0xff]  }
  0xbf   :  { %1565 = vmatprep.subr.bf16.mxu0 %v5519_v19  ;;  %1729 = vmatprep.subr.bf16.mxu1 %v5522_v20  ;;  %v5606_v19 = vld [vmem:[#allocation7 + $0x448] ss:$16 sps:$4 sm:$0xff]   ;;  %v5611_v20 = vld [vmem:[#allocation7 + $0x464] ss:$16 sps:$4 sm:$0xff]  }
  0xc2   :  { %1566 = vmatpush1.bf16.msra.mxu0 %v5517_v21  ;;  %1730 = vmatpush1.bf16.msra.mxu1 %v5520_v22  ;;  %v5614_v21 = vld [vmem:[#allocation7 + $0x46c] ss:$16 sps:$4 sm:$0xff]   ;;  %v5609_v22 = vld [vmem:[#allocation7 + $0x460] ss:$16 sps:$4 sm:$0xff]  }
  0xc3   :  { %1567 = vmatprep.subr.bf16.mxu0 %v5525_v23  ;;  %1731 = vmatprep.subr.bf16.mxu1 %v5528_v24  ;;  %v5612_v23 = vld [vmem:[#allocation7 + $0x468] ss:$16 sps:$4 sm:$0xff]   ;;  %v5617_v24 = vld [vmem:[#allocation7 + $0x484] ss:$16 sps:$4 sm:$0xff]  }
  0xc6   :  { %1568 = vmatpush1.bf16.msra.mxu0 %v5523_v25  ;;  %1732 = vmatpush1.bf16.msra.mxu1 %v5526_v26  ;;  %v5620_v25 = vld [vmem:[#allocation7 + $0x48c] ss:$16 sps:$4 sm:$0xff]   ;;  %v5615_v26 = vld [vmem:[#allocation7 + $0x480] ss:$16 sps:$4 sm:$0xff]  }
  0xc7   :  { %1569 = vmatprep.subr.bf16.mxu0 %v5531_v27  ;;  %1733 = vmatprep.subr.bf16.mxu1 %v5534_v28  ;;  %v5618_v27 = vld [vmem:[#allocation7 + $0x488] ss:$16 sps:$4 sm:$0xff]   ;;  %v5623_v28 = vld [vmem:[#allocation7 + $0x4a4] ss:$16 sps:$4 sm:$0xff]  }
  0xca   :  { %1570 = vmatpush1.bf16.msra.mxu0 %v5529_v31  ;;  %1734 = vmatpush1.bf16.msra.mxu1 %v5532_v32  ;;  %v5624_v31 = vld [vmem:[#allocation7 + $0x4a8] ss:$16 sps:$4 sm:$0xff]   ;;  %v5629_v32 = vld [vmem:[#allocation7 + $0x4c4] ss:$16 sps:$4 sm:$0xff]  }
  0xcb   :  { %1571 = vmatprep.subr.bf16.mxu0 %v5537_v33  ;;  %1735 = vmatprep.subr.bf16.mxu1 %v5540_v34  ;;  %v5632_v33 = vld [vmem:[#allocation7 + $0x4cc] ss:$16 sps:$4 sm:$0xff]   ;;  %v5627_v34 = vld [vmem:[#allocation7 + $0x4c0] ss:$16 sps:$4 sm:$0xff]  }
  0xce   :  { %1572 = vmatpush1.bf16.msra.mxu0 %v5535_v35  ;;  %1736 = vmatpush1.bf16.msra.mxu1 %v5538_v36  ;;  %v5630_v35 = vld [vmem:[#allocation7 + $0x4c8] ss:$16 sps:$4 sm:$0xff]   ;;  %v5635_v36 = vld [vmem:[#allocation7 + $0x4e4] ss:$16 sps:$4 sm:$0xff]  }
  0xcf   :  { %1573 = vmatprep.subr.bf16.mxu0 %v5543_v37  ;;  %1737 = vmatprep.subr.bf16.mxu1 %v5546_v38  ;;  %v5638_v37 = vld [vmem:[#allocation7 + $0x4ec] ss:$16 sps:$4 sm:$0xff]   ;;  %v5633_v38 = vld [vmem:[#allocation7 + $0x4e0] ss:$16 sps:$4 sm:$0xff]  }
  0xd2   :  { %1574 = vmatpush1.bf16.msra.mxu0 %v5541_v39  ;;  %1738 = vmatpush1.bf16.msra.mxu1 %v5544_v40  ;;  %v5636_v39 = vld [vmem:[#allocation7 + $0x4e8] ss:$16 sps:$4 sm:$0xff]   ;;  %v5641_v40 = vld [vmem:[#allocation7 + $0x504] ss:$16 sps:$4 sm:$0xff]  }
  0xd3   :  { %1575 = vmatprep.subr.bf16.mxu0 %v5549_v41  ;;  %1739 = vmatprep.subr.bf16.mxu1 %v5552_v42  ;;  %v5644_v41 = vld [vmem:[#allocation7 + $0x50c] ss:$16 sps:$4 sm:$0xff]   ;;  %v5639_v42 = vld [vmem:[#allocation7 + $0x500] ss:$16 sps:$4 sm:$0xff]  }
  0xd6   :  { %1576 = vmatpush1.bf16.msra.mxu0 %v5547_v43  ;;  %1740 = vmatpush1.bf16.msra.mxu1 %v5550_v44  ;;  %v5642_v43 = vld [vmem:[#allocation7 + $0x508] ss:$16 sps:$4 sm:$0xff]   ;;  %v5647_v44 = vld [vmem:[#allocation7 + $0x524] ss:$16 sps:$4 sm:$0xff]  }
  0xd7   :  { %1577 = vmatprep.subr.bf16.mxu0 %v5555_v45  ;;  %1741 = vmatprep.subr.bf16.mxu1 %v5558_v46  ;;  %v5650_v45 = vld [vmem:[#allocation7 + $0x52c] ss:$16 sps:$4 sm:$0xff]   ;;  %v5645_v46 = vld [vmem:[#allocation7 + $0x520] ss:$16 sps:$4 sm:$0xff]  }
  0xda   :  { %1578 = vmatpush1.bf16.msra.mxu0 %v5553_v47  ;;  %1742 = vmatpush1.bf16.msra.mxu1 %v5556_v48  ;;  %v5648_v47 = vld [vmem:[#allocation7 + $0x528] ss:$16 sps:$4 sm:$0xff]   ;;  %v5653_v48 = vld [vmem:[#allocation7 + $0x544] ss:$16 sps:$4 sm:$0xff]  }
  0xdb   :  { %1579 = vmatprep.subr.bf16.mxu0 %v5561_v49  ;;  %1743 = vmatprep.subr.bf16.mxu1 %v5564_v50  ;;  %v5656_v49 = vld [vmem:[#allocation7 + $0x54c] ss:$16 sps:$4 sm:$0xff]   ;;  %v5651_v50 = vld [vmem:[#allocation7 + $0x540] ss:$16 sps:$4 sm:$0xff]  }
  0xde   :  { %1580 = vmatpush1.bf16.msra.mxu0 %v5559_v51  ;;  %1744 = vmatpush1.bf16.msra.mxu1 %v5562_v52  ;;  %v5654_v51 = vld [vmem:[#allocation7 + $0x548] ss:$16 sps:$4 sm:$0xff]   ;;  %v5659_v52 = vld [vmem:[#allocation7 + $0x564] ss:$16 sps:$4 sm:$0xff]  }
  0xdf   :  { %1581 = vmatprep.subr.bf16.mxu0 %v5567_v53  ;;  %1745 = vmatprep.subr.bf16.mxu1 %v5570_v54  ;;  %v5662_v53 = vld [vmem:[#allocation7 + $0x56c] ss:$16 sps:$4 sm:$0xff]   ;;  %v5657_v54 = vld [vmem:[#allocation7 + $0x560] ss:$16 sps:$4 sm:$0xff]  }
  0xe2   :  { %1582 = vmatpush1.bf16.msra.mxu0 %v5565_v55  ;;  %1746 = vmatpush1.bf16.msra.mxu1 %v5568_v56  ;;  %v5660_v55 = vld [vmem:[#allocation7 + $0x568] ss:$16 sps:$4 sm:$0xff]   ;;  %v5665_v56 = vld [vmem:[#allocation7 + $0x584] ss:$16 sps:$4 sm:$0xff]  }
  0xe3   :  { %1583 = vmatprep.subr.bf16.mxu0 %v5573_v57  ;;  %1747 = vmatprep.subr.bf16.mxu1 %v5576_v58  ;;  %v5668_v57 = vld [vmem:[#allocation7 + $0x58c] ss:$16 sps:$4 sm:$0xff]   ;;  %v5663_v58 = vld [vmem:[#allocation7 + $0x580] ss:$16 sps:$4 sm:$0xff]  }
  0xe6   :  { %1584 = vmatpush1.bf16.msra.mxu0 %v5571_v59  ;;  %1748 = vmatpush1.bf16.msra.mxu1 %v5574_v60  ;;  %v5666_v59 = vld [vmem:[#allocation7 + $0x588] ss:$16 sps:$4 sm:$0xff]   ;;  %v5671_v60 = vld [vmem:[#allocation7 + $0x5a4] ss:$16 sps:$4 sm:$0xff]  }
  0xe7   :  { %1585 = vmatprep.subr.bf16.mxu0 %v5579_v61  ;;  %1749 = vmatprep.subr.bf16.mxu1 %v5582_v62  ;;  %v5674_v61 = vld [vmem:[#allocation7 + $0x5ac] ss:$16 sps:$4 sm:$0xff]   ;;  %v5669_v62 = vld [vmem:[#allocation7 + $0x5a0] ss:$16 sps:$4 sm:$0xff]  }
  0xea   :  { %1586 = vmatpush1.bf16.msra.mxu0 %v5577_v63  ;;  %1750 = vmatpush1.bf16.msra.mxu1 %v5580_v0  ;;  %v5672_v63 = vld [vmem:[#allocation7 + $0x5a8] ss:$16 sps:$4 sm:$0xff]   ;;  %v5677_v0 = vld [vmem:[#allocation7 + $0x5c4] ss:$16 sps:$4 sm:$0xff]  }
  0xeb   :  { %1587 = vmatprep.subr.bf16.mxu0 %v5585_v1  ;;  %1751 = vmatprep.subr.bf16.mxu1 %v5588_v2  ;;  %v5680_v1 = vld [vmem:[#allocation7 + $0x5cc] ss:$16 sps:$4 sm:$0xff]   ;;  %v5675_v2 = vld [vmem:[#allocation7 + $0x5c0] ss:$16 sps:$4 sm:$0xff]  }
  0xee   :  { %1588 = vmatpush1.bf16.msra.mxu0 %v5583_v3  ;;  %1752 = vmatpush1.bf16.msra.mxu1 %v5586_v4  ;;  %v5678_v3 = vld [vmem:[#allocation7 + $0x5c8] ss:$16 sps:$4 sm:$0xff]   ;;  %v5683_v4 = vld [vmem:[#allocation7 + $0x5e4] ss:$16 sps:$4 sm:$0xff]  }
  0xef   :  { %1598 = vmatprep.subr.bf16.mxu0 %v5592_v5  ;;  %1762 = vmatprep.subr.bf16.mxu1 %v5595_v6  ;;  %v5686_v5 = vld [vmem:[#allocation7 + $0x5ec] ss:$16 sps:$4 sm:$0xff]   ;;  %v5681_v6 = vld [vmem:[#allocation7 + $0x5e0] ss:$16 sps:$4 sm:$0xff]  }
  0xf1   :  { %1590 = vmatmul.mubr.bf16.vlgmr.msra.gmra.mrb[0].mxu0 %v4713_v8  ;;  %1754 = vmatmul.mubr.bf16.vlgmr.msra.gmra.mrb[0].mxu1 %v4713_v8  ;;  %v5690_v8 = vld [vmem:[#allocation7 + $0x604] ss:$16 sps:$4 sm:$0xff]  }
  0xf2   :  { %1599 = vmatpush1.bf16.msra.mxu0 %v5590_v7  ;;  %1763 = vmatpush1.bf16.msra.mxu1 %v5593_v9  ;;  %v5684_v7 = vld [vmem:[#allocation7 + $0x5e8] ss:$16 sps:$4 sm:$0xff]   ;;  %v5693_v9 = vld [vmem:[#allocation7 + $0x60c] ss:$16 sps:$4 sm:$0xff]  }
  0xf3   :  { %1600 = vmatprep.subr.bf16.mxu0 %v5599_v10  ;;  %1764 = vmatprep.subr.bf16.mxu1 %v5602_v12  ;;  %v5688_v10 = vld [vmem:[#allocation7 + $0x600] ss:$16 sps:$4 sm:$0xff]   ;;  %v5691_v12 = vld [vmem:[#allocation7 + $0x608] ss:$16 sps:$4 sm:$0xff]  }
  0xf4   :  { %1630 = vmatprep.mubr.bf16.mxu0 %v4716_v13  ;;  %1794 = vmatprep.mubr.bf16.mxu1 %v4716_v13  ;;  %v4715_v13 = vcombine.low %v6684_v11, %v6684_v11  ;;  %v5709_v11 = vld [vmem:[#allocation7 + $0x664] ss:$16 sps:$4 sm:$0xff]  }
  0xf6   :  { %1601 = vmatpush1.bf16.msra.mxu0 %v5597_v14  ;;  %1765 = vmatpush1.bf16.msra.mxu1 %v5600_v15  ;;  %v5697_v14 = vld [vmem:[#allocation7 + $0x624] ss:$16 sps:$4 sm:$0xff]   ;;  %v5700_v15 = vld [vmem:[#allocation7 + $0x62c] ss:$16 sps:$4 sm:$0xff]  }
  0xf7   :  { %1602 = vmatprep.subr.bf16.mxu0 %v5605_v16  ;;  %1766 = vmatprep.subr.bf16.mxu1 %v5608_v17  ;;  %v5695_v16 = vld [vmem:[#allocation7 + $0x620] ss:$16 sps:$4 sm:$0xff]   ;;  %v5698_v17 = vld [vmem:[#allocation7 + $0x628] ss:$16 sps:$4 sm:$0xff]  }
  0xfa   :  { %1603 = vmatpush1.bf16.msra.mxu0 %v5603_v18  ;;  %1767 = vmatpush1.bf16.msra.mxu1 %v5606_v19  ;;  %v5703_v18 = vld [vmem:[#allocation7 + $0x644] ss:$16 sps:$4 sm:$0xff]   ;;  %v5706_v19 = vld [vmem:[#allocation7 + $0x64c] ss:$16 sps:$4 sm:$0xff]  }
  0xfb   :  { %1604 = vmatprep.subr.bf16.mxu0 %v5611_v20  ;;  %1768 = vmatprep.subr.bf16.mxu1 %v5614_v21  ;;  %v5701_v20 = vld [vmem:[#allocation7 + $0x640] ss:$16 sps:$4 sm:$0xff]   ;;  %v5704_v21 = vld [vmem:[#allocation7 + $0x648] ss:$16 sps:$4 sm:$0xff]  }
  0xfe   :  { %1605 = vmatpush1.bf16.msra.mxu0 %v5609_v22  ;;  %1769 = vmatpush1.bf16.msra.mxu1 %v5612_v23  ;;  %v6510_v22 = vmov 0   ;;  %v5712_v23 = vld [vmem:[#allocation7 + $0x66c] ss:$16 sps:$4 sm:$0xff]  }
  0xff   :  { %1606 = vmatprep.subr.bf16.mxu0 %v5617_v24  ;;  %1770 = vmatprep.subr.bf16.mxu1 %v5620_v25  ;;  %v5707_v24 = vld [vmem:[#allocation7 + $0x660] ss:$16 sps:$4 sm:$0xff]   ;;  %v5710_v25 = vld [vmem:[#allocation7 + $0x668] ss:$16 sps:$4 sm:$0xff]  }
 0x102   :  { %1607 = vmatpush1.bf16.msra.mxu0 %v5615_v26  ;;  %1771 = vmatpush1.bf16.msra.mxu1 %v5618_v27  ;;  %v5715_v26 = vld [vmem:[#allocation7 + $0x684] ss:$16 sps:$4 sm:$0xff]   ;;  %v5718_v27 = vld [vmem:[#allocation7 + $0x68c] ss:$16 sps:$4 sm:$0xff]  }
 0x103   :  { %1608 = vmatprep.subr.bf16.mxu0 %v5623_v28  ;;  %1772 = vmatprep.subr.bf16.mxu1 %v5626_v29  ;;  %v5713_v28 = vld [vmem:[#allocation7 + $0x680] ss:$16 sps:$4 sm:$0xff]   ;;  %v5716_v29 = vld [vmem:[#allocation7 + $0x688] ss:$16 sps:$4 sm:$0xff]  }
 0x106   :  { %1609 = vmatpush1.bf16.msra.mxu0 %v5621_v30  ;;  %1773 = vmatpush1.bf16.msra.mxu1 %v5624_v31  ;;  %v5721_v30 = vld [vmem:[#allocation7 + $0x6a4] ss:$16 sps:$4 sm:$0xff]   ;;  %v5724_v31 = vld [vmem:[#allocation7 + $0x6ac] ss:$16 sps:$4 sm:$0xff]  }
 0x107   :  { %1610 = vmatprep.subr.bf16.mxu0 %v5629_v32  ;;  %1774 = vmatprep.subr.bf16.mxu1 %v5632_v33  ;;  %v5719_v32 = vld [vmem:[#allocation7 + $0x6a0] ss:$16 sps:$4 sm:$0xff]   ;;  %v5722_v33 = vld [vmem:[#allocation7 + $0x6a8] ss:$16 sps:$4 sm:$0xff]  }
 0x10a   :  { %1611 = vmatpush1.bf16.msra.mxu0 %v5627_v34  ;;  %1775 = vmatpush1.bf16.msra.mxu1 %v5630_v35  ;;  %v5727_v34 = vld [vmem:[#allocation7 + $0x6c4] ss:$16 sps:$4 sm:$0xff]   ;;  %v5730_v35 = vld [vmem:[#allocation7 + $0x6cc] ss:$16 sps:$4 sm:$0xff]  }
 0x10b   :  { %1612 = vmatprep.subr.bf16.mxu0 %v5635_v36  ;;  %1776 = vmatprep.subr.bf16.mxu1 %v5638_v37  ;;  %v5725_v36 = vld [vmem:[#allocation7 + $0x6c0] ss:$16 sps:$4 sm:$0xff]   ;;  %v5728_v37 = vld [vmem:[#allocation7 + $0x6c8] ss:$16 sps:$4 sm:$0xff]  }
 0x10e   :  { %1613 = vmatpush1.bf16.msra.mxu0 %v5633_v38  ;;  %1777 = vmatpush1.bf16.msra.mxu1 %v5636_v39  ;;  %v5733_v38 = vld [vmem:[#allocation7 + $0x6e4] ss:$16 sps:$4 sm:$0xff]   ;;  %v5736_v39 = vld [vmem:[#allocation7 + $0x6ec] ss:$16 sps:$4 sm:$0xff]  }
 0x10f   :  { %1614 = vmatprep.subr.bf16.mxu0 %v5641_v40  ;;  %1778 = vmatprep.subr.bf16.mxu1 %v5644_v41  ;;  %v5731_v40 = vld [vmem:[#allocation7 + $0x6e0] ss:$16 sps:$4 sm:$0xff]   ;;  %v5734_v41 = vld [vmem:[#allocation7 + $0x6e8] ss:$16 sps:$4 sm:$0xff]  }
 0x112   :  { %1615 = vmatpush1.bf16.msra.mxu0 %v5639_v42  ;;  %1779 = vmatpush1.bf16.msra.mxu1 %v5642_v43  ;;  %v124_v42 = vld [vmem:[#allocation2 + $0x18] sm:$0xf]  ;;  %v5740_v43 = vld [vmem:[#allocation8 + $0x4] ss:$8 sps:$4 sm:$0xff]  }
 0x113   :  { %1616 = vmatprep.subr.bf16.mxu0 %v5647_v44  ;;  %1780 = vmatprep.subr.bf16.mxu1 %v5650_v45  ;;  %v5738_v44 = vld [vmem:[#allocation8] ss:$8 sps:$4 sm:$0xff]   ;;  %v4717_v45 = vcombine.low %v124_v42, %v124_v42 }
 0x116   :  { %1617 = vmatpush1.bf16.msra.mxu0 %v5645_v46  ;;  %1781 = vmatpush1.bf16.msra.mxu1 %v5648_v47  ;;  %v5743_v46 = vld [vmem:[#allocation8 + $0x14] ss:$8 sps:$4 sm:$0xff]   ;;  %v5741_v47 = vld [vmem:[#allocation8 + $0x10] ss:$8 sps:$4 sm:$0xff]  }
 0x117   :  { %1618 = vmatprep.subr.bf16.mxu0 %v5653_v48  ;;  %1782 = vmatprep.subr.bf16.mxu1 %v5656_v49  ;;  %v5746_v48 = vld [vmem:[#allocation8 + $0x24] ss:$8 sps:$4 sm:$0xff]   ;;  %v5744_v49 = vld [vmem:[#allocation8 + $0x20] ss:$8 sps:$4 sm:$0xff]  }
 0x11a   :  { %1619 = vmatpush1.bf16.msra.mxu0 %v5651_v50  ;;  %1783 = vmatpush1.bf16.msra.mxu1 %v5654_v51  ;;  %v5749_v50 = vld [vmem:[#allocation8 + $0x34] ss:$8 sps:$4 sm:$0xff]   ;;  %v5747_v51 = vld [vmem:[#allocation8 + $0x30] ss:$8 sps:$4 sm:$0xff]  }
 0x11b   :  { %1620 = vmatprep.subr.bf16.mxu0 %v5659_v52  ;;  %1784 = vmatprep.subr.bf16.mxu1 %v5662_v53  ;;  %v5752_v52 = vld [vmem:[#allocation8 + $0x44] ss:$8 sps:$4 sm:$0xff]   ;;  %v5750_v53 = vld [vmem:[#allocation8 + $0x40] ss:$8 sps:$4 sm:$0xff]  }
 0x11e   :  { %1621 = vmatpush1.bf16.msra.mxu0 %v5657_v54  ;;  %1785 = vmatpush1.bf16.msra.mxu1 %v5660_v55  ;;  %v5755_v54 = vld [vmem:[#allocation8 + $0x54] ss:$8 sps:$4 sm:$0xff]   ;;  %v5753_v55 = vld [vmem:[#allocation8 + $0x50] ss:$8 sps:$4 sm:$0xff]  }
 0x11f   :  { %1622 = vmatprep.subr.bf16.mxu0 %v5665_v56  ;;  %1786 = vmatprep.subr.bf16.mxu1 %v5668_v57  ;;  %v5758_v56 = vld [vmem:[#allocation8 + $0x64] ss:$8 sps:$4 sm:$0xff]   ;;  %v5756_v57 = vld [vmem:[#allocation8 + $0x60] ss:$8 sps:$4 sm:$0xff]  }
 0x122   :  { %1623 = vmatpush1.bf16.msra.mxu0 %v5663_v58  ;;  %1787 = vmatpush1.bf16.msra.mxu1 %v5666_v59  ;;  %v5761_v58 = vld [vmem:[#allocation8 + $0x74] ss:$8 sps:$4 sm:$0xff]   ;;  %v5759_v59 = vld [vmem:[#allocation8 + $0x70] ss:$8 sps:$4 sm:$0xff]  }
 0x123   :  { %1624 = vmatprep.subr.bf16.mxu0 %v5671_v60  ;;  %1788 = vmatprep.subr.bf16.mxu1 %v5674_v61  ;;  %v5764_v60 = vld [vmem:[#allocation8 + $0x84] ss:$8 sps:$4 sm:$0xff]   ;;  %v5762_v61 = vld [vmem:[#allocation8 + $0x80] ss:$8 sps:$4 sm:$0xff]  }
 0x126   :  { %1625 = vmatpush1.bf16.msra.mxu0 %v5669_v62  ;;  %1789 = vmatpush1.bf16.msra.mxu1 %v5672_v63  ;;  %v5767_v62 = vld [vmem:[#allocation8 + $0x94] ss:$8 sps:$4 sm:$0xff]   ;;  %v5765_v63 = vld [vmem:[#allocation8 + $0x90] ss:$8 sps:$4 sm:$0xff]  }
 0x127   :  { %1626 = vmatprep.subr.bf16.mxu0 %v5677_v0  ;;  %1790 = vmatprep.subr.bf16.mxu1 %v5680_v1  ;;  %v5770_v0 = vld [vmem:[#allocation8 + $0xa4] ss:$8 sps:$4 sm:$0xff]   ;;  %v5768_v1 = vld [vmem:[#allocation8 + $0xa0] ss:$8 sps:$4 sm:$0xff]  }
 0x12a   :  { %1627 = vmatpush1.bf16.msra.mxu0 %v5675_v2  ;;  %1791 = vmatpush1.bf16.msra.mxu1 %v5678_v3  ;;  %v5773_v2 = vld [vmem:[#allocation8 + $0xb4] ss:$8 sps:$4 sm:$0xff]   ;;  %v5771_v3 = vld [vmem:[#allocation8 + $0xb0] ss:$8 sps:$4 sm:$0xff]  }
 0x12b   :  { %1628 = vmatprep.subr.bf16.mxu0 %v5683_v4  ;;  %1792 = vmatprep.subr.bf16.mxu1 %v5686_v5  ;;  %v5776_v4 = vld [vmem:[#allocation8 + $0xc4] ss:$8 sps:$4 sm:$0xff]   ;;  %v5774_v5 = vld [vmem:[#allocation8 + $0xc0] ss:$8 sps:$4 sm:$0xff]  }
 0x12e   :  { %1629 = vmatpush1.bf16.msra.mxu0 %v5681_v6  ;;  %1793 = vmatpush1.bf16.msra.mxu1 %v5684_v7  ;;  %v5779_v6 = vld [vmem:[#allocation8 + $0xd4] ss:$8 sps:$4 sm:$0xff]   ;;  %v5777_v7 = vld [vmem:[#allocation8 + $0xd0] ss:$8 sps:$4 sm:$0xff]  }
 0x12f   :  { %1639 = vmatprep.subr.bf16.mxu0 %v5690_v8  ;;  %1803 = vmatprep.subr.bf16.mxu1 %v5693_v9  ;;  %v5782_v8 = vld [vmem:[#allocation8 + $0xe4] ss:$8 sps:$4 sm:$0xff]   ;;  %v5780_v9 = vld [vmem:[#allocation8 + $0xe0] ss:$8 sps:$4 sm:$0xff]  }
 0x131   :  { %1631 = vmatmul.mubr.bf16.vlgmr.msra.gmra.mrb[0].mxu0 %v4715_v13  ;;  %1795 = vmatmul.mubr.bf16.vlgmr.msra.gmra.mrb[0].mxu1 %v4715_v13  ;;  %v5788_v13 = vld [vmem:[#allocation8 + $0x104] ss:$8 sps:$4 sm:$0xff]  }
 0x132   :  { %1640 = vmatpush1.bf16.msra.mxu0 %v5688_v10  ;;  %1804 = vmatpush1.bf16.msra.mxu1 %v5691_v12  ;;  %v5785_v10 = vld [vmem:[#allocation8 + $0xf4] ss:$8 sps:$4 sm:$0xff]   ;;  %v5783_v12 = vld [vmem:[#allocation8 + $0xf0] ss:$8 sps:$4 sm:$0xff]  }
 0x133   :  { %1641 = vmatprep.subr.bf16.mxu0 %v5697_v14  ;;  %1805 = vmatprep.subr.bf16.mxu1 %v5700_v15  ;;  %v5834_v14 = vld [vmem:[#allocation10] ss:$16 sps:$4 sm:$0xff]   ;;  %v5836_v15 = vld [vmem:[#allocation10 + $0x4] ss:$16 sps:$4 sm:$0xff]  }
 0x134   :  { %1671 = vmatprep.mubr.bf16.mxu0 %v6510_v22  ;;  %1835 = vmatprep.mubr.bf16.mxu1 %v6510_v22 }
 0x136   :  { %1642 = vmatpush1.bf16.msra.mxu0 %v5695_v16  ;;  %1806 = vmatpush1.bf16.msra.mxu1 %v5698_v17  ;;  %v5839_v16 = vld [vmem:[#allocation10 + $0x24] ss:$16 sps:$4 sm:$0xff]   ;;  %v5837_v17 = vld [vmem:[#allocation10 + $0x20] ss:$16 sps:$4 sm:$0xff]  }
 0x137   :  { %1643 = vmatprep.subr.bf16.mxu0 %v5703_v18  ;;  %1807 = vmatprep.subr.bf16.mxu1 %v5706_v19  ;;  %v5842_v18 = vld [vmem:[#allocation10 + $0x44] ss:$16 sps:$4 sm:$0xff]   ;;  %v5840_v19 = vld [vmem:[#allocation10 + $0x40] ss:$16 sps:$4 sm:$0xff]  }
 0x13a   :  { %1644 = vmatpush1.bf16.msra.mxu0 %v5701_v20  ;;  %1808 = vmatpush1.bf16.msra.mxu1 %v5704_v21  ;;  %v5845_v20 = vld [vmem:[#allocation10 + $0x64] ss:$16 sps:$4 sm:$0xff]   ;;  %v5843_v21 = vld [vmem:[#allocation10 + $0x60] ss:$16 sps:$4 sm:$0xff]  }
 0x13b   :  { %1645 = vmatprep.subr.bf16.mxu0 %v5709_v11  ;;  %1809 = vmatprep.subr.bf16.mxu1 %v5712_v23  ;;  %v5848_v11 = vld [vmem:[#allocation10 + $0x84] ss:$16 sps:$4 sm:$0xff]   ;;  %v5846_v23 = vld [vmem:[#allocation10 + $0x80] ss:$16 sps:$4 sm:$0xff]  }
 0x13e   :  { %1646 = vmatpush1.bf16.msra.mxu0 %v5707_v24  ;;  %1810 = vmatpush1.bf16.msra.mxu1 %v5710_v25  ;;  %v5851_v24 = vld [vmem:[#allocation10 + $0xa4] ss:$16 sps:$4 sm:$0xff]   ;;  %v5849_v25 = vld [vmem:[#allocation10 + $0xa0] ss:$16 sps:$4 sm:$0xff]  }
 0x13f   :  { %1647 = vmatprep.subr.bf16.mxu0 %v5715_v26  ;;  %1811 = vmatprep.subr.bf16.mxu1 %v5718_v27  ;;  %v351_v26 = vlaneseq }
 0x141   :  { %v6694_v27 = vshrl.u32 %v351_v26, 7 }
 0x142   :  { %1648 = vmatpush1.bf16.msra.mxu0 %v5713_v28  ;;  %1812 = vmatpush1.bf16.msra.mxu1 %v5716_v29  ;;  %v6702_v29 = vld [vmem:[%s6883_s3] sm:$0xf] }
 0x143   :  { %1649 = vmatprep.subr.bf16.mxu0 %v5721_v30  ;;  %1813 = vmatprep.subr.bf16.mxu1 %v5724_v31  ;;  %v6697_v28 = vsub.s32 0, %v6694_v27  ;;  %v6705_v30 = vsub.s32 1, %v6694_v27  ;;  %v6708_v31 = vsub.s32 3, %v6694_v27 }
 0x146   :  { %1650 = vmatpush1.bf16.msra.mxu0 %v5719_v32  ;;  %1814 = vmatpush1.bf16.msra.mxu1 %v5722_v33  ;;  %v354_v32 = vrot.slane %v6702_v29, %v6697_v28  ;;  %v358_v33 = vrot.slane %v6702_v29, %v6705_v30 }
 0x147   :  { %1651 = vmatprep.subr.bf16.mxu0 %v5727_v34  ;;  %1815 = vmatprep.subr.bf16.mxu1 %v5730_v35  ;;  %v366_v34 = vrot.slane %v6702_v29, %v6708_v31 }
 0x14a   :  { %1652 = vmatpush1.bf16.msra.mxu0 %v5725_v36  ;;  %1816 = vmatpush1.bf16.msra.mxu1 %v5728_v37 }
 0x14b   :  { %1653 = vmatprep.subr.bf16.mxu0 %v5733_v38  ;;  %1817 = vmatprep.subr.bf16.mxu1 %v5736_v39 }
 0x14e   :  { %1654 = vmatpush1.bf16.msra.mxu0 %v5731_v40  ;;  %1818 = vmatpush1.bf16.msra.mxu1 %v5734_v41 }
 0x14f   :  { %2248 = vmatprep.subr.bf16.mxu0 %v5740_v43  ;;  %2551 = vmatprep.subr.bf16.mxu1 %v5836_v15  ;;  %v5827_v15 = vld [vmem:[#allocation8 + $0x1d4] ss:$8 sps:$4 sm:$0xff]  }
 0x151   :  { %1672 = vmatmul.mubr.bf16.vlgmr.msra.gmra.mrb[0].mxu0 %v4717_v45  ;;  %1836 = vmatmul.mubr.bf16.vlgmr.msra.gmra.mrb[0].mxu1 %v4717_v45 }
 0x152   :  { %2249 = vmatpush1.bf16.msra.mxu0 %v5738_v44  ;;  %2583 = vmatprep.mubr.bf16.mxu1 %v6510_v22 }
 0x153   :  { %2250 = vmatprep.subr.bf16.mxu0 %v5743_v46  ;;  %2552 = vmatpush1.bf16.msra.mxu1 %v5834_v14  ;;  %v6719_v14 = vsub.s32 2, %v6694_v27 }
 0x154   :  { %2553 = vmatprep.subr.bf16.mxu1 %v5839_v16  ;;  %v5825_v16 = vld [vmem:[#allocation8 + $0x1d0] ss:$8 sps:$4 sm:$0xff]  }
 0x156   :  { %2251 = vmatpush1.bf16.msra.mxu0 %v5741_v47 }
 0x157   :  { %2252 = vmatprep.subr.bf16.mxu0 %v5746_v48  ;;  %2554 = vmatpush1.bf16.msra.mxu1 %v5837_v17  ;;  %v362_v17 = vrot.slane %v6702_v29, %v6719_v14  ;;  %v5857_v29 = vld [vmem:[#allocation10 + $0xe4] ss:$16 sps:$4 sm:$0xff]  }
 0x158   :  { %2555 = vmatprep.subr.bf16.mxu1 %v5842_v18  ;;  %v5830_v18 = vld [vmem:[#allocation8 + $0x1e4] ss:$8 sps:$4 sm:$0xff]  }
 0x15a   :  { %2253 = vmatpush1.bf16.msra.mxu0 %v5744_v49 }
 0x15b   :  { %2254 = vmatprep.subr.bf16.mxu0 %v5749_v50  ;;  %2556 = vmatpush1.bf16.msra.mxu1 %v5840_v19  ;;  %v5786_v50 = vld [vmem:[#allocation8 + $0x100] ss:$8 sps:$4 sm:$0xff]  }
 0x15c   :  { %2557 = vmatprep.subr.bf16.mxu1 %v5845_v20  ;;  %v5828_v19 = vld [vmem:[#allocation8 + $0x1e0] ss:$8 sps:$4 sm:$0xff]  }
 0x15e   :  { %2255 = vmatpush1.bf16.msra.mxu0 %v5747_v51 }
 0x15f   :  { %2256 = vmatprep.subr.bf16.mxu0 %v5752_v52  ;;  %2558 = vmatpush1.bf16.msra.mxu1 %v5843_v21  ;;  %v5791_v52 = vld [vmem:[#allocation8 + $0x114] ss:$8 sps:$4 sm:$0xff]  }
 0x160   :  { %2559 = vmatprep.subr.bf16.mxu1 %v5848_v11  ;;  %v5833_v21 = vld [vmem:[#allocation8 + $0x1f4] ss:$8 sps:$4 sm:$0xff]   ;;  %v5831_v11 = vld [vmem:[#allocation8 + $0x1f0] ss:$8 sps:$4 sm:$0xff]  }
 0x162   :  { %2257 = vmatpush1.bf16.msra.mxu0 %v5750_v53 }
 0x163   :  { %2258 = vmatprep.subr.bf16.mxu0 %v5755_v54  ;;  %2560 = vmatpush1.bf16.msra.mxu1 %v5846_v23  ;;  %v5789_v54 = vld [vmem:[#allocation8 + $0x110] ss:$8 sps:$4 sm:$0xff]  }
 0x164   :  { %2561 = vmatprep.subr.bf16.mxu1 %v5851_v24 }
 0x166   :  { %2259 = vmatpush1.bf16.msra.mxu0 %v5753_v55  ;;  %v5794_v55 = vld [vmem:[#allocation8 + $0x124] ss:$8 sps:$4 sm:$0xff]  }
 0x167   :  { %2260 = vmatprep.subr.bf16.mxu0 %v5758_v56  ;;  %2562 = vmatpush1.bf16.msra.mxu1 %v5849_v25  ;;  %v5792_v56 = vld [vmem:[#allocation8 + $0x120] ss:$8 sps:$4 sm:$0xff]   ;;  %v5854_v25 = vld [vmem:[#allocation10 + $0xc4] ss:$16 sps:$4 sm:$0xff]  }
 0x168   :  { %2563 = vmatprep.subr.bf16.mxu1 %v5854_v25  ;;  %v5869_v25 = vld [vmem:[#allocation10 + $0x6c] ss:$16 sps:$4 sm:$0xff]  }
 0x16a   :  { %2261 = vmatpush1.bf16.msra.mxu0 %v5756_v57  ;;  %v5797_v57 = vld [vmem:[#allocation8 + $0x134] ss:$8 sps:$4 sm:$0xff]  }
 0x16b   :  { %2262 = vmatprep.subr.bf16.mxu0 %v5761_v58  ;;  %v5795_v58 = vld [vmem:[#allocation8 + $0x130] ss:$8 sps:$4 sm:$0xff]  }
 0x16e   :  { %2263 = vmatpush1.bf16.msra.mxu0 %v5759_v59  ;;  %v5800_v59 = vld [vmem:[#allocation8 + $0x144] ss:$8 sps:$4 sm:$0xff]  }
 0x16f   :  { %2264 = vmatprep.subr.bf16.mxu0 %v5764_v60  ;;  %v5798_v60 = vld [vmem:[#allocation8 + $0x140] ss:$8 sps:$4 sm:$0xff]  }
 0x172   :  { %2265 = vmatpush1.bf16.msra.mxu0 %v5762_v61  ;;  %v5803_v61 = vld [vmem:[#allocation8 + $0x154] ss:$8 sps:$4 sm:$0xff]  }
 0x173   :  { %2266 = vmatprep.subr.bf16.mxu0 %v5767_v62  ;;  %v5801_v62 = vld [vmem:[#allocation8 + $0x150] ss:$8 sps:$4 sm:$0xff]  }
 0x176   :  { %2267 = vmatpush1.bf16.msra.mxu0 %v5765_v63  ;;  %v5806_v63 = vld [vmem:[#allocation8 + $0x164] ss:$8 sps:$4 sm:$0xff]  }
 0x177   :  { %2268 = vmatprep.subr.bf16.mxu0 %v5770_v0  ;;  %v5804_v0 = vld [vmem:[#allocation8 + $0x160] ss:$8 sps:$4 sm:$0xff]  }
 0x17a   :  { %2269 = vmatpush1.bf16.msra.mxu0 %v5768_v1  ;;  %v5809_v1 = vld [vmem:[#allocation8 + $0x174] ss:$8 sps:$4 sm:$0xff]  }
 0x17b   :  { %2270 = vmatprep.subr.bf16.mxu0 %v5773_v2  ;;  %v5807_v2 = vld [vmem:[#allocation8 + $0x170] ss:$8 sps:$4 sm:$0xff]  }
 0x17e   :  { %2271 = vmatpush1.bf16.msra.mxu0 %v5771_v3  ;;  %v5812_v3 = vld [vmem:[#allocation8 + $0x184] ss:$8 sps:$4 sm:$0xff]  }
 0x17f   :  { %2272 = vmatprep.subr.bf16.mxu0 %v5776_v4  ;;  %v5810_v4 = vld [vmem:[#allocation8 + $0x180] ss:$8 sps:$4 sm:$0xff]  }
 0x182   :  { %2273 = vmatpush1.bf16.msra.mxu0 %v5774_v5  ;;  %v5815_v5 = vld [vmem:[#allocation8 + $0x194] ss:$8 sps:$4 sm:$0xff]  }
 0x183   :  { %2274 = vmatprep.subr.bf16.mxu0 %v5779_v6  ;;  %v5813_v6 = vld [vmem:[#allocation8 + $0x190] ss:$8 sps:$4 sm:$0xff]  }
 0x186   :  { %2275 = vmatpush1.bf16.msra.mxu0 %v5777_v7  ;;  %v5818_v7 = vld [vmem:[#allocation8 + $0x1a4] ss:$8 sps:$4 sm:$0xff]  }
 0x187   :  { %2276 = vmatprep.subr.bf16.mxu0 %v5782_v8  ;;  %v5816_v8 = vld [vmem:[#allocation8 + $0x1a0] ss:$8 sps:$4 sm:$0xff]  }
 0x18a   :  { %2277 = vmatpush1.bf16.msra.mxu0 %v5780_v9  ;;  %v5821_v9 = vld [vmem:[#allocation8 + $0x1b4] ss:$8 sps:$4 sm:$0xff]  }
 0x18b   :  { %2278 = vmatprep.subr.bf16.mxu0 %v5785_v10  ;;  %v5819_v10 = vld [vmem:[#allocation8 + $0x1b0] ss:$8 sps:$4 sm:$0xff]  }
 0x18e   :  { %2279 = vmatpush1.bf16.msra.mxu0 %v5783_v12  ;;  %v5824_v12 = vld [vmem:[#allocation8 + $0x1c4] ss:$8 sps:$4 sm:$0xff]  }
 0x18f   :  { %2289 = vmatprep.subr.bf16.mxu0 %v5788_v13  ;;  %v5822_v13 = vld [vmem:[#allocation8 + $0x1c0] ss:$8 sps:$4 sm:$0xff]  }
 0x224   :  { %v1673_v35 = vpop.f32.mrb[0].mxu0  ;;  %v6716_v36 = vpop.f32.mrb[0].mxu1 }
 0x225   :  { %v5322_v37 = vadd.f32 %v1673_v35, %v354_v32  ;;  %v1675_v38 = vpop.f32.mrb[1].mxu0  ;;  %v1839_v39 = vpop.f32.mrb[1].mxu1  ;;  %v5324_v20 = vadd.f32 %v6716_v36, %v362_v17  ;;  %v5852_v32 = vld [vmem:[#allocation10 + $0xc0] ss:$16 sps:$4 sm:$0xff]   ;;  %v5885_v35 = vld [vmem:[#allocation11 + $0x8] ss:$28 sps:$4 sm:$0xff]  }
 0x226   :  { %v5323_v40 = vadd.f32 %v1675_v38, %v358_v33  ;;  %v5325_v41 = vadd.f32 %v1839_v39, %v366_v34  ;;  %v1677_v42 = vpop.f32.mrb[2].mxu0  ;;  %v1841_v43 = vpop.f32.mrb[2].mxu1  ;;  %2564 = vmatpush1.bf16.msra.mxu1 %v5852_v32  ;;  %v5855_v33 = vld [vmem:[#allocation10 + $0xe0] ss:$16 sps:$4 sm:$0xff]   ;;  %v5860_v34 = vld [vmem:[#allocation10 + $0xc] ss:$16 sps:$4 sm:$0xff]  }
 0x227   :  { %v1844_v44 = vmax.f32 %v5322_v37, 0.0  ;;  %v1678_v45 = vpop.f32.mrb[3].mxu0  ;;  %v1842_v46 = vpop.f32.mrb[3].mxu1  ;;  %v1846_v23 = vmax.f32 %v5324_v20, 0.0  ;;  %2565 = vmatprep.subr.bf16.mxu1 %v5857_v29  ;;  %v5887_v36 = vld [vmem:[#allocation11 + $0xc] ss:$28 sps:$4 sm:$0xff]  }
 0x228   :  { %v1845_v47 = vmax.f32 %v5323_v40, 0.0  ;;  %v1847_v48 = vmax.f32 %v5325_v41, 0.0  ;;  %v5893_v37 = vld [vmem:[#allocation11 + $0x44] ss:$28 sps:$4 sm:$0xff]   ;;  %v5899_v39 = vld [vmem:[#allocation11 + $0x7c] ss:$28 sps:$4 sm:$0xff]  }
 0x229   :  { %v1848_v51 = vpack.c.bf16 %v1844_v44, %v1844_v44  ;;  %v1850_v24 = vpack.c.bf16 %v1846_v23, %v1846_v23  ;;  %v5891_v38 = vld [vmem:[#allocation11 + $0x40] ss:$28 sps:$4 sm:$0xff]   ;;  %v5897_v40 = vld [vmem:[#allocation11 + $0x78] ss:$28 sps:$4 sm:$0xff]   ;;  %v5903_v42 = vld [vmem:[#allocation11 + $0xb0] ss:$28 sps:$4 sm:$0xff]  }
 0x22a   :  { %v1849_v49 = vpack.c.bf16 %v1845_v47, %v1845_v47  ;;  %v1851_v53 = vpack.c.bf16 %v1847_v48, %v1847_v48  ;;  %2566 = vmatpush1.bf16.msra.mxu1 %v5855_v33  ;;  %v5905_v41 = vld [vmem:[#allocation11 + $0xb4] ss:$28 sps:$4 sm:$0xff]   ;;  %v5911_v43 = vld [vmem:[#allocation11 + $0xec] ss:$28 sps:$4 sm:$0xff]   ;;  %v5917_v45 = vld [vmem:[#allocation11 + $0x124] ss:$28 sps:$4 sm:$0xff]  }
 0x22b   :  { %2592 = vmatprep.subr.bf16.mxu1 %v5860_v34  ;;  %v5909_v44 = vld [vmem:[#allocation11 + $0xe8] ss:$28 sps:$4 sm:$0xff]   ;;  %v5915_v46 = vld [vmem:[#allocation11 + $0x120] ss:$28 sps:$4 sm:$0xff]   ;;  %v5921_v48 = vld [vmem:[#allocation11 + $0x158] ss:$28 sps:$4 sm:$0xff]  }
 0x22c   :  { %2280 = vmatprep.mubr.bf16.mxu0 %v1849_v49  ;;  %v5923_v47 = vld [vmem:[#allocation11 + $0x15c] ss:$28 sps:$4 sm:$0xff]   ;;  %v5929_v49 = vld [vmem:[#allocation11 + $0x194] ss:$28 sps:$4 sm:$0xff]  }
 0x22d   :  { %2281 = vmatmul.mubr.bf16.vlgmr.msra.gmra.mrb[4].mxu0 %v1848_v51  ;;  %v5935_v51 = vld [vmem:[#allocation11 + $0x1cc] ss:$28 sps:$4 sm:$0xff]  }
 0x22e   :  { %2290 = vmatpush1.bf16.msra.mxu0 %v5786_v50  ;;  %2321 = vmatprep.mubr.bf16.mxu0 %v1851_v53  ;;  %v5927_v50 = vld [vmem:[#allocation11 + $0x190] ss:$28 sps:$4 sm:$0xff]   ;;  %v5941_v53 = vld [vmem:[#allocation11 + $0x204] ss:$28 sps:$4 sm:$0xff]   ;;  %v5864_v23 = vld [vmem:[#allocation10 + $0x48] ss:$16 sps:$4 sm:$0xff]  }
 0x22f   :  { %2291 = vmatprep.subr.bf16.mxu0 %v5791_v52  ;;  %v5933_v52 = vld [vmem:[#allocation11 + $0x1c8] ss:$28 sps:$4 sm:$0xff]   ;;  %v5863_v20 = vld [vmem:[#allocation10 + $0x2c] ss:$16 sps:$4 sm:$0xff]  }
 0x230   :  { %v5867_v29 = vld [vmem:[#allocation10 + $0x68] ss:$16 sps:$4 sm:$0xff]  }
 0x232   :  { %2292 = vmatpush1.bf16.msra.mxu0 %v5789_v54  ;;  %v5939_v54 = vld [vmem:[#allocation11 + $0x200] ss:$28 sps:$4 sm:$0xff]  }
 0x233   :  { %2293 = vmatprep.subr.bf16.mxu0 %v5794_v55  ;;  %v5947_v55 = vld [vmem:[#allocation11 + $0x23c] ss:$28 sps:$4 sm:$0xff]  }
 0x236   :  { %2294 = vmatpush1.bf16.msra.mxu0 %v5792_v56  ;;  %v5945_v56 = vld [vmem:[#allocation11 + $0x238] ss:$28 sps:$4 sm:$0xff]  }
 0x237   :  { %2295 = vmatprep.subr.bf16.mxu0 %v5797_v57  ;;  %v5953_v57 = vld [vmem:[#allocation11 + $0x274] ss:$28 sps:$4 sm:$0xff]  }
 0x23a   :  { %2296 = vmatpush1.bf16.msra.mxu0 %v5795_v58  ;;  %v5951_v58 = vld [vmem:[#allocation11 + $0x270] ss:$28 sps:$4 sm:$0xff]  }
 0x23b   :  { %2297 = vmatprep.subr.bf16.mxu0 %v5800_v59  ;;  %v5959_v59 = vld [vmem:[#allocation11 + $0x2ac] ss:$28 sps:$4 sm:$0xff]  }
 0x23e   :  { %2298 = vmatpush1.bf16.msra.mxu0 %v5798_v60  ;;  %v5957_v60 = vld [vmem:[#allocation11 + $0x2a8] ss:$28 sps:$4 sm:$0xff]  }
 0x23f   :  { %2299 = vmatprep.subr.bf16.mxu0 %v5803_v61  ;;  %v5965_v61 = vld [vmem:[#allocation11 + $0x2e4] ss:$28 sps:$4 sm:$0xff]  }
 0x242   :  { %2300 = vmatpush1.bf16.msra.mxu0 %v5801_v62  ;;  %v5963_v62 = vld [vmem:[#allocation11 + $0x2e0] ss:$28 sps:$4 sm:$0xff]  }
 0x243   :  { %2301 = vmatprep.subr.bf16.mxu0 %v5806_v63  ;;  %v1916_v63 = vld [vmem:[%s6885_s5] sm:$0x3] }
 0x246   :  { %2302 = vmatpush1.bf16.msra.mxu0 %v5804_v0  ;;  %v1921_v0 = vrot.slane %v1916_v63, %v6697_v28 }
 0x247   :  { %2303 = vmatprep.subr.bf16.mxu0 %v5809_v1  ;;  %v1925_v1 = vrot.slane %v1916_v63, %v6705_v30  ;;  %v5944_v63 = vld [vmem:[#allocation11 + $0x234] ss:$28 sps:$4 sm:$0xff]  }
 0x24a   :  { %2304 = vmatpush1.bf16.msra.mxu0 %v5807_v2 }
 0x24b   :  { %2305 = vmatprep.subr.bf16.mxu0 %v5812_v3 }
 0x24e   :  { %2306 = vmatpush1.bf16.msra.mxu0 %v5810_v4 }
 0x24f   :  { %2307 = vmatprep.subr.bf16.mxu0 %v5815_v5 }
 0x252   :  { %2308 = vmatpush1.bf16.msra.mxu0 %v5813_v6 }
 0x253   :  { %2309 = vmatprep.subr.bf16.mxu0 %v5818_v7  ;;  %v2333_v7 = vld [vmem:[#allocation5] sm:$0xff] }
 0x256   :  { %2310 = vmatpush1.bf16.msra.mxu0 %v5816_v8 }
 0x257   :  { %2311 = vmatprep.subr.bf16.mxu0 %v5821_v9 }
 0x25a   :  { %2312 = vmatpush1.bf16.msra.mxu0 %v5819_v10 }
 0x25b   :  { %2313 = vmatprep.subr.bf16.mxu0 %v5824_v12 }
 0x25e   :  { %2314 = vmatpush1.bf16.msra.mxu0 %v5822_v13 }
 0x25f   :  { %2315 = vmatprep.subr.bf16.mxu0 %v5827_v15 }
 0x262   :  { %2316 = vmatpush1.bf16.msra.mxu0 %v5825_v16 }
 0x263   :  { %2317 = vmatprep.subr.bf16.mxu0 %v5830_v18  ;;  %v5858_v18 = vld [vmem:[#allocation10 + $0x8] ss:$16 sps:$4 sm:$0xff]  }
 0x266   :  { %2318 = vmatpush1.bf16.msra.mxu0 %v5828_v19 }
 0x267   :  { %2319 = vmatprep.subr.bf16.mxu0 %v5833_v21  ;;  %v5861_v21 = vld [vmem:[#allocation10 + $0x28] ss:$16 sps:$4 sm:$0xff]  }
 0x26a   :  { %2320 = vmatpush1.bf16.msra.mxu0 %v5831_v11  ;;  %v5866_v11 = vld [vmem:[#allocation10 + $0x4c] ss:$16 sps:$4 sm:$0xff]  }
 0x26b   :  { %4168 = vmatprep.subr.bf16.mxu0 %v5887_v36 }
 0x26d   :  { %2322 = vmatmul.mubr.bf16.vlgmr.msra.gmra.mrb[4].mxu0 %v1850_v24 }
 0x26e   :  { %4169 = vmatpush1.bf16.msra.mxu0 %v5885_v35  ;;  %v5872_v35 = vld [vmem:[#allocation10 + $0x8c] ss:$16 sps:$4 sm:$0xff]  }
 0x26f   :  { %4170 = vmatprep.subr.bf16.mxu0 %v5893_v37  ;;  %v5870_v37 = vld [vmem:[#allocation10 + $0x88] ss:$16 sps:$4 sm:$0xff]  }
 0x272   :  { %4171 = vmatpush1.bf16.msra.mxu0 %v5891_v38  ;;  %v5873_v38 = vld [vmem:[#allocation10 + $0xa8] ss:$16 sps:$4 sm:$0xff]  }
 0x273   :  { %4172 = vmatprep.subr.bf16.mxu0 %v5899_v39  ;;  %v5878_v39 = vld [vmem:[#allocation10 + $0xcc] ss:$16 sps:$4 sm:$0xff]  }
 0x276   :  { %4173 = vmatpush1.bf16.msra.mxu0 %v5897_v40  ;;  %v5876_v40 = vld [vmem:[#allocation10 + $0xc8] ss:$16 sps:$4 sm:$0xff]  }
 0x277   :  { %4174 = vmatprep.subr.bf16.mxu0 %v5905_v41  ;;  %v5881_v41 = vld [vmem:[#allocation10 + $0xec] ss:$16 sps:$4 sm:$0xff]  }
 0x27a   :  { %4175 = vmatpush1.bf16.msra.mxu0 %v5903_v42  ;;  %v5879_v42 = vld [vmem:[#allocation10 + $0xe8] ss:$16 sps:$4 sm:$0xff]  }
 0x27b   :  { %4176 = vmatprep.subr.bf16.mxu0 %v5911_v43  ;;  %v5884_v43 = vld [vmem:[#allocation11 + $0x4] ss:$28 sps:$4 sm:$0xff]  }
 0x27e   :  { %4177 = vmatpush1.bf16.msra.mxu0 %v5909_v44  ;;  %v5882_v44 = vld [vmem:[#allocation11] ss:$28 sps:$4 sm:$0xff]  }
 0x27f   :  { %4178 = vmatprep.subr.bf16.mxu0 %v5917_v45  ;;  %v5890_v45 = vld [vmem:[#allocation11 + $0x3c] ss:$28 sps:$4 sm:$0xff]  }
 0x282   :  { %4179 = vmatpush1.bf16.msra.mxu0 %v5915_v46  ;;  %v5888_v46 = vld [vmem:[#allocation11 + $0x38] ss:$28 sps:$4 sm:$0xff]  }
 0x283   :  { %4180 = vmatprep.subr.bf16.mxu0 %v5923_v47  ;;  %v5896_v47 = vld [vmem:[#allocation11 + $0x74] ss:$28 sps:$4 sm:$0xff]  }
 0x286   :  { %4181 = vmatpush1.bf16.msra.mxu0 %v5921_v48  ;;  %v5894_v48 = vld [vmem:[#allocation11 + $0x70] ss:$28 sps:$4 sm:$0xff]  }
 0x287   :  { %4182 = vmatprep.subr.bf16.mxu0 %v5929_v49  ;;  %v5902_v49 = vld [vmem:[#allocation11 + $0xac] ss:$28 sps:$4 sm:$0xff]  }
 0x28a   :  { %4183 = vmatpush1.bf16.msra.mxu0 %v5927_v50  ;;  %v5900_v50 = vld [vmem:[#allocation11 + $0xa8] ss:$28 sps:$4 sm:$0xff]  }
 0x28b   :  { %4184 = vmatprep.subr.bf16.mxu0 %v5935_v51  ;;  %v5908_v51 = vld [vmem:[#allocation11 + $0xe4] ss:$28 sps:$4 sm:$0xff]  }
 0x28e   :  { %4185 = vmatpush1.bf16.msra.mxu0 %v5933_v52  ;;  %v5906_v52 = vld [vmem:[#allocation11 + $0xe0] ss:$28 sps:$4 sm:$0xff]  }
 0x28f   :  { %4186 = vmatprep.subr.bf16.mxu0 %v5941_v53  ;;  %v5914_v53 = vld [vmem:[#allocation11 + $0x11c] ss:$28 sps:$4 sm:$0xff]  }
 0x292   :  { %4187 = vmatpush1.bf16.msra.mxu0 %v5939_v54  ;;  %v5912_v54 = vld [vmem:[#allocation11 + $0x118] ss:$28 sps:$4 sm:$0xff]  }
 0x293   :  { %4188 = vmatprep.subr.bf16.mxu0 %v5947_v55  ;;  %v5920_v55 = vld [vmem:[#allocation11 + $0x154] ss:$28 sps:$4 sm:$0xff]  }
 0x296   :  { %4189 = vmatpush1.bf16.msra.mxu0 %v5945_v56  ;;  %v5918_v56 = vld [vmem:[#allocation11 + $0x150] ss:$28 sps:$4 sm:$0xff]  }
 0x297   :  { %4190 = vmatprep.subr.bf16.mxu0 %v5953_v57  ;;  %v5926_v57 = vld [vmem:[#allocation11 + $0x18c] ss:$28 sps:$4 sm:$0xff]  }
 0x29a   :  { %4191 = vmatpush1.bf16.msra.mxu0 %v5951_v58  ;;  %v5924_v58 = vld [vmem:[#allocation11 + $0x188] ss:$28 sps:$4 sm:$0xff]  }
 0x29b   :  { %4192 = vmatprep.subr.bf16.mxu0 %v5959_v59  ;;  %v5932_v59 = vld [vmem:[#allocation11 + $0x1c4] ss:$28 sps:$4 sm:$0xff]  }
 0x29e   :  { %4193 = vmatpush1.bf16.msra.mxu0 %v5957_v60  ;;  %v5930_v60 = vld [vmem:[#allocation11 + $0x1c0] ss:$28 sps:$4 sm:$0xff]  }
 0x29f   :  { %4194 = vmatprep.subr.bf16.mxu0 %v5965_v61  ;;  %v5938_v61 = vld [vmem:[#allocation11 + $0x1fc] ss:$28 sps:$4 sm:$0xff]  }
 0x2a2   :  { %4195 = vmatpush1.bf16.msra.mxu0 %v5963_v62  ;;  %v5936_v62 = vld [vmem:[#allocation11 + $0x1f8] ss:$28 sps:$4 sm:$0xff]  }
 0x340   :  { %v2323_v2 = vpop.f32.mrb[4].mxu0 }
 0x341   :  { %v5326_v3 = vadd.f32 %v2323_v2, %v1921_v0  ;;  %v2325_v4 = vpop.f32.mrb[5].mxu0  ;;  %v5942_v0 = vld [vmem:[#allocation11 + $0x230] ss:$28 sps:$4 sm:$0xff]   ;;  %v5948_v2 = vld [vmem:[#allocation11 + $0x268] ss:$28 sps:$4 sm:$0xff]  }
 0x342   :  { %v5327_v5 = vadd.f32 %v2325_v4, %v1925_v1  ;;  %v2327_v6 = vpop.f32.mrb[6].mxu0  ;;  %v5950_v1 = vld [vmem:[#allocation11 + $0x26c] ss:$28 sps:$4 sm:$0xff]   ;;  %v5954_v4 = vld [vmem:[#allocation11 + $0x2a0] ss:$28 sps:$4 sm:$0xff]  }
 0x343   :  { %2331 = vst [vmem:[#allocation13] sm:$0xff] %v5326_v3  ;;  %v2328_v8 = vpop.f32.mrb[7].mxu0  ;;  %v4630_v10 = vmul.f32 %v5326_v3, %v5326_v3  ;;  %v5960_v6 = vld [vmem:[#allocation11 + $0x2d8] ss:$28 sps:$4 sm:$0xff]  }
 0x344   :  { %v2330_v9 = vmax.f32 %v5327_v5, 0.0  ;;  %v5962_v5 = vld [vmem:[#allocation11 + $0x2dc] ss:$28 sps:$4 sm:$0xff]  }
 0x345   :  { %v5971_v8 = vld [vmem:[#allocation11 + $0x31c] ss:$28 sps:$4 sm:$0xff]  }
 0x346   :  { %v2334_v12 = vmul.f32 %v2333_v7, %v2330_v9  ;;  %2332 = vst [vmem:[#allocation14] sm:$0xff] %v2330_v9  ;;  %v4625_v13 = vadd.f32 1e-08, %v2330_v9  ;;  %v4629_v15 = vmul.f32 %v2330_v9, %v2330_v9  ;;  %v5968_v7 = vld [vmem:[#allocation11 + $0x314] ss:$28 sps:$4 sm:$0xff]   ;;  %4196 = vmatprep.subr.bf16.mxu0 %v5971_v8 }
 0x347   :  { %v5969_v9 = vld [vmem:[#allocation11 + $0x318] ss:$28 sps:$4 sm:$0xff]  }
 0x348   :  { %v2335_v16 = vadd.f32 %v5326_v3, %v2334_v12  ;;  %6202 = vlog2.f32 %v4625_v13  ;;  %v4631_v17 = vadd.f32 %v4630_v10, %v4629_v15  ;;  %v5956_v3 = vld [vmem:[#allocation11 + $0x2a4] ss:$28 sps:$4 sm:$0xff]   ;;  %v5966_v10 = vld [vmem:[#allocation11 + $0x310] ss:$28 sps:$4 sm:$0xff]   ;;  %4197 = vmatpush1.bf16.msra.mxu0 %v5969_v9 }
 0x349   :  { %v5974_v12 = vld [vmem:[#allocation11 + $0x34c] ss:$28 sps:$4 sm:$0xff]   ;;  %v5977_v13 = vld [vmem:[#allocation11 + $0x354] ss:$28 sps:$4 sm:$0xff]   ;;  %v6028_v9 = vld [vmem:[#allocation11 + $0x544] ss:$28 sps:$4 sm:$0xff]  }
 0x34a   :  { %v2336_v19 = vpack.c.bf16 %v2335_v16, %v2335_v16  ;;  %v4632_v34 = vmul.f32 0.5, %v4631_v17  ;;  %v5975_v15 = vld [vmem:[#allocation11 + $0x350] ss:$28 sps:$4 sm:$0xff]   ;;  %4198 = vmatprep.subr.bf16.mxu0 %v5977_v13  ;;  %v5972_v16 = vld [vmem:[#allocation11 + $0x348] ss:$28 sps:$4 sm:$0xff]  }
 0x34b   :  { %v5980_v17 = vld [vmem:[#allocation11 + $0x384] ss:$28 sps:$4 sm:$0xff]  }
 0x34c   :  { %2584 = vmatmul.mubr.bf16.vlgmr.msra.gmra.mrb[4].mxu1 %v2336_v19  ;;  %4199 = vmatpush1.bf16.msra.mxu0 %v5975_v15  ;;  %v6026_v15 = vld [vmem:[#allocation11 + $0x540] ss:$28 sps:$4 sm:$0xff]  }
 0x34d   :  { %2593 = vmatpush1.bf16.msra.mxu1 %v5858_v18  ;;  %2624 = vmatprep.mubr.bf16.mxu1 %v6510_v22  ;;  %v5875_v22 = vld [vmem:[#allocation10 + $0xac] ss:$16 sps:$4 sm:$0xff]  }
 0x34e   :  { %2594 = vmatprep.subr.bf16.mxu1 %v5863_v20  ;;  %v5983_v18 = vld [vmem:[#allocation11 + $0x38c] ss:$28 sps:$4 sm:$0xff]  }
 0x34f   :  { %4209 = vmatprep.subr.bf16.mxu0 %v5983_v18  ;;  %v6037_v18 = vld [vmem:[#allocation11 + $0x584] ss:$28 sps:$4 sm:$0xff]  }
 0x351   :  { %2595 = vmatpush1.bf16.msra.mxu1 %v5861_v21 }
 0x352   :  { %v6203_v24 = vpop.eup %6202  ;;  %2596 = vmatprep.subr.bf16.mxu1 %v5866_v11 }
 0x353   :  { %v4627_v32 = vmul.f32 0.6931472, %v6203_v24 }
 0x355   :  { %2597 = vmatpush1.bf16.msra.mxu1 %v5864_v23  ;;  %v4628_v33 = vsub.f32 0.0, %v4627_v32 }
 0x356   :  { %2598 = vmatprep.subr.bf16.mxu1 %v5869_v25 }
 0x357   :  { %v6730_v36 = vadd.f32 %v4632_v34, %v4628_v33 }
 0x359   :  { %2599 = vmatpush1.bf16.msra.mxu1 %v5867_v29 }
 0x35a   :  { %2600 = vmatprep.subr.bf16.mxu1 %v5872_v35 }
 0x35d   :  { %2601 = vmatpush1.bf16.msra.mxu1 %v5870_v37  ;;  %v5978_v37 = vld [vmem:[#allocation11 + $0x380] ss:$28 sps:$4 sm:$0xff]  }
 0x35e   :  { %2602 = vmatprep.subr.bf16.mxu1 %v5875_v22  ;;  %v5981_v22 = vld [vmem:[#allocation11 + $0x388] ss:$28 sps:$4 sm:$0xff]  }
 0x361   :  { %2603 = vmatpush1.bf16.msra.mxu1 %v5873_v38 }
 0x362   :  { %2604 = vmatprep.subr.bf16.mxu1 %v5878_v39  ;;  %v5986_v39 = vld [vmem:[#allocation11 + $0x3bc] ss:$28 sps:$4 sm:$0xff]  }
 0x365   :  { %2605 = vmatpush1.bf16.msra.mxu1 %v5876_v40  ;;  %v5989_v40 = vld [vmem:[#allocation11 + $0x3c4] ss:$28 sps:$4 sm:$0xff]  }
 0x366   :  { %2606 = vmatprep.subr.bf16.mxu1 %v5881_v41  ;;  %v5984_v41 = vld [vmem:[#allocation11 + $0x3b8] ss:$28 sps:$4 sm:$0xff]  }
 0x369   :  { %2607 = vmatpush1.bf16.msra.mxu1 %v5879_v42  ;;  %v5987_v42 = vld [vmem:[#allocation11 + $0x3c0] ss:$28 sps:$4 sm:$0xff]  }
 0x36a   :  { %4086 = vmatprep.subr.bf16.mxu1 %v5884_v43  ;;  %v5992_v43 = vld [vmem:[#allocation11 + $0x3f4] ss:$28 sps:$4 sm:$0xff]  }
 0x36c   :  { %2625 = vmatmul.mubr.bf16.vlgmr.msra.gmra.mrb[8].mxu1 %v2336_v19  ;;  %v6735_v19 = vld [vmem:[%s6887_s7] sm:$0xf] }
 0x36d   :  { %4087 = vmatpush1.bf16.msra.mxu1 %v5882_v44  ;;  %v2374_v20 = vrot.slane %v6735_v19, %v6697_v28  ;;  %v2378_v21 = vrot.slane %v6735_v19, %v6705_v30  ;;  %v5995_v44 = vld [vmem:[#allocation11 + $0x3fc] ss:$28 sps:$4 sm:$0xff]  }
 0x36e   :  { %4088 = vmatprep.subr.bf16.mxu1 %v5890_v45  ;;  %v5990_v45 = vld [vmem:[#allocation11 + $0x3f0] ss:$28 sps:$4 sm:$0xff]  }
 0x371   :  { %4089 = vmatpush1.bf16.msra.mxu1 %v5888_v46  ;;  %v5993_v46 = vld [vmem:[#allocation11 + $0x3f8] ss:$28 sps:$4 sm:$0xff]  }
 0x372   :  { %4090 = vmatprep.subr.bf16.mxu1 %v5896_v47  ;;  %v5998_v47 = vld [vmem:[#allocation11 + $0x42c] ss:$28 sps:$4 sm:$0xff]  }
 0x375   :  { %4091 = vmatpush1.bf16.msra.mxu1 %v5894_v48  ;;  %v6001_v48 = vld [vmem:[#allocation11 + $0x434] ss:$28 sps:$4 sm:$0xff]  }
 0x376   :  { %4092 = vmatprep.subr.bf16.mxu1 %v5902_v49  ;;  %v5996_v49 = vld [vmem:[#allocation11 + $0x428] ss:$28 sps:$4 sm:$0xff]  }
 0x379   :  { %4093 = vmatpush1.bf16.msra.mxu1 %v5900_v50  ;;  %v5999_v50 = vld [vmem:[#allocation11 + $0x430] ss:$28 sps:$4 sm:$0xff]  }
 0x37a   :  { %4094 = vmatprep.subr.bf16.mxu1 %v5908_v51  ;;  %v6004_v51 = vld [vmem:[#allocation11 + $0x464] ss:$28 sps:$4 sm:$0xff]  }
 0x37d   :  { %4095 = vmatpush1.bf16.msra.mxu1 %v5906_v52  ;;  %v6007_v52 = vld [vmem:[#allocation11 + $0x46c] ss:$28 sps:$4 sm:$0xff]  }
 0x37e   :  { %4096 = vmatprep.subr.bf16.mxu1 %v5914_v53  ;;  %v6002_v53 = vld [vmem:[#allocation11 + $0x460] ss:$28 sps:$4 sm:$0xff]  }
 0x381   :  { %4097 = vmatpush1.bf16.msra.mxu1 %v5912_v54  ;;  %v6005_v54 = vld [vmem:[#allocation11 + $0x468] ss:$28 sps:$4 sm:$0xff]  }
 0x382   :  { %4098 = vmatprep.subr.bf16.mxu1 %v5920_v55  ;;  %v6010_v55 = vld [vmem:[#allocation11 + $0x49c] ss:$28 sps:$4 sm:$0xff]  }
 0x385   :  { %4099 = vmatpush1.bf16.msra.mxu1 %v5918_v56  ;;  %v6013_v56 = vld [vmem:[#allocation11 + $0x4a4] ss:$28 sps:$4 sm:$0xff]  }
 0x386   :  { %4100 = vmatprep.subr.bf16.mxu1 %v5926_v57  ;;  %v6008_v57 = vld [vmem:[#allocation11 + $0x498] ss:$28 sps:$4 sm:$0xff]  }
 0x389   :  { %4101 = vmatpush1.bf16.msra.mxu1 %v5924_v58  ;;  %v6011_v58 = vld [vmem:[#allocation11 + $0x4a0] ss:$28 sps:$4 sm:$0xff]  }
 0x38a   :  { %4102 = vmatprep.subr.bf16.mxu1 %v5932_v59  ;;  %v6016_v59 = vld [vmem:[#allocation11 + $0x4d4] ss:$28 sps:$4 sm:$0xff]  }
 0x38d   :  { %4103 = vmatpush1.bf16.msra.mxu1 %v5930_v60  ;;  %v6019_v60 = vld [vmem:[#allocation11 + $0x4dc] ss:$28 sps:$4 sm:$0xff]  }
 0x38e   :  { %4104 = vmatprep.subr.bf16.mxu1 %v5938_v61  ;;  %v2386_v61 = vrot.slane %v6735_v19, %v6708_v31 }
 0x391   :  { %4105 = vmatpush1.bf16.msra.mxu1 %v5936_v62  ;;  %v6014_v62 = vld [vmem:[#allocation11 + $0x4d0] ss:$28 sps:$4 sm:$0xff]  }
 0x392   :  { %4106 = vmatprep.subr.bf16.mxu1 %v5944_v63  ;;  %v6017_v63 = vld [vmem:[#allocation11 + $0x4d8] ss:$28 sps:$4 sm:$0xff]  }
 0x395   :  { %4107 = vmatpush1.bf16.msra.mxu1 %v5942_v0  ;;  %v6022_v0 = vld [vmem:[#allocation11 + $0x50c] ss:$28 sps:$4 sm:$0xff]  }
 0x396   :  { %4108 = vmatprep.subr.bf16.mxu1 %v5950_v1  ;;  %v6025_v1 = vld [vmem:[#allocation11 + $0x514] ss:$28 sps:$4 sm:$0xff]  }
 0x399   :  { %4109 = vmatpush1.bf16.msra.mxu1 %v5948_v2 }
 0x39a   :  { %4110 = vmatprep.subr.bf16.mxu1 %v5956_v3 }
 0x39d   :  { %4111 = vmatpush1.bf16.msra.mxu1 %v5954_v4 }
 0x39e   :  { %4112 = vmatprep.subr.bf16.mxu1 %v5962_v5 }
 0x3a1   :  { %4113 = vmatpush1.bf16.msra.mxu1 %v5960_v6  ;;  %v6020_v6 = vld [vmem:[#allocation11 + $0x508] ss:$28 sps:$4 sm:$0xff]  }
 0x3a2   :  { %4114 = vmatprep.subr.bf16.mxu1 %v5968_v7  ;;  %v6023_v7 = vld [vmem:[#allocation11 + $0x510] ss:$28 sps:$4 sm:$0xff]  }
 0x3a5   :  { %4115 = vmatpush1.bf16.msra.mxu1 %v5966_v10  ;;  %v6031_v10 = vld [vmem:[#allocation11 + $0x54c] ss:$28 sps:$4 sm:$0xff]  }
 0x3a6   :  { %4116 = vmatprep.subr.bf16.mxu1 %v5974_v12 }
 0x3a9   :  { %4117 = vmatpush1.bf16.msra.mxu1 %v5972_v16  ;;  %v6029_v16 = vld [vmem:[#allocation11 + $0x548] ss:$28 sps:$4 sm:$0xff]  }
 0x3aa   :  { %4127 = vmatprep.subr.bf16.mxu1 %v5980_v17  ;;  %v6034_v17 = vld [vmem:[#allocation11 + $0x57c] ss:$28 sps:$4 sm:$0xff]  }
 0x41f   :  { %v2585_v11 = vpop.f32.mrb[4].mxu1 }
 0x420   :  { %v2586_v23 = vadd.f32 %v2585_v11, %v2374_v20  ;;  %v2587_v24 = vpop.f32.mrb[5].mxu1  ;;  %v6032_v20 = vld [vmem:[#allocation11 + $0x578] ss:$28 sps:$4 sm:$0xff]  }
 0x421   :  { %v2588_v25 = vadd.f32 %v2587_v24, %v2378_v21  ;;  %v2589_v32 = vpop.f32.mrb[6].mxu1  ;;  %v6035_v21 = vld [vmem:[#allocation11 + $0x580] ss:$28 sps:$4 sm:$0xff]   ;;  %v6040_v11 = vld [vmem:[#allocation11 + $0x5b4] ss:$28 sps:$4 sm:$0xff]  }
 0x422   :  { %v2633_v29 = vmax.f32 %v2586_v23, 0.0  ;;  %v2590_v33 = vpop.f32.mrb[7].mxu1  ;;  %v6043_v23 = vld [vmem:[#allocation11 + $0x5bc] ss:$28 sps:$4 sm:$0xff]   ;;  %v6038_v24 = vld [vmem:[#allocation11 + $0x5b0] ss:$28 sps:$4 sm:$0xff]  }
 0x423   :  { %v2634_v34 = vmax.f32 %v2588_v25, 0.0  ;;  %v6041_v25 = vld [vmem:[#allocation11 + $0x5b8] ss:$28 sps:$4 sm:$0xff]   ;;  %v6046_v32 = vld [vmem:[#allocation11 + $0x5ec] ss:$28 sps:$4 sm:$0xff]  }
 0x424   :  { %v6743_v38 = vpack.c.bf16 %v2633_v29, %v2633_v29  ;;  %v6049_v29 = vld [vmem:[#allocation11 + $0x5f4] ss:$28 sps:$4 sm:$0xff]   ;;  %v6044_v33 = vld [vmem:[#allocation11 + $0x5e8] ss:$28 sps:$4 sm:$0xff]  }
 0x425   :  { %v6741_v35 = vpack.c.bf16 %v2634_v34, %v2634_v34  ;;  %v6047_v34 = vld [vmem:[#allocation11 + $0x5f0] ss:$28 sps:$4 sm:$0xff]  }
 0x427   :  { %4118 = vmatprep.mubr.bf16.mxu1 %v6741_v35  ;;  %4200 = vmatprep.mubr.bf16.mxu0 %v6741_v35 }
 0x428   :  { %4119 = vmatmul.mubr.bf16.vlgmr.msra.gmra.mrb[12].mxu1 %v6743_v38  ;;  %4201 = vmatmul.mubr.bf16.vlgmr.msra.gmra.mrb[8].mxu0 %v6743_v38 }
 0x429   :  { %4128 = vmatpush1.bf16.msra.mxu1 %v5978_v37  ;;  %4210 = vmatpush1.bf16.msra.mxu0 %v5981_v22  ;;  %v6052_v37 = vld [vmem:[#allocation11 + $0x624] ss:$28 sps:$4 sm:$0xff]   ;;  %v6055_v22 = vld [vmem:[#allocation11 + $0x62c] ss:$28 sps:$4 sm:$0xff]  }
 0x42a   :  { %4129 = vmatprep.subr.bf16.mxu1 %v5986_v39  ;;  %4211 = vmatprep.subr.bf16.mxu0 %v5989_v40  ;;  %v6050_v39 = vld [vmem:[#allocation11 + $0x620] ss:$28 sps:$4 sm:$0xff]   ;;  %v6053_v40 = vld [vmem:[#allocation11 + $0x628] ss:$28 sps:$4 sm:$0xff]  }
 0x42d   :  { %4130 = vmatpush1.bf16.msra.mxu1 %v5984_v41  ;;  %4212 = vmatpush1.bf16.msra.mxu0 %v5987_v42  ;;  %v6058_v41 = vld [vmem:[#allocation11 + $0x65c] ss:$28 sps:$4 sm:$0xff]   ;;  %v6061_v42 = vld [vmem:[#allocation11 + $0x664] ss:$28 sps:$4 sm:$0xff]  }
 0x42e   :  { %4131 = vmatprep.subr.bf16.mxu1 %v5992_v43  ;;  %4213 = vmatprep.subr.bf16.mxu0 %v5995_v44  ;;  %v6056_v43 = vld [vmem:[#allocation11 + $0x658] ss:$28 sps:$4 sm:$0xff]   ;;  %v6059_v44 = vld [vmem:[#allocation11 + $0x660] ss:$28 sps:$4 sm:$0xff]  }
 0x431   :  { %4132 = vmatpush1.bf16.msra.mxu1 %v5990_v45  ;;  %4214 = vmatpush1.bf16.msra.mxu0 %v5993_v46  ;;  %v2382_v45 = vrot.slane %v6735_v19, %v6719_v14  ;;  %v6064_v46 = vld [vmem:[#allocation11 + $0x694] ss:$28 sps:$4 sm:$0xff]  }
 0x432   :  { %4133 = vmatprep.subr.bf16.mxu1 %v5998_v47  ;;  %4215 = vmatprep.subr.bf16.mxu0 %v6001_v48  ;;  %v6067_v47 = vld [vmem:[#allocation11 + $0x69c] ss:$28 sps:$4 sm:$0xff]   ;;  %v6062_v48 = vld [vmem:[#allocation11 + $0x690] ss:$28 sps:$4 sm:$0xff]  }
 0x433   :  { %v6076_v19 = vld [vmem:[#allocation11 + $0x14] ss:$28 sps:$4 sm:$0xff]  }
 0x435   :  { %4134 = vmatpush1.bf16.msra.mxu1 %v5996_v49  ;;  %4216 = vmatpush1.bf16.msra.mxu0 %v5999_v50  ;;  %v6065_v49 = vld [vmem:[#allocation11 + $0x698] ss:$28 sps:$4 sm:$0xff]  }
 0x436   :  { %4135 = vmatprep.subr.bf16.mxu1 %v6004_v51  ;;  %4217 = vmatprep.subr.bf16.mxu0 %v6007_v52  ;;  %v6070_v51 = vld [vmem:[#allocation11 + $0x6cc] ss:$28 sps:$4 sm:$0xff]   ;;  %v6073_v52 = vld [vmem:[#allocation11 + $0x6d4] ss:$28 sps:$4 sm:$0xff]  }
 0x439   :  { %4136 = vmatpush1.bf16.msra.mxu1 %v6002_v53  ;;  %4218 = vmatpush1.bf16.msra.mxu0 %v6005_v54  ;;  %v6068_v53 = vld [vmem:[#allocation11 + $0x6c8] ss:$28 sps:$4 sm:$0xff]   ;;  %v6071_v54 = vld [vmem:[#allocation11 + $0x6d0] ss:$28 sps:$4 sm:$0xff]  }
 0x43a   :  { %4137 = vmatprep.subr.bf16.mxu1 %v6010_v55  ;;  %4219 = vmatprep.subr.bf16.mxu0 %v6013_v56  ;;  %v6077_v56 = vld [vmem:[#allocation11 + $0x1d8] ss:$28 sps:$4 sm:$0xff]  }
 0x43d   :  { %4138 = vmatpush1.bf16.msra.mxu1 %v6008_v57  ;;  %4220 = vmatpush1.bf16.msra.mxu0 %v6011_v58  ;;  %v6074_v57 = vld [vmem:[#allocation11 + $0x10] ss:$28 sps:$4 sm:$0xff]  }
 0x43e   :  { %4139 = vmatprep.subr.bf16.mxu1 %v6016_v59  ;;  %4221 = vmatprep.subr.bf16.mxu0 %v6019_v60  ;;  %v6078_v59 = vld [vmem:[#allocation11 + $0x18] ss:$28 sps:$4 sm:$0xff]   ;;  %v6081_v60 = vld [vmem:[#allocation11 + $0x4c] ss:$28 sps:$4 sm:$0xff]  }
 0x43f   :  { %v6751_v2 = vpop.f32.mrb[8].mxu1 }
 0x440   :  { %v2628_v3 = vpop.f32.mrb[9].mxu1  ;;  %v2627_v50 = vadd.f32 %v6751_v2, %v2382_v45  ;;  %v6084_v2 = vld [vmem:[#allocation11 + $0x80] ss:$28 sps:$4 sm:$0xff]   ;;  %v6128_v45 = vld [vmem:[#allocation11 + $0x408] ss:$28 sps:$4 sm:$0xff]  }
 0x441   :  { %v2629_v4 = vadd.f32 %v2628_v3, %v2386_v61  ;;  %v2630_v5 = vpop.f32.mrb[10].mxu1  ;;  %4140 = vmatpush1.bf16.msra.mxu1 %v6014_v62  ;;  %4222 = vmatpush1.bf16.msra.mxu0 %v6017_v63  ;;  %v6082_v61 = vld [vmem:[#allocation11 + $0x210] ss:$28 sps:$4 sm:$0xff]   ;;  %v6079_v62 = vld [vmem:[#allocation11 + $0x48] ss:$28 sps:$4 sm:$0xff]  }
 0x442   :  { %v2631_v8 = vpop.f32.mrb[11].mxu1  ;;  %4141 = vmatprep.subr.bf16.mxu1 %v6022_v0  ;;  %4223 = vmatprep.subr.bf16.mxu0 %v6025_v1  ;;  %v2635_v55 = vmax.f32 %v2627_v50, 0.0  ;;  %v6083_v63 = vld [vmem:[#allocation11 + $0x50] ss:$28 sps:$4 sm:$0xff]   ;;  %v6086_v0 = vld [vmem:[#allocation11 + $0x84] ss:$28 sps:$4 sm:$0xff]  }
 0x443   :  { %v2636_v12 = vmax.f32 %v2629_v4, 0.0  ;;  %v6087_v1 = vld [vmem:[#allocation11 + $0x248] ss:$28 sps:$4 sm:$0xff]   ;;  %v6091_v4 = vld [vmem:[#allocation11 + $0xbc] ss:$28 sps:$4 sm:$0xff]  }
 0x444   :  { %v6760_v58 = vpack.c.bf16 %v2635_v55, %v2635_v55  ;;  %v6088_v3 = vld [vmem:[#allocation11 + $0x88] ss:$28 sps:$4 sm:$0xff]   ;;  %v6092_v5 = vld [vmem:[#allocation11 + $0x280] ss:$28 sps:$4 sm:$0xff]   ;;  %v6096_v8 = vld [vmem:[#allocation11 + $0xf4] ss:$28 sps:$4 sm:$0xff]  }
 0x445   :  { %v6753_v13 = vpack.c.bf16 %v2636_v12, %v2636_v12  ;;  %4142 = vmatpush1.bf16.msra.mxu1 %v6020_v6  ;;  %4224 = vmatpush1.bf16.msra.mxu0 %v6023_v7  ;;  %v6089_v6 = vld [vmem:[#allocation11 + $0xb8] ss:$28 sps:$4 sm:$0xff]   ;;  %v6093_v7 = vld [vmem:[#allocation11 + $0xc0] ss:$28 sps:$4 sm:$0xff]   ;;  %v6101_v12 = vld [vmem:[#allocation11 + $0x12c] ss:$28 sps:$4 sm:$0xff]  }
 0x446   :  { %4143 = vmatprep.subr.bf16.mxu1 %v6028_v9  ;;  %4225 = vmatprep.subr.bf16.mxu0 %v6031_v10  ;;  %v6094_v9 = vld [vmem:[#allocation11 + $0xf0] ss:$28 sps:$4 sm:$0xff]   ;;  %v6098_v10 = vld [vmem:[#allocation11 + $0xf8] ss:$28 sps:$4 sm:$0xff]  }
 0x447   :  { %4159 = vmatprep.mubr.bf16.mxu1 %v6753_v13  ;;  %4241 = vmatprep.mubr.bf16.mxu0 %v6753_v13  ;;  %v6136_v50 = vld [vmem:[#allocation11 + $0x2b4] ss:$28 sps:$4 sm:$0xff]  }
 0x448   :  { %v6142_v55 = vld [vmem:[#allocation11 + $0x670] ss:$28 sps:$4 sm:$0xff]  }
 0x449   :  { %4144 = vmatpush1.bf16.msra.mxu1 %v6026_v15  ;;  %4226 = vmatpush1.bf16.msra.mxu0 %v6029_v16  ;;  %v6102_v15 = vld [vmem:[#allocation11 + $0x2f0] ss:$28 sps:$4 sm:$0xff]   ;;  %v6099_v16 = vld [vmem:[#allocation11 + $0x128] ss:$28 sps:$4 sm:$0xff]  }
 0x44a   :  { %4145 = vmatprep.subr.bf16.mxu1 %v6034_v17  ;;  %4227 = vmatprep.subr.bf16.mxu0 %v6037_v18  ;;  %v6103_v17 = vld [vmem:[#allocation11 + $0x130] ss:$28 sps:$4 sm:$0xff]   ;;  %v6106_v18 = vld [vmem:[#allocation11 + $0x164] ss:$28 sps:$4 sm:$0xff]  }
 0x44d   :  { %4146 = vmatpush1.bf16.msra.mxu1 %v6032_v20  ;;  %4228 = vmatpush1.bf16.msra.mxu0 %v6035_v21  ;;  %v6107_v20 = vld [vmem:[#allocation11 + $0x328] ss:$28 sps:$4 sm:$0xff]   ;;  %v6104_v21 = vld [vmem:[#allocation11 + $0x160] ss:$28 sps:$4 sm:$0xff]  }
 0x44e   :  { %4147 = vmatprep.subr.bf16.mxu1 %v6040_v11  ;;  %4229 = vmatprep.subr.bf16.mxu0 %v6043_v23  ;;  %v6108_v11 = vld [vmem:[#allocation11 + $0x168] ss:$28 sps:$4 sm:$0xff]   ;;  %v6111_v23 = vld [vmem:[#allocation11 + $0x19c] ss:$28 sps:$4 sm:$0xff]  }
 0x451   :  { %4148 = vmatpush1.bf16.msra.mxu1 %v6038_v24  ;;  %4230 = vmatpush1.bf16.msra.mxu0 %v6041_v25  ;;  %v6112_v24 = vld [vmem:[#allocation11 + $0x360] ss:$28 sps:$4 sm:$0xff]   ;;  %v6109_v25 = vld [vmem:[#allocation11 + $0x198] ss:$28 sps:$4 sm:$0xff]  }
 0x452   :  { %4149 = vmatprep.subr.bf16.mxu1 %v6046_v32  ;;  %4231 = vmatprep.subr.bf16.mxu0 %v6049_v29  ;;  %v6113_v32 = vld [vmem:[#allocation11 + $0x1a0] ss:$28 sps:$4 sm:$0xff]   ;;  %v6116_v29 = vld [vmem:[#allocation11 + $0x1d4] ss:$28 sps:$4 sm:$0xff]  }
 0x455   :  { %4150 = vmatpush1.bf16.msra.mxu1 %v6044_v33  ;;  %4232 = vmatpush1.bf16.msra.mxu0 %v6047_v34  ;;  %v6117_v33 = vld [vmem:[#allocation11 + $0x558] ss:$28 sps:$4 sm:$0xff]   ;;  %v6114_v34 = vld [vmem:[#allocation11 + $0x1d0] ss:$28 sps:$4 sm:$0xff]  }
 0x456   :  { %4151 = vmatprep.subr.bf16.mxu1 %v6052_v37  ;;  %4233 = vmatprep.subr.bf16.mxu0 %v6055_v22  ;;  %v6118_v37 = vld [vmem:[#allocation11 + $0x398] ss:$28 sps:$4 sm:$0xff]   ;;  %v6121_v22 = vld [vmem:[#allocation11 + $0x20c] ss:$28 sps:$4 sm:$0xff]  }
 0x459   :  { %4152 = vmatpush1.bf16.msra.mxu1 %v6050_v39  ;;  %4234 = vmatpush1.bf16.msra.mxu0 %v6053_v40  ;;  %v6122_v39 = vld [vmem:[#allocation11 + $0x590] ss:$28 sps:$4 sm:$0xff]   ;;  %v6119_v40 = vld [vmem:[#allocation11 + $0x208] ss:$28 sps:$4 sm:$0xff]  }
 0x45a   :  { %4153 = vmatprep.subr.bf16.mxu1 %v6058_v41  ;;  %4235 = vmatprep.subr.bf16.mxu0 %v6061_v42  ;;  %v6123_v41 = vld [vmem:[#allocation11 + $0x3d0] ss:$28 sps:$4 sm:$0xff]   ;;  %v6126_v42 = vld [vmem:[#allocation11 + $0x244] ss:$28 sps:$4 sm:$0xff]  }
 0x45d   :  { %4154 = vmatpush1.bf16.msra.mxu1 %v6056_v43  ;;  %4236 = vmatpush1.bf16.msra.mxu0 %v6059_v44  ;;  %v6127_v43 = vld [vmem:[#allocation11 + $0x5c8] ss:$28 sps:$4 sm:$0xff]   ;;  %v6124_v44 = vld [vmem:[#allocation11 + $0x240] ss:$28 sps:$4 sm:$0xff]  }
 0x45e   :  { %4155 = vmatprep.subr.bf16.mxu1 %v6064_v46  ;;  %4237 = vmatprep.subr.bf16.mxu0 %v6067_v47  ;;  %v6131_v46 = vld [vmem:[#allocation11 + $0x27c] ss:$28 sps:$4 sm:$0xff]  }
 0x45f   :  { %v6132_v47 = vld [vmem:[#allocation11 + $0x600] ss:$28 sps:$4 sm:$0xff]  }
 0x461   :  { %4156 = vmatpush1.bf16.msra.mxu1 %v6062_v48  ;;  %4238 = vmatpush1.bf16.msra.mxu0 %v6065_v49  ;;  %v6129_v48 = vld [vmem:[#allocation11 + $0x278] ss:$28 sps:$4 sm:$0xff]   ;;  %v6133_v49 = vld [vmem:[#allocation11 + $0x440] ss:$28 sps:$4 sm:$0xff]  }
 0x462   :  { %4157 = vmatprep.subr.bf16.mxu1 %v6070_v51  ;;  %4239 = vmatprep.subr.bf16.mxu0 %v6073_v52  ;;  %v6137_v51 = vld [vmem:[#allocation11 + $0x638] ss:$28 sps:$4 sm:$0xff]   ;;  %v6134_v52 = vld [vmem:[#allocation11 + $0x2b0] ss:$28 sps:$4 sm:$0xff]  }
 0x465   :  { %4158 = vmatpush1.bf16.msra.mxu1 %v6068_v53  ;;  %4240 = vmatpush1.bf16.msra.mxu0 %v6071_v54  ;;  %v6138_v53 = vld [vmem:[#allocation11 + $0x478] ss:$28 sps:$4 sm:$0xff]   ;;  %v6141_v54 = vld [vmem:[#allocation11 + $0x2ec] ss:$28 sps:$4 sm:$0xff]  }
 0x466   :  { %4250 = vmatprep.subr.bf16.mxu1 %v6076_v19  ;;  %5278 = vmatprep.subr.bf16.mxu0 %v6077_v56  ;;  %v6139_v19 = vld [vmem:[#allocation11 + $0x2e8] ss:$28 sps:$4 sm:$0xff]   ;;  %v6143_v56 = vld [vmem:[#allocation11 + $0x4b0] ss:$28 sps:$4 sm:$0xff]  }
 0x468   :  { %4160 = vmatmul.mubr.bf16.vlgmr.msra.gmra.mrb[12].mxu1 %v6760_v58  ;;  %4242 = vmatmul.mubr.bf16.vlgmr.msra.gmra.mrb[8].mxu0 %v6760_v58 }
 0x469   :  { %4251 = vmatpush1.bf16.msra.mxu1 %v6074_v57  ;;  %4282 = vmatprep.mubr.bf16.mxu1 %v6741_v35  ;;  %v6146_v57 = vld [vmem:[#allocation11 + $0x324] ss:$28 sps:$4 sm:$0xff]  }
 0x46a   :  { %5279 = vmatpush3.bf16.msra.mxu0 %v6078_v59  ;;  %4364 = vmatprep.mubr.bf16.mxu0 %v6741_v35  ;;  %v6097_v35 = vld [vmem:[#allocation11 + $0x2b8] ss:$28 sps:$4 sm:$0xff]   ;;  %v6147_v59 = vld [vmem:[#allocation11 + $0x6a8] ss:$28 sps:$4 sm:$0xff]  }
 0x46b   :  { %4252 = vmatprep.subr.bf16.mxu1 %v6081_v60  ;;  %5280 = vmatprep.subr.bf16.mxu0 %v6082_v61  ;;  %v6144_v60 = vld [vmem:[#allocation11 + $0x320] ss:$28 sps:$4 sm:$0xff]   ;;  %v6148_v61 = vld [vmem:[#allocation11 + $0x4e8] ss:$28 sps:$4 sm:$0xff]  }
 0x46d   :  { %4253 = vmatpush1.bf16.msra.mxu1 %v6079_v62  ;;  %v6151_v62 = vld [vmem:[#allocation11 + $0x35c] ss:$28 sps:$4 sm:$0xff]  }
 0x46e   :  { %5281 = vmatpush3.bf16.msra.mxu0 %v6083_v63  ;;  %4254 = vmatprep.subr.bf16.mxu1 %v6086_v0  ;;  %v6152_v63 = vld [vmem:[#allocation11 + $0x6e0] ss:$28 sps:$4 sm:$0xff]   ;;  %v6149_v0 = vld [vmem:[#allocation11 + $0x358] ss:$28 sps:$4 sm:$0xff]  }
 0x46f   :  { %5282 = vmatprep.subr.bf16.mxu0 %v6087_v1  ;;  %v6153_v1 = vld [vmem:[#allocation11 + $0x520] ss:$28 sps:$4 sm:$0xff]  }
 0x471   :  { %4255 = vmatpush1.bf16.msra.mxu1 %v6084_v2  ;;  %v6156_v2 = vld [vmem:[#allocation11 + $0x394] ss:$28 sps:$4 sm:$0xff]  }
 0x472   :  { %5283 = vmatpush3.bf16.msra.mxu0 %v6088_v3  ;;  %4256 = vmatprep.subr.bf16.mxu1 %v6091_v4  ;;  %v6154_v3 = vld [vmem:[#allocation11 + $0x390] ss:$28 sps:$4 sm:$0xff]  }
 0x473   :  { %5284 = vmatprep.subr.bf16.mxu0 %v6092_v5  ;;  %v6159_v4 = vld [vmem:[#allocation11 + $0x3cc] ss:$28 sps:$4 sm:$0xff]  }
 0x474   :  { %v6157_v5 = vld [vmem:[#allocation11 + $0x3c8] ss:$28 sps:$4 sm:$0xff]  }
 0x475   :  { %4257 = vmatpush1.bf16.msra.mxu1 %v6089_v6  ;;  %v6162_v6 = vld [vmem:[#allocation11 + $0x404] ss:$28 sps:$4 sm:$0xff]  }
 0x476   :  { %5285 = vmatpush3.bf16.msra.mxu0 %v6093_v7  ;;  %4258 = vmatprep.subr.bf16.mxu1 %v6096_v8  ;;  %v6160_v7 = vld [vmem:[#allocation11 + $0x400] ss:$28 sps:$4 sm:$0xff]  }
 0x477   :  { %5286 = vmatprep.subr.bf16.mxu0 %v6097_v35  ;;  %v6165_v8 = vld [vmem:[#allocation11 + $0x43c] ss:$28 sps:$4 sm:$0xff]  }
 0x478   :  { %v6163_v35 = vld [vmem:[#allocation11 + $0x438] ss:$28 sps:$4 sm:$0xff]  }
 0x479   :  { %4259 = vmatpush1.bf16.msra.mxu1 %v6094_v9  ;;  %v6168_v9 = vld [vmem:[#allocation11 + $0x474] ss:$28 sps:$4 sm:$0xff]  }
 0x47a   :  { %5287 = vmatpush3.bf16.msra.mxu0 %v6098_v10  ;;  %4260 = vmatprep.subr.bf16.mxu1 %v6101_v12  ;;  %v6166_v10 = vld [vmem:[#allocation11 + $0x470] ss:$28 sps:$4 sm:$0xff]   ;;  %v6169_v12 = vld [vmem:[#allocation11 + $0x4a8] ss:$28 sps:$4 sm:$0xff]  }
 0x47b   :  { %5288 = vmatprep.subr.bf16.mxu0 %v6102_v15  ;;  %v6174_v15 = vld [vmem:[#allocation11 + $0x4e4] ss:$28 sps:$4 sm:$0xff]  }
 0x47d   :  { %4261 = vmatpush1.bf16.msra.mxu1 %v6099_v16  ;;  %v6177_v16 = vld [vmem:[#allocation11 + $0x51c] ss:$28 sps:$4 sm:$0xff]  }
 0x47e   :  { %5289 = vmatpush3.bf16.msra.mxu0 %v6103_v17  ;;  %4262 = vmatprep.subr.bf16.mxu1 %v6106_v18  ;;  %v6175_v17 = vld [vmem:[#allocation11 + $0x518] ss:$28 sps:$4 sm:$0xff]  }
 0x47f   :  { %5290 = vmatprep.subr.bf16.mxu0 %v6107_v20  ;;  %v6180_v18 = vld [vmem:[#allocation11 + $0x554] ss:$28 sps:$4 sm:$0xff]  }
 0x480   :  { %v6178_v20 = vld [vmem:[#allocation11 + $0x550] ss:$28 sps:$4 sm:$0xff]  }
 0x481   :  { %4263 = vmatpush1.bf16.msra.mxu1 %v6104_v21  ;;  %v6183_v21 = vld [vmem:[#allocation11 + $0x58c] ss:$28 sps:$4 sm:$0xff]  }
 0x482   :  { %5291 = vmatpush3.bf16.msra.mxu0 %v6108_v11  ;;  %4264 = vmatprep.subr.bf16.mxu1 %v6111_v23  ;;  %v6181_v11 = vld [vmem:[#allocation11 + $0x588] ss:$28 sps:$4 sm:$0xff]  }
 0x483   :  { %5292 = vmatprep.subr.bf16.mxu0 %v6112_v24  ;;  %v6186_v23 = vld [vmem:[#allocation11 + $0x5c4] ss:$28 sps:$4 sm:$0xff]  }
 0x484   :  { %v6184_v24 = vld [vmem:[#allocation11 + $0x5c0] ss:$28 sps:$4 sm:$0xff]  }
 0x485   :  { %4265 = vmatpush1.bf16.msra.mxu1 %v6109_v25  ;;  %v6189_v25 = vld [vmem:[#allocation11 + $0x5fc] ss:$28 sps:$4 sm:$0xff]  }
 0x486   :  { %5293 = vmatpush3.bf16.msra.mxu0 %v6113_v32  ;;  %4266 = vmatprep.subr.bf16.mxu1 %v6116_v29  ;;  %v6187_v32 = vld [vmem:[#allocation11 + $0x5f8] ss:$28 sps:$4 sm:$0xff]  }
 0x487   :  { %5300 = vmatprep.subr.bf16.mxu0 %v6117_v33  ;;  %v6192_v29 = vld [vmem:[#allocation11 + $0x634] ss:$28 sps:$4 sm:$0xff]  }
 0x488   :  { %v6190_v33 = vld [vmem:[#allocation11 + $0x630] ss:$28 sps:$4 sm:$0xff]  }
 0x489   :  { %4365 = vmatmul.mubr.bf16.vlgmr.msra.gmra.mrb[12].mxu0 %v6743_v38  ;;  %4267 = vmatpush1.bf16.msra.mxu1 %v6114_v34  ;;  %v6195_v34 = vld [vmem:[#allocation11 + $0x66c] ss:$28 sps:$4 sm:$0xff]  }
 0x48a   :  { %5301 = vmatpush3.bf16.msra.mxu0 %v6118_v37  ;;  %4404 = vmatprep.mubr.bf16.mxu0 %v6753_v13  ;;  %v6193_v37 = vld [vmem:[#allocation11 + $0x668] ss:$28 sps:$4 sm:$0xff]  }
 0x48b   :  { %4268 = vmatprep.subr.bf16.mxu1 %v6121_v22  ;;  %5302 = vmatprep.subr.bf16.mxu0 %v6122_v39  ;;  %v6198_v22 = vld [vmem:[#allocation11 + $0x6a4] ss:$28 sps:$4 sm:$0xff]  }
 0x48c   :  { %v6196_v39 = vld [vmem:[#allocation11 + $0x6a0] ss:$28 sps:$4 sm:$0xff]  }
 0x48d   :  { %4269 = vmatpush1.bf16.msra.mxu1 %v6119_v40  ;;  %v6201_v40 = vld [vmem:[#allocation11 + $0x6dc] ss:$28 sps:$4 sm:$0xff]  }
 0x48e   :  { %5303 = vmatpush3.bf16.msra.mxu0 %v6123_v41  ;;  %4270 = vmatprep.subr.bf16.mxu1 %v6126_v42  ;;  %v6199_v41 = vld [vmem:[#allocation11 + $0x6d8] ss:$28 sps:$4 sm:$0xff]   ;;  %v6775_v42 = vld [vmem:[%s6889_s9] sm:$0xff]  ;;  %s6511_s9 = smov [#allocation14]  }
 0x48f   :  { %5304 = vmatprep.subr.bf16.mxu0 %v6127_v43  ;;  %v2902_v43 = vrot.slane %v6775_v42, %v6697_v28  ;;  %s4668_s1 = sshll.u32 %s6511_s9, 4  ;;  %s4669_s1 = int_to_ptr.vmem [resolvable:$true] %s4668_s1 }
 0x490   :  { %s6396_s2 = scalar_lea.vmem %s4669_s1, 128  ;;  %p6401_p7 = scmp.lt.s32.totalorder %s4669_s1, %s4669_s1 }
 0x491   :  { %4271 = vmatpush1.bf16.msra.mxu1 %v6124_v44  ;;  %v2910_v44 = vrot.slane %v6775_v42, %v6719_v14  ;;  %p6397_p6 = scmp.ne.s32.totalorder %s4669_s1, %s6396_s2  ;;  %p6402_p8 = scmp.lt.s32.totalorder %s6396_s2, %s6396_s2 }
 0x492   :  { %5305 = vmatpush3.bf16.msra.mxu0 %v6128_v45  ;;  %4272 = vmatprep.subr.bf16.mxu1 %v6131_v46  ;;  %v2906_v45 = vrot.slane %v6775_v42, %v6705_v30  ;;  %v6260_v46 = vld [vmem:[#allocation2] sm:$0xff] }
 0x493   :  { %5306 = vmatprep.subr.bf16.mxu0 %v6132_v47  ;;  %v4487_v47 = vunpack.c.l.bf16 %v6260_v46  ;;  %v4488_v28 = vunpack.c.h.bf16 %v6260_v46  ;;  %p6403_p9 = por %p6402_p8, %p6401_p7 }
 0x495   :  { %4273 = vmatpush1.bf16.msra.mxu1 %v6129_v48  ;;  %v2914_v48 = vrot.slane %v6775_v42, %v6708_v31  ;;  %p6404_p10 = pnand %p6403_p9, %p6397_p6 }
 0x496   :  { %5307 = vmatpush3.bf16.msra.mxu0 %v6133_v49  ;;  %4274 = vmatprep.subr.bf16.mxu1 %v6136_v50 }
 0x497   :  { %5308 = vmatprep.subr.bf16.mxu0 %v6137_v51 }
 0x499   :  { %4275 = vmatpush1.bf16.msra.mxu1 %v6134_v52 }
 0x49a   :  { %5309 = vmatpush3.bf16.msra.mxu0 %v6138_v53  ;;  %4276 = vmatprep.subr.bf16.mxu1 %v6141_v54 }
 0x49b   :  { %5310 = vmatprep.subr.bf16.mxu0 %v6142_v55 }
 0x49d   :  { %4277 = vmatpush1.bf16.msra.mxu1 %v6139_v19 }
 0x49e   :  { %5311 = vmatpush3.bf16.msra.mxu0 %v6143_v56  ;;  %4278 = vmatprep.subr.bf16.mxu1 %v6146_v57 }
 0x49f   :  { %5312 = vmatprep.subr.bf16.mxu0 %v6147_v59 }
 0x4a1   :  { %4279 = vmatpush1.bf16.msra.mxu1 %v6144_v60 }
 0x4a2   :  { %5313 = vmatpush3.bf16.msra.mxu0 %v6148_v61  ;;  %4280 = vmatprep.subr.bf16.mxu1 %v6151_v62 }
 0x4a3   :  { %5314 = vmatprep.subr.bf16.mxu0 %v6152_v63 }
 0x4a5   :  { %4281 = vmatpush1.bf16.msra.mxu1 %v6149_v0 }
 0x4a6   :  { %5315 = vmatpush3.bf16.msra.mxu0 %v6153_v1  ;;  %4291 = vmatprep.subr.bf16.mxu1 %v6156_v2 }
 0x4a8   :  { %4283 = vmatmul.mubr.bf16.vlgmr.msra.gmra.mrb[16].mxu1 %v6743_v38  ;;  %v6171_v38 = vld [vmem:[#allocation11 + $0x4ac] ss:$28 sps:$4 sm:$0xff]  }
 0x4a9   :  { %4405 = vmatmul.mubr.bf16.vlgmr.msra.gmra.mrb[16].mxu0 %v6760_v58  ;;  %4292 = vmatpush1.bf16.msra.mxu1 %v6154_v3 }
 0x4aa   :  { %4323 = vmatprep.mubr.bf16.mxu1 %v6753_v13  ;;  %4293 = vmatprep.subr.bf16.mxu1 %v6159_v4  ;;  %v6172_v13 = vld [vmem:[#allocation11 + $0x4e0] ss:$28 sps:$4 sm:$0xff]  }
 0x4ad   :  { %4294 = vmatpush1.bf16.msra.mxu1 %v6157_v5 }
 0x4ae   :  { %4295 = vmatprep.subr.bf16.mxu1 %v6162_v6 }
 0x4b1   :  { %4296 = vmatpush1.bf16.msra.mxu1 %v6160_v7 }
 0x4b2   :  { %4297 = vmatprep.subr.bf16.mxu1 %v6165_v8 }
 0x4b5   :  { %4298 = vmatpush1.bf16.msra.mxu1 %v6163_v35 }
 0x4b6   :  { %4299 = vmatprep.subr.bf16.mxu1 %v6168_v9 }
 0x4b9   :  { %4300 = vmatpush1.bf16.msra.mxu1 %v6166_v10 }
 0x4ba   :  { %4301 = vmatprep.subr.bf16.mxu1 %v6171_v38 }
 0x4bd   :  { %4302 = vmatpush1.bf16.msra.mxu1 %v6169_v12 }
 0x4be   :  { %4303 = vmatprep.subr.bf16.mxu1 %v6174_v15 }
 0x4c1   :  { %4304 = vmatpush1.bf16.msra.mxu1 %v6172_v13 }
 0x4c2   :  { %4305 = vmatprep.subr.bf16.mxu1 %v6177_v16 }
 0x4c5   :  { %4306 = vmatpush1.bf16.msra.mxu1 %v6175_v17 }
 0x4c6   :  { %4307 = vmatprep.subr.bf16.mxu1 %v6180_v18 }
 0x4c9   :  { %4308 = vmatpush1.bf16.msra.mxu1 %v6178_v20 }
 0x4ca   :  { %4309 = vmatprep.subr.bf16.mxu1 %v6183_v21 }
 0x4cd   :  { %4310 = vmatpush1.bf16.msra.mxu1 %v6181_v11 }
 0x4ce   :  { %4311 = vmatprep.subr.bf16.mxu1 %v6186_v23 }
 0x4d1   :  { %4312 = vmatpush1.bf16.msra.mxu1 %v6184_v24 }
 0x4d2   :  { %4313 = vmatprep.subr.bf16.mxu1 %v6189_v25 }
 0x4d5   :  { %4314 = vmatpush1.bf16.msra.mxu1 %v6187_v32 }
 0x4d6   :  { %4315 = vmatprep.subr.bf16.mxu1 %v6192_v29 }
 0x4d9   :  { %4316 = vmatpush1.bf16.msra.mxu1 %v6190_v33 }
 0x4da   :  { %4317 = vmatprep.subr.bf16.mxu1 %v6195_v34 }
 0x4dd   :  { %4318 = vmatpush1.bf16.msra.mxu1 %v6193_v37 }
 0x4de   :  { %4319 = vmatprep.subr.bf16.mxu1 %v6198_v22 }
 0x4e1   :  { %4320 = vmatpush1.bf16.msra.mxu1 %v6196_v39 }
 0x4e2   :  { %4321 = vmatprep.subr.bf16.mxu1 %v6201_v40 }
 0x4e5   :  { %4322 = vmatpush1.bf16.msra.mxu1 %v6199_v41 }
 0x4e8   :  { %4324 = vmatmul.mubr.bf16.vlgmr.msra.gmra.mrb[16].mxu1 %v6760_v58 }
 0x53b   :  { %v4161_v58 = vpop.f32.mrb[12].mxu1  ;;  %v4243_v49 = vpop.f32.mrb[8].mxu0 }
 0x53c   :  { %v6785_v50 = vadd.f32 %v4161_v58, %v2902_v43  ;;  %v6787_v51 = vadd.f32 %v4243_v49, %v2910_v44  ;;  %v4163_v52 = vpop.f32.mrb[13].mxu1  ;;  %v4245_v53 = vpop.f32.mrb[9].mxu0 }
 0x53d   :  { %v6789_v54 = vadd.f32 %v4163_v52, %v2906_v45  ;;  %v4165_v14 = vpop.f32.mrb[14].mxu1  ;;  %v4247_v55 = vpop.f32.mrb[10].mxu0  ;;  %v6796_v31 = vadd.f32 %v4245_v53, %v2914_v48 }
 0x53e   :  { %v5262_v30 = vmul.f32 -1.442695, %v6785_v50  ;;  %v4522_v19 = vand.u32 2147483647, %v6785_v50  ;;  %v6794_v56 = vmul.f32 %v6785_v50, %v4487_v47  ;;  %v4166_v57 = vpop.f32.mrb[15].mxu1  ;;  %v4248_v61 = vpop.f32.mrb[11].mxu0 }
 0x53f   :  { %v5264_v59 = vmul.f32 -1.442695, %v6787_v51  ;;  %v4524_v60 = vand.u32 2147483647, %v6787_v51  ;;  %v5263_v63 = vmul.f32 -1.442695, %v6789_v54  ;;  %v6803_v2 = vmul.f32 %v6789_v54, %v4488_v28 }
 0x540   :  { %6204 = vpow2.f32 %v5262_v30  ;;  %v4529_v62 = vsub.f32 0.0, %v4522_v19  ;;  %v4523_v1 = vand.u32 2147483647, %v6789_v54  ;;  %v5265_v4 = vmul.f32 -1.442695, %v6796_v31  ;;  %v6261_v28 = vld [vmem:[#allocation2 + $0x8] sm:$0xff] }
 0x541   :  { %6206 = vpow2.f32 %v5264_v59  ;;  %v4531_v0 = vsub.f32 0.0, %v4524_v60  ;;  %v4525_v7 = vand.u32 2147483647, %v6796_v31  ;;  %v4515_v41 = vmax.f32 %v6785_v50, 0.0 }
 0x542   :  { %v4536_v3 = vmul.f32 1.442695, %v4529_v62  ;;  %6208 = vpow2.f32 %v5263_v63  ;;  %v4530_v6 = vsub.f32 0.0, %v4523_v1  ;;  %v4489_v14 = vunpack.c.l.bf16 %v6261_v28 }
 0x543   :  { %v4540_v5 = vmul.f32 1.442695, %v4531_v0  ;;  %v4532_v35 = vsub.f32 0.0, %v4525_v7  ;;  %v4517_v55 = vmax.f32 %v6787_v51, 0.0  ;;  %v4516_v30 = vmax.f32 %v6789_v54, 0.0 }
 0x544   :  { %6210 = vpow2.f32 %v4536_v3  ;;  %v4538_v8 = vmul.f32 1.442695, %v4530_v6  ;;  %v4490_v60 = vunpack.c.h.bf16 %v6261_v28  ;;  %v4518_v63 = vmax.f32 %v6796_v31, 0.0 }
 0x545   :  { %6212 = vpow2.f32 %v4540_v5  ;;  %v4542_v9 = vmul.f32 1.442695, %v4532_v35  ;;  %v4580_v1 = vmul.f32 %v6787_v51, %v4489_v14 }
 0x546   :  { %6214 = vpow2.f32 %v5265_v4  ;;  %v4581_v5 = vmul.f32 %v6796_v31, %v4490_v60 }
 0x547   :  { %6216 = vpow2.f32 %v4538_v8 }
 0x548   :  { %6218 = vpow2.f32 %v4542_v9 }
 0x54a   :  { %v6205_v10 = vpop.eup %6204 }
 0x54b   :  { %v6207_v38 = vpop.eup %6206  ;;  %v4433_v12 = vadd.f32 1.0, %v6205_v10 }
 0x54c   :  { %v6209_v15 = vpop.eup %6208  ;;  %v4435_v13 = vadd.f32 1.0, %v6207_v38 }
 0x54d   :  { %6220 = vrcp.f32 %v4433_v12  ;;  %v4434_v16 = vadd.f32 1.0, %v6209_v15 }
 0x54e   :  { %v6211_v17 = vpop.eup %6210 }
 0x54f   :  { %v6213_v18 = vpop.eup %6212  ;;  %v4550_v20 = vadd.f32 1.0, %v6211_v17  ;;  %6222 = vrcp.f32 %v4434_v16 }
 0x550   :  { %v6215_v21 = vpop.eup %6214  ;;  %6224 = vrcp.f32 %v4435_v13  ;;  %v4552_v11 = vadd.f32 1.0, %v6213_v18 }
 0x551   :  { %v6217_v23 = vpop.eup %6216  ;;  %6226 = vlog2.f32 %v4550_v20  ;;  %v4436_v24 = vadd.f32 1.0, %v6215_v21 }
 0x552   :  { %6228 = vlog2.f32 %v4552_v11  ;;  %v4551_v25 = vadd.f32 1.0, %v6217_v23  ;;  %v6219_v32 = vpop.eup %6218  ;;  %v2917_v23 = vsub.s32 4, %v6694_v27 }
 0x553   :  { %6230 = vrcp.f32 %v4436_v24  ;;  %v4553_v29 = vadd.f32 1.0, %v6219_v32  ;;  %v2921_v24 = vsub.s32 5, %v6694_v27 }
 0x554   :  { %6232 = vlog2.f32 %v4551_v25  ;;  %v2918_v32 = vrot.slane %v6775_v42, %v2917_v23  ;;  %v5273_v23 = vadd.f32 -0.5, %v6730_v36 }
 0x555   :  { %6234 = vlog2.f32 %v4553_v29  ;;  %v2922_v29 = vrot.slane %v6775_v42, %v2921_v24 }
 0x557   :  { %v6221_v33 = vpop.eup %6220 }
 0x559   :  { %v6223_v34 = vpop.eup %6222 }
 0x55a   :  { %v6225_v37 = vpop.eup %6224  ;;  %v5274_v22 = vpack.c.bf16 %v6223_v34, %v6221_v33 }
 0x55b   :  { %v6227_v39 = vpop.eup %6226 }
 0x55c   :  { %v6229_v40 = vpop.eup %6228  ;;  %v4558_v43 = vmul.f32 0.6931472, %v6227_v39  ;;  %v5294_v44 = vpop.f32.mrb[12].mxu0  ;;  %4483 = vst [vmem:[#allocation16] sm:$0xff] %v5274_v22 }
 0x55d   :  { %v6231_v45 = vpop.eup %6230  ;;  %v4562_v46 = vmul.f32 0.6931472, %v6229_v40  ;;  %v5295_v47 = vpop.f32.mrb[13].mxu0 }
 0x55e   :  { %v6233_v48 = vpop.eup %6232  ;;  %v4571_v58 = vadd.f32 %v4558_v43, %v4515_v41  ;;  %v5296_v49 = vadd.f32 %v5295_v47, %v5294_v44  ;;  %v5297_v52 = vpop.f32.mrb[14].mxu0  ;;  %v5275_v53 = vpack.c.bf16 %v6231_v45, %v6225_v37 }
 0x55f   :  { %v4560_v19 = vmul.f32 0.6931472, %v6233_v48  ;;  %v5298_v57 = vpop.f32.mrb[15].mxu0  ;;  %v6235_v50 = vpop.eup %6234  ;;  %v4573_v61 = vadd.f32 %v4562_v46, %v4517_v55 }
 0x560   :  { %v4585_v59 = vsub.f32 %v6794_v56, %v4571_v58  ;;  %4484 = vst [vmem:[#allocation16 + $0x8] sm:$0xff] %v5275_v53  ;;  %v4564_v0 = vmul.f32 0.6931472, %v6235_v50  ;;  %v2925_v56 = vsub.s32 6, %v6694_v27 }
 0x561   :  { %v4572_v62 = vadd.f32 %v4560_v19, %v4516_v30  ;;  %v4587_v54 = vsub.f32 %v4580_v1, %v4573_v61 }
 0x562   :  { %v4574_v4 = vadd.f32 %v4564_v0, %v4518_v63  ;;  %v2926_v9 = vrot.slane %v6775_v42, %v2925_v56 }
 0x563   :  { %v4586_v3 = vsub.f32 %v6803_v2, %v4572_v62  ;;  %v6262_v62 = vld [vmem:[#allocation2 + $0x10] sm:$0xff] }
 0x564   :  { %v4588_v7 = vsub.f32 %v4581_v5, %v4574_v4  ;;  %v4367_v12 = vadd.f32 %v5296_v49, %v2926_v9  ;;  %v4491_v63 = vunpack.c.l.bf16 %v6262_v62  ;;  %v4492_v1 = vunpack.c.h.bf16 %v6262_v62 }
 0x565   :  { %v4608_v6 = vadd.f32 %v4586_v3, %v4585_v59  ;;  %v6263_v3 = vld [vmem:[#allocation2 + $0x18] sm:$0xf] }
 0x566   :  { %v4493_v4 = vunpack.c.l.bf16 %v6263_v3 }
 0x567   :  { %v4609_v8 = vadd.f32 %v4608_v6, %v4587_v54 }
 0x569   :  { %v6815_v35 = vadd.f32 %v4609_v8, %v4588_v7  ;;  %v4501_v7 = vand.u32 127, %v351_v26 }
 0x56b   :  { %vm4624_vm1 = vcmp.lt.s32.totalorder %v4501_v7, 20 }
 0x56c   :  { %v4636_v24 = vsel %vm4624_vm1, %v5273_v23, 0.0 }
 0x57c   :  { %v5316_v10 = vpop.f32.mrb[16].mxu0 }
 0x57d   :  { %v5317_v38 = vpop.f32.mrb[17].mxu0 }
 0x57e   :  { %v5318_v15 = vadd.f32 %v5317_v38, %v5316_v10  ;;  %v5319_v51 = vpop.f32.mrb[18].mxu0  ;;  %v4507_v38 = vadd.s32 768, %v4501_v7 }
 0x57f   :  { %v5320_v13 = vpop.f32.mrb[19].mxu0 }
 0x580   :  { %v6819_v2 = vadd.f32 %v5318_v15, %v4367_v12  ;;  %vm4514_vm0 = vcmp.lt.s32.totalorder %v4507_v38, 784 }
 0x582   :  { %v5268_v31 = vmul.f32 -1.442695, %v6819_v2  ;;  %v4528_v21 = vand.u32 2147483647, %v6819_v2  ;;  %v4521_v5 = vmax.f32 %v6819_v2, 0.0 }
 0x584   :  { %6236 = vpow2.f32 %v5268_v31  ;;  %v4535_v11 = vsub.f32 0.0, %v4528_v21  ;;  %v4584_v31 = vmul.f32 %v4493_v4, %v6819_v2 }
 0x586   :  { %v4548_v25 = vmul.f32 1.442695, %v4535_v11 }
 0x58e   :  { %v6237_v16 = vpop.eup %6236 }
 0x58f   :  { %v4439_v17 = vadd.f32 1.0, %v6237_v16 }
 0x591   :  { %6238 = vrcp.f32 %v4439_v17 }
 0x592   :  { %6240 = vpow2.f32 %v4548_v25 }
 0x59b   :  { %v6239_v18 = vpop.eup %6238 }
 0x59c   :  { %v5277_v20 = vpack.c.bf16 %v6239_v18, %v6239_v18  ;;  %v6241_v58 = vpop.eup %6240 }
 0x59d   :  { %v4556_v42 = vadd.f32 1.0, %v6241_v58 }
 0x59e   :  { %4486 = vst [vmem:[#allocation16 + $0x18] sm:$0xf] %v5277_v20 }
 0x5bb   :  { %v4325_v33 = vpop.f32.mrb[16].mxu1 }
 0x5bc   :  { %v5332_v34 = vadd.f32 %v4325_v33, %v2918_v32  ;;  %v4327_v37 = vpop.f32.mrb[17].mxu1 }
 0x5bd   :  { %v5333_v22 = vadd.f32 %v4327_v37, %v2922_v29  ;;  %v4329_v39 = vpop.f32.mrb[18].mxu1 }
 0x5be   :  { %v5266_v40 = vmul.f32 -1.442695, %v5332_v34  ;;  %v4526_v41 = vand.u32 2147483647, %v5332_v34  ;;  %v4330_v43 = vpop.f32.mrb[19].mxu1  ;;  %v4519_v6 = vmax.f32 %v5332_v34, 0.0  ;;  %v4582_v15 = vmul.f32 %v5332_v34, %v4491_v63 }
 0x5bf   :  { %v5267_v44 = vmul.f32 -1.442695, %v5333_v22  ;;  %v4527_v45 = vand.u32 2147483647, %v5333_v22  ;;  %v4520_v56 = vmax.f32 %v5333_v22, 0.0  ;;  %v4583_v13 = vmul.f32 %v5333_v22, %v4492_v1 }
 0x5c0   :  { %6242 = vpow2.f32 %v5266_v40  ;;  %v4533_v46 = vsub.f32 0.0, %v4526_v41 }
 0x5c1   :  { %6244 = vpow2.f32 %v5267_v44  ;;  %v4534_v27 = vsub.f32 0.0, %v4527_v45 }
 0x5c2   :  { %v4544_v47 = vmul.f32 1.442695, %v4533_v46 }
 0x5c3   :  { %v4546_v48 = vmul.f32 1.442695, %v4534_v27 }
 0x5c4   :  { %6246 = vpow2.f32 %v4544_v47 }
 0x5c5   :  { %6248 = vpow2.f32 %v4546_v48 }
 0x5c6   :  { %6250 = vlog2.f32 %v4556_v42 }
 0x5ca   :  { %v6243_v49 = vpop.eup %6242 }
 0x5cb   :  { %v6245_v52 = vpop.eup %6244  ;;  %v4437_v53 = vadd.f32 1.0, %v6243_v49 }
 0x5cc   :  { %v4438_v28 = vadd.f32 1.0, %v6245_v52 }
 0x5cd   :  { %6252 = vrcp.f32 %v4437_v53 }
 0x5ce   :  { %v6247_v14 = vpop.eup %6246  ;;  %6254 = vrcp.f32 %v4438_v28 }
 0x5cf   :  { %v6249_v55 = vpop.eup %6248  ;;  %v4554_v30 = vadd.f32 1.0, %v6247_v14 }
 0x5d0   :  { %v4555_v19 = vadd.f32 1.0, %v6249_v55  ;;  %v6251_v57 = vpop.eup %6250 }
 0x5d1   :  { %6256 = vlog2.f32 %v4554_v30  ;;  %v4570_v60 = vmul.f32 0.6931472, %v6251_v57 }
 0x5d2   :  { %6258 = vlog2.f32 %v4555_v19 }
 0x5d3   :  { %v4577_v10 = vadd.f32 %v4570_v60, %v4521_v5 }
 0x5d5   :  { %v4591_v18 = vsub.f32 %v4584_v31, %v4577_v10 }
 0x5d7   :  { %v6253_v50 = vpop.eup %6252  ;;  %v4607_v11 = vsel %vm4514_vm0, %v4591_v18, 0.0 }
 0x5d8   :  { %v6255_v59 = vpop.eup %6254 }
 0x5d9   :  { %v5276_v61 = vpack.c.bf16 %v6255_v59, %v6253_v50 }
 0x5db   :  { %v6257_v0 = vpop.eup %6256  ;;  %4485 = vst [vmem:[#allocation16 + $0x10] sm:$0xff] %v5276_v61 }
 0x5dc   :  { %v6259_v54 = vpop.eup %6258  ;;  %v4566_v8 = vmul.f32 0.6931472, %v6257_v0 }
 0x5dd   :  { %v4568_v9 = vmul.f32 0.6931472, %v6259_v54 }
 0x5de   :  { %v4575_v12 = vadd.f32 %v4566_v8, %v4519_v6 }
 0x5df   :  { %v4576_v51 = vadd.f32 %v4568_v9, %v4520_v56 }
 0x5e0   :  { %v4589_v16 = vsub.f32 %v4582_v15, %v4575_v12 }
 0x5e1   :  { %v4590_v17 = vsub.f32 %v4583_v13, %v4576_v51 }
 0x5e2   :  { %v4611_v20 = vadd.f32 %v6815_v35, %v4589_v16 }
 0x5e4   :  { %v4612_v21 = vadd.f32 %v4611_v20, %v4590_v17 }
 0x5e6   :  { %v4613_v26 = vadd.f32 %v4612_v21, %v4607_v11 }
 0x5e8   :  { %4614 = vadd.xlane.f32.xlu0 %v4613_v26 }
 0x5ec   :  { %4637 = vadd.xlane.f32.xlu0 %v4636_v24 }
 0x5ed   :  { %6407 = shalt.err (!%p6404_p10)
}
 0x5ee   :  { %s6408_s17 = scalar_lea.hbm %s6891_s11, 128 }
 0x5ef   :  { %p6409_p11 = scmp.ne.s32.totalorder %s6891_s11, %s6408_s17  ;;  %p6412_p12 = scmp.lt.u32.totalorder %s6408_s17, %s6891_s11 }
 0x5f1   :  { %p6414_p13 = pnand %p6412_p12, %p6409_p11 }
 0x5f3   :  { %6417 = shalt.err (!%p6414_p13)
}
 0x5f4   :  { %4671 = dma.vmem_to_hbm [thread:$0]  %s4669_s1, 128, %s6891_s11, [#allocation15]  }
 0x5f5   :  { %s6418_s4 = scalar_lea.vmem %s4659_s15, 128  ;;  %p6423_p1 = scmp.lt.s32.totalorder %s4659_s15, %s4659_s15 }
 0x5f6   :  { %p6419_p0 = scmp.ne.s32.totalorder %s4659_s15, %s6418_s4  ;;  %p6424_p2 = scmp.lt.s32.totalorder %s6418_s4, %s6418_s4 }
 0x5f8   :  { %p6425_p3 = por %p6424_p2, %p6423_p1 }
 0x5fa   :  { %p6426_p4 = pnand %p6425_p3, %p6419_p0 }
 0x5fc   :  { %6429 = shalt.err (!%p6426_p4)
}
 0x5fd   :  { %s6430_s18 = scalar_lea.hbm %s6890_s10, 128 }
 0x5fe   :  { %p6431_p5 = scmp.ne.s32.totalorder %s6890_s10, %s6430_s18  ;;  %p6434_p6 = scmp.lt.u32.totalorder %s6430_s18, %s6890_s10 }
 0x600   :  { %p6436_p7 = pnand %p6434_p6, %p6431_p5 }
 0x602   :  { %6439 = shalt.err (!%p6436_p7)
}
 0x603   :  { %4661 = dma.vmem_to_hbm [thread:$0]  %s4659_s15, 128, %s6890_s10, [#allocation4]  }
 0x604   :  { %s6513_s5 = smov [#allocation16]  }
 0x605   :  { %s4678_s30 = sshll.u32 %s6513_s5, 4  ;;  %s4679_s30 = int_to_ptr.vmem [resolvable:$true] %s4678_s30 }
 0x606   :  { %s6440_s7 = scalar_lea.vmem %s4679_s30, 448  ;;  %p6445_p9 = scmp.lt.s32.totalorder %s4679_s30, %s4679_s30 }
 0x607   :  { %p6441_p8 = scmp.ne.s32.totalorder %s4679_s30, %s6440_s7  ;;  %p6446_p10 = scmp.lt.s32.totalorder %s6440_s7, %s6440_s7 }
 0x609   :  { %p6447_p11 = por %p6446_p10, %p6445_p9 }
 0x60b   :  { %p6448_p12 = pnand %p6447_p11, %p6441_p8 }
 0x60d   :  { %6451 = shalt.err (!%p6448_p12)
}
 0x60e   :  { %s6452_s1 = scalar_lea.hbm %s6892_s12, 448 }
 0x60f   :  { %p6453_p13 = scmp.ne.s32.totalorder %s6892_s12, %s6452_s1  ;;  %p6456_p0 = scmp.lt.u32.totalorder %s6452_s1, %s6892_s12 }
 0x611   :  { %p6458_p1 = pnand %p6456_p0, %p6453_p13 }
 0x613   :  { %6461 = shalt.err (!%p6458_p1)
}
 0x614   :  { %4681 = dma.vmem_to_hbm [thread:$0]  %s4679_s30, 448, %s6892_s12, [#allocation15]  }
 0x615   :  { %s6514_s22 = smov [#allocation17]  }
 0x616   :  { %s4688_s23 = sshll.u32 %s6514_s22, 4  ;;  %s4689_s23 = int_to_ptr.vmem [resolvable:$true] %s4688_s23 }
 0x617   :  { %s6462_s27 = scalar_lea.vmem %s4689_s23, 128  ;;  %p6467_p3 = scmp.lt.s32.totalorder %s4689_s23, %s4689_s23 }
 0x618   :  { %p6463_p2 = scmp.ne.s32.totalorder %s4689_s23, %s6462_s27  ;;  %p6468_p4 = scmp.lt.s32.totalorder %s6462_s27, %s6462_s27 }
 0x61a   :  { %p6469_p5 = por %p6468_p4, %p6467_p3 }
 0x61c   :  { %p6470_p6 = pnand %p6469_p5, %p6463_p2 }
 0x675   :  { %v4615_v36 = vpop.xlane.xlu0 %4614 }
 0x676   :  { %v4616_v35 = vrot.slane %v4615_v36, 4 }
 0x678   :  { %v4617_v2 = vadd.f32 %v4616_v35, %v4615_v36 }
 0x679   :  { %v4638_v25 = vpop.xlane.xlu0 %4637 }
 0x67a   :  { %v4618_v32 = vrot.slane %v4617_v2, 2  ;;  %v4639_v29 = vrot.slane %v4638_v25, 4 }
 0x67c   :  { %v4640_v33 = vadd.f32 %v4639_v29, %v4638_v25  ;;  %v4619_v34 = vadd.f32 %v4618_v32, %v4617_v2 }
 0x67e   :  { %v4641_v37 = vrot.slane %v4640_v33, 2  ;;  %v4620_v22 = vrot.slane %v4619_v34, 1 }
 0x680   :  { %v4642_v39 = vadd.f32 %v4641_v37, %v4640_v33  ;;  %v4621_v40 = vadd.f32 %v4620_v22, %v4619_v34 }
 0x682   :  { %5374 = vpush %v4621_v40  ;;  %v4643_v41 = vrot.slane %v4642_v39, 1 }
 0x684   :  { %v4644_v43 = vadd.f32 %v4643_v41, %v4642_v39 }
 0x686   :  { %5376 = vpush %v4644_v43 }
 0x6b3   :  { %s5375_s17 = spop %5374 }
 0x6b4   :  { %s4623_s19 = ssub.f32 0.0, %s5375_s17 }
 0x6b7   :  { %s5377_s21 = spop %5376 }
 0x6b8   :  { %s4646_s12 = sadd.f32 %s5377_s21, %s4623_s19 }
 0x6ba   :  { %s4649_s24 = smul.f32 0.125, %s4646_s12 }
 0x6bc   :  { %v4650_v44 = vstv %s4649_s24 }
 0x6bd   :  { %4651 = vst [vmem:[#allocation17] sm:$0xff] %v4650_v44 }
 0x6be   :  { %6473 = shalt.err (!%p6470_p6)
}
 0x6bf   :  { %s6474_s0 = scalar_lea.hbm %s6893_s13, 128 }
 0x6c0   :  { %p6475_p7 = scmp.ne.s32.totalorder %s6893_s13, %s6474_s0  ;;  %p6478_p8 = scmp.lt.u32.totalorder %s6474_s0, %s6893_s13 }
 0x6c2   :  { %p6480_p9 = pnand %p6478_p8, %p6475_p7 }
 0x6c4   :  { %6483 = shalt.err (!%p6480_p9)
}
 0x6c5   :  { %4691 = dma.vmem_to_hbm [thread:$0]  %s4689_s23, 128, %s6893_s13, [#allocation18]  }
 0x6c6   :  { %6492 = dma.done.wait [#allocation4], 128  }
 0x6c7   :  { %6493 = vsyncadd [#allocation4], 4294967168 }
 0x6c8   :  { %6494 = dma.done.wait [#allocation15], 576  }
 0x6c9   :  { %6495 = vsyncadd [#allocation15], 4294966720 }
 0x6ca   :  { %6496 = dma.done.wait [#allocation18], 128  }
 0x6cb   :  { %6497 = vsyncadd [#allocation18], 4294967168 }
 0x6cc   :  { %4704 = vsyncpa [#allocation3], 1 }
 0x6cd   :  { %4705 = vsyncpa [#allocation6], 1 }
 0x6ce   :  { %4706 = vsyncpa [#allocation9], 1 }
 0x6cf   :  { %4707 = vsyncpa [#allocation12], 1 }
 0x6d0   :  { %4708 = vsyncpa [#allocation4], 1 }
 0x6d1   :  { %4709 = vsyncpa [#allocation15], 1 }
 0x6d2   :  { %4710 = vsyncpa [#allocation18], 1 }

</bundles_post_ra>
